<compile_context>
chip_gen: v6e
topology: v6e:2x2x1
jax: 0.10.0
libtpu: 0.0.40
codegen_flags: <defaults>
</compile_context>

<pallas_src>
import math
import functools

import jax
import jax.numpy as jnp
import numpy as np
from jax.experimental import pallas as pl
from jax.experimental.pallas import tpu as pltpu

_MXU_DTYPE = jnp.bfloat16      # MXU operand dtype (accumulation stays f32)
_PARAMS_PER_BLOCK = 24


# ------------------------------ in-kernel math ------------------------------ #

def _layer_norm(x, gamma, beta, eps=1e-5):
    mu = jnp.mean(x, axis=-1, keepdims=True)
    var = jnp.mean(jnp.square(x - mu), axis=-1, keepdims=True)
    return (x - mu) * jax.lax.rsqrt(var + eps) * gamma + beta


def _gelu(x):
    return jax.nn.gelu(x)


def _mm(a, w_ref):
    """bf16 MXU operands, f32 accumulation."""
    return jnp.dot(a.astype(_MXU_DTYPE), w_ref[...].astype(_MXU_DTYPE),
                   preferred_element_type=jnp.float32)


# -------------------------- fused whole-forward kernel ----------------------- #

def _delight_block_body(x, wrefs, b, s):
    """One DeLighT block on a (B*S, E) activation; everything in registers."""
    (g0w, g0b, g1w, g1b, g2w, g2b, g3w, g3b,
     wq, bq, wk, bk, wv, bv, wo, bo, ln1_g, ln1_b,
     f1_w, f1_b, f2_w, f2_b, ln2_g, ln2_b) = wrefs

    # --- DExTra: GLT stack (dense block-diagonal weights, shuffle folded). ---
    h = x
    for w_ref, b_ref in ((g0w, g0b), (g1w, g1b), (g2w, g2b), (g3w, g3b)):
        h = _gelu(_mm(h, w_ref) + b_ref[...])

    # --- single-head self-attention (scale folded into Wq at init). ----------
    q = _mm(h, wq) + bq[...]                 # (B*S, E)
    k = _mm(h, wk) + bk[...]
    v = _mm(h, wv) + bv[...]

    a_rows = []
    for bi in range(b):                      # B is tiny & static: unrolled
        lo = bi * s
        qb = q[lo:lo + s, :]
        kb = k[lo:lo + s, :]
        vb = v[lo:lo + s, :]
        sc = jax.lax.dot_general(qb.astype(_MXU_DTYPE), kb.astype(_MXU_DTYPE),
                                 (((1,), (1,)), ((), ())),
                                 preferred_element_type=jnp.float32)
        sc = sc - jnp.max(sc, axis=-1, keepdims=True)
        p = jnp.exp(sc)
        l = jnp.sum(p, axis=-1, keepdims=True)
        ab = jnp.dot(p.astype(_MXU_DTYPE), vb.astype(_MXU_DTYPE),
                     preferred_element_type=jnp.float32)
        a_rows.append(ab * pl.reciprocal(l, approx=True))   # denom on the EUP
    a = jnp.concatenate(a_rows, axis=0)      # (B*S, E)
    a = _mm(a, wo) + bo[...]

    h = _layer_norm(a + x, ln1_g[...], ln1_b[...])   # residual = block input

    # --- light-weight FFN. ----------------------------------------------------
    f = _gelu(_mm(h, f1_w) + f1_b[...])
    f = _mm(f, f2_w) + f2_b[...]
    return _layer_norm(f + h, ln2_g[...], ln2_b[...])


def _delight_forward_kernel(*refs, b, s, e):
    x_ref, pe_ref = refs[0], refs[1]
    out_ref = refs[-1]
    w = refs[2:-1]

    # Fused positional-encoding add (PE repeats over the batch axis).
    x = x_ref[...].reshape(b, s, e) + pe_ref[0:s, :]
    h = x.reshape(b * s, e)

    # Three DeLighT blocks, activations never leave VMEM/vregs.
    for blk in range(3):
        h = _delight_block_body(
            h, w[blk * _PARAMS_PER_BLOCK:(blk + 1) * _PARAMS_PER_BLOCK], b, s)

    # Mean over sequence (torch.mean(x, dim=0) in seq-first layout) + Linear.
    final_w, final_b = w[3 * _PARAMS_PER_BLOCK], w[3 * _PARAMS_PER_BLOCK + 1]
    means = [jnp.mean(h[bi * s:(bi + 1) * s, :], axis=0, keepdims=True)
             for bi in range(b)]
    m = jnp.concatenate(means, axis=0)                     # (B, E)
    out_ref[...] = jnp.dot(m, final_w[...],
                           preferred_element_type=jnp.float32) + final_b[...]


def delight_classifier_forward(x, params):
    # x: (S, B, E) sequence-first (nn.Transformer convention).
    s_, b_, e_ = x.shape
    h = jnp.transpose(x, (1, 0, 2)).reshape(b_ * s_, e_)   # (B*S, E), once
    args = ([h, params["pe"]]
            + list(params["F1"]) + list(params["F2"]) + list(params["F3"])
            + [params["final_w"], params["final_b"]])
    kern = functools.partial(_delight_forward_kernel, b=b_, s=s_, e=e_)
    return pl.pallas_call(
        kern,
        out_shape=jax.ShapeDtypeStruct((b_, 2), jnp.float32),
        compiler_params=pltpu.CompilerParams(
            vmem_limit_bytes=32 * 1024 * 1024),
    )(*args)


# ------------------------------ parameter setup ----------------------------- #

def _normal(key, shape, scale=0.02):
    return scale * jax.random.normal(key, shape, dtype=jnp.float32)


def make_positional_encoding(max_len, e):
    pe = np.zeros((max_len, e), dtype=np.float32)
    position = np.arange(max_len, dtype=np.float32)[:, None]
    div_term = np.exp(np.arange(0, e, 2, dtype=np.float32)
                      * (-math.log(10000.0) / e))
    pe[:, 0::2] = np.sin(position * div_term)
    pe[:, 1::2] = np.cos(position * div_term)
    return jnp.asarray(pe)                                # (max_len, E)


def _glt_dense_weight(key, din, dout, g, shuffle):
    """Dense block-diagonal GLT weight with the DeLighT feature shuffle folded
    into the output columns at init (zero runtime cost)."""
    wg = np.asarray(_normal(key, (g, din // g, dout // g)))
    dg, og = din // g, dout // g
    w = np.zeros((din, dout), dtype=np.float32)
    for gi in range(g):
        w[gi * dg:(gi + 1) * dg, gi * og:(gi + 1) * og] = wg[gi]
    b = np.zeros((1, dout), dtype=np.float32)
    if shuffle and g > 1:
        perm = np.arange(dout).reshape(g, og).T.reshape(-1)
        w = w[:, perm]
        b = b[:, perm]
    return jnp.asarray(w, dtype=_MXU_DTYPE), jnp.asarray(b)


def init_delight_block_params(key, e, nb=4, wb=2.0, glt_shuffle=True):
    del nb  # nb=4 expand->contract schedule hard-coded below
    we = int(wb * e)
    dff = max(e // 4, 8)
    glt_cfg = [(e, we, 1), (we, we, 2), (we, e, 2), (e, e, 1)]
    keys = jax.random.split(key, 12)
    ws = []
    ki = 0
    for (din, dout, g) in glt_cfg:
        w, b = _glt_dense_weight(keys[ki], din, dout, g, glt_shuffle)
        ki += 1
        ws += [w, b]
    zb = jnp.zeros((1, e), jnp.float32)
    scale = 1.0 / math.sqrt(e)
    wq = (_normal(keys[ki], (e, e)) * scale).astype(_MXU_DTYPE)   # scale folded
    wk = _normal(keys[ki + 1], (e, e)).astype(_MXU_DTYPE)
    wv = _normal(keys[ki + 2], (e, e)).astype(_MXU_DTYPE)
    ki += 3
    ws += [wq, zb, wk, zb, wv, zb]
    ws += [_normal(keys[ki], (e, e)).astype(_MXU_DTYPE), zb]              # Wo
    ki += 1
    ws += [jnp.ones((1, e), jnp.float32), jnp.zeros((1, e), jnp.float32)]  # ln1
    ws += [_normal(keys[ki], (e, dff)).astype(_MXU_DTYPE),
           jnp.zeros((1, dff), jnp.float32)]                               # FFN1
    ki += 1
    ws += [_normal(keys[ki], (dff, e)).astype(_MXU_DTYPE), zb]             # FFN2
    ki += 1
    ws += [jnp.ones((1, e), jnp.float32), jnp.zeros((1, e), jnp.float32)]  # ln2
    assert len(ws) == _PARAMS_PER_BLOCK
    return tuple(ws)


def init_params(key, e, max_len, glt_shuffle=True):
    k1, k2, k3, k4 = jax.random.split(key, 4)
    return {
        "pe": make_positional_encoding(max_len, e),
        "F1": init_delight_block_params(k1, e, glt_shuffle=glt_shuffle),
        "F2": init_delight_block_params(k2, e, glt_shuffle=glt_shuffle),
        "F3": init_delight_block_params(k3, e, glt_shuffle=glt_shuffle),
        "final_w": _normal(k4, (e, 2)),
        "final_b": jnp.zeros((1, 2), jnp.float32),
    }


# ----------------------------------- main ------------------------------------ #

if __name__ == "__main__":
    E, MAX_LEN, S, B = 32, 16, 8, 2
    key = jax.random.PRNGKey(0)
    pkey, xkey = jax.random.split(key)
    params = init_params(pkey, E, MAX_LEN, glt_shuffle=True)
    x = jax.random.normal(xkey, (S, B, E), dtype=jnp.float32)

    fwd = jax.jit(delight_classifier_forward)
    out = jax.block_until_ready(fwd(x, params))
    assert out.shape == (B, 2) and out.dtype == jnp.float32
    assert bool(jnp.all(jnp.isfinite(out)))
    print("KERNEL_OK")
</pallas_src>

<mosaic_0001>
module attributes {stable_mosaic.version = 11 : i64} {
  func.func @_delight_forward_kernel(%arg0: memref<16x32xf32, #tpu.memory_space<vmem>>, %arg1: memref<16x32xf32, #tpu.memory_space<vmem>>, %arg2: memref<32x64xbf16, #tpu.memory_space<vmem>>, %arg3: memref<1x64xf32, #tpu.memory_space<vmem>>, %arg4: memref<64x64xbf16, #tpu.memory_space<vmem>>, %arg5: memref<1x64xf32, #tpu.memory_space<vmem>>, %arg6: memref<64x32xbf16, #tpu.memory_space<vmem>>, %arg7: memref<1x32xf32, #tpu.memory_space<vmem>>, %arg8: memref<32x32xbf16, #tpu.memory_space<vmem>>, %arg9: memref<1x32xf32, #tpu.memory_space<vmem>>, %arg10: memref<32x32xbf16, #tpu.memory_space<vmem>>, %arg11: memref<1x32xf32, #tpu.memory_space<vmem>>, %arg12: memref<32x32xbf16, #tpu.memory_space<vmem>>, %arg13: memref<1x32xf32, #tpu.memory_space<vmem>>, %arg14: memref<32x32xbf16, #tpu.memory_space<vmem>>, %arg15: memref<1x32xf32, #tpu.memory_space<vmem>>, %arg16: memref<32x32xbf16, #tpu.memory_space<vmem>>, %arg17: memref<1x32xf32, #tpu.memory_space<vmem>>, %arg18: memref<1x32xf32, #tpu.memory_space<vmem>>, %arg19: memref<1x32xf32, #tpu.memory_space<vmem>>, %arg20: memref<32x8xbf16, #tpu.memory_space<vmem>>, %arg21: memref<1x8xf32, #tpu.memory_space<vmem>>, %arg22: memref<8x32xbf16, #tpu.memory_space<vmem>>, %arg23: memref<1x32xf32, #tpu.memory_space<vmem>>, %arg24: memref<1x32xf32, #tpu.memory_space<vmem>>, %arg25: memref<1x32xf32, #tpu.memory_space<vmem>>, %arg26: memref<32x64xbf16, #tpu.memory_space<vmem>>, %arg27: memref<1x64xf32, #tpu.memory_space<vmem>>, %arg28: memref<64x64xbf16, #tpu.memory_space<vmem>>, %arg29: memref<1x64xf32, #tpu.memory_space<vmem>>, %arg30: memref<64x32xbf16, #tpu.memory_space<vmem>>, %arg31: memref<1x32xf32, #tpu.memory_space<vmem>>, %arg32: memref<32x32xbf16, #tpu.memory_space<vmem>>, %arg33: memref<1x32xf32, #tpu.memory_space<vmem>>, %arg34: memref<32x32xbf16, #tpu.memory_space<vmem>>, %arg35: memref<1x32xf32, #tpu.memory_space<vmem>>, %arg36: memref<32x32xbf16, #tpu.memory_space<vmem>>, %arg37: memref<1x32xf32, #tpu.memory_space<vmem>>, %arg38: memref<32x32xbf16, #tpu.memory_space<vmem>>, %arg39: memref<1x32xf32, #tpu.memory_space<vmem>>, %arg40: memref<32x32xbf16, #tpu.memory_space<vmem>>, %arg41: memref<1x32xf32, #tpu.memory_space<vmem>>, %arg42: memref<1x32xf32, #tpu.memory_space<vmem>>, %arg43: memref<1x32xf32, #tpu.memory_space<vmem>>, %arg44: memref<32x8xbf16, #tpu.memory_space<vmem>>, %arg45: memref<1x8xf32, #tpu.memory_space<vmem>>, %arg46: memref<8x32xbf16, #tpu.memory_space<vmem>>, %arg47: memref<1x32xf32, #tpu.memory_space<vmem>>, %arg48: memref<1x32xf32, #tpu.memory_space<vmem>>, %arg49: memref<1x32xf32, #tpu.memory_space<vmem>>, %arg50: memref<32x64xbf16, #tpu.memory_space<vmem>>, %arg51: memref<1x64xf32, #tpu.memory_space<vmem>>, %arg52: memref<64x64xbf16, #tpu.memory_space<vmem>>, %arg53: memref<1x64xf32, #tpu.memory_space<vmem>>, %arg54: memref<64x32xbf16, #tpu.memory_space<vmem>>, %arg55: memref<1x32xf32, #tpu.memory_space<vmem>>, %arg56: memref<32x32xbf16, #tpu.memory_space<vmem>>, %arg57: memref<1x32xf32, #tpu.memory_space<vmem>>, %arg58: memref<32x32xbf16, #tpu.memory_space<vmem>>, %arg59: memref<1x32xf32, #tpu.memory_space<vmem>>, %arg60: memref<32x32xbf16, #tpu.memory_space<vmem>>, %arg61: memref<1x32xf32, #tpu.memory_space<vmem>>, %arg62: memref<32x32xbf16, #tpu.memory_space<vmem>>, %arg63: memref<1x32xf32, #tpu.memory_space<vmem>>, %arg64: memref<32x32xbf16, #tpu.memory_space<vmem>>, %arg65: memref<1x32xf32, #tpu.memory_space<vmem>>, %arg66: memref<1x32xf32, #tpu.memory_space<vmem>>, %arg67: memref<1x32xf32, #tpu.memory_space<vmem>>, %arg68: memref<32x8xbf16, #tpu.memory_space<vmem>>, %arg69: memref<1x8xf32, #tpu.memory_space<vmem>>, %arg70: memref<8x32xbf16, #tpu.memory_space<vmem>>, %arg71: memref<1x32xf32, #tpu.memory_space<vmem>>, %arg72: memref<1x32xf32, #tpu.memory_space<vmem>>, %arg73: memref<1x32xf32, #tpu.memory_space<vmem>>, %arg74: memref<32x2xf32, #tpu.memory_space<vmem>>, %arg75: memref<1x2xf32, #tpu.memory_space<vmem>>, %arg76: memref<2x2xf32, #tpu.memory_space<vmem>>) attributes {dimension_semantics = [], scalar_prefetch = 0 : i64, scratch_operands = 0 : i64, tpu.core_type = #tpu.core_type<tc>} {
    %c0 = arith.constant 0 : index
    %c0_0 = arith.constant 0 : index
    %0 = vector.load %arg0[%c0, %c0_0] : memref<16x32xf32, #tpu.memory_space<vmem>>, vector<16x32xf32>
    %1 = vector.shape_cast %0 : vector<16x32xf32> to vector<2x8x32xf32>
    %c0_1 = arith.constant 0 : index
    %c0_2 = arith.constant 0 : index
    %2 = vector.load %arg1[%c0_1, %c0_2] : memref<16x32xf32, #tpu.memory_space<vmem>>, vector<8x32xf32>
    %3 = vector.shape_cast %2 : vector<8x32xf32> to vector<1x8x32xf32>
    %4 = vector.broadcast %3 : vector<1x8x32xf32> to vector<2x8x32xf32>
    %5 = arith.addf %1, %4 : vector<2x8x32xf32>
    %6 = vector.shape_cast %5 : vector<2x8x32xf32> to vector<16x32xf32>
    %7 = arith.truncf %6 : vector<16x32xf32> to vector<16x32xbf16>
    %c0_3 = arith.constant 0 : index
    %c0_4 = arith.constant 0 : index
    %8 = vector.load %arg2[%c0_3, %c0_4] : memref<32x64xbf16, #tpu.memory_space<vmem>>, vector<32x64xbf16>
    %cst = arith.constant dense<0.000000e+00> : vector<16x64xf32>
    %9 = tpu.matmul %7, %8, %cst {dimension_numbers = #tpu.dot_dimension_numbers<[1], [0], [0], [1], [0, 0, 1, 1], [], []>} : vector<16x32xbf16>, vector<32x64xbf16>, vector<16x64xf32> -> vector<16x64xf32>
    %c0_5 = arith.constant 0 : index
    %c0_6 = arith.constant 0 : index
    %10 = vector.load %arg3[%c0_5, %c0_6] : memref<1x64xf32, #tpu.memory_space<vmem>>, vector<1x64xf32>
    %11 = vector.broadcast %10 : vector<1x64xf32> to vector<16x64xf32>
    %12 = arith.addf %9, %11 : vector<16x64xf32>
    %13 = arith.mulf %12, %12 : vector<16x64xf32>
    %14 = arith.mulf %12, %13 : vector<16x64xf32>
    %cst_7 = arith.constant 4.471500e-02 : f32
    %15 = vector.broadcast %cst_7 : f32 to vector<16x64xf32>
    %16 = arith.mulf %15, %14 : vector<16x64xf32>
    %17 = arith.addf %12, %16 : vector<16x64xf32>
    %cst_8 = arith.constant 0.797884583 : f32
    %18 = vector.broadcast %cst_8 : f32 to vector<16x64xf32>
    %19 = arith.mulf %18, %17 : vector<16x64xf32>
    %20 = math.tanh %19 : vector<16x64xf32>
    %cst_9 = arith.constant 1.000000e+00 : f32
    %21 = vector.broadcast %cst_9 : f32 to vector<16x64xf32>
    %22 = arith.addf %21, %20 : vector<16x64xf32>
    %cst_10 = arith.constant 5.000000e-01 : f32
    %23 = vector.broadcast %cst_10 : f32 to vector<16x64xf32>
    %24 = arith.mulf %23, %22 : vector<16x64xf32>
    %25 = arith.mulf %12, %24 : vector<16x64xf32>
    %26 = arith.truncf %25 : vector<16x64xf32> to vector<16x64xbf16>
    %c0_11 = arith.constant 0 : index
    %c0_12 = arith.constant 0 : index
    %27 = vector.load %arg4[%c0_11, %c0_12] : memref<64x64xbf16, #tpu.memory_space<vmem>>, vector<64x64xbf16>
    %cst_13 = arith.constant dense<0.000000e+00> : vector<16x64xf32>
    %28 = tpu.matmul %26, %27, %cst_13 {dimension_numbers = #tpu.dot_dimension_numbers<[1], [0], [0], [1], [0, 0, 1, 1], [], []>} : vector<16x64xbf16>, vector<64x64xbf16>, vector<16x64xf32> -> vector<16x64xf32>
    %c0_14 = arith.constant 0 : index
    %c0_15 = arith.constant 0 : index
    %29 = vector.load %arg5[%c0_14, %c0_15] : memref<1x64xf32, #tpu.memory_space<vmem>>, vector<1x64xf32>
    %30 = vector.broadcast %29 : vector<1x64xf32> to vector<16x64xf32>
    %31 = arith.addf %28, %30 : vector<16x64xf32>
    %32 = arith.mulf %31, %31 : vector<16x64xf32>
    %33 = arith.mulf %31, %32 : vector<16x64xf32>
    %cst_16 = arith.constant 4.471500e-02 : f32
    %34 = vector.broadcast %cst_16 : f32 to vector<16x64xf32>
    %35 = arith.mulf %34, %33 : vector<16x64xf32>
    %36 = arith.addf %31, %35 : vector<16x64xf32>
    %cst_17 = arith.constant 0.797884583 : f32
    %37 = vector.broadcast %cst_17 : f32 to vector<16x64xf32>
    %38 = arith.mulf %37, %36 : vector<16x64xf32>
    %39 = math.tanh %38 : vector<16x64xf32>
    %cst_18 = arith.constant 1.000000e+00 : f32
    %40 = vector.broadcast %cst_18 : f32 to vector<16x64xf32>
    %41 = arith.addf %40, %39 : vector<16x64xf32>
    %cst_19 = arith.constant 5.000000e-01 : f32
    %42 = vector.broadcast %cst_19 : f32 to vector<16x64xf32>
    %43 = arith.mulf %42, %41 : vector<16x64xf32>
    %44 = arith.mulf %31, %43 : vector<16x64xf32>
    %45 = arith.truncf %44 : vector<16x64xf32> to vector<16x64xbf16>
    %c0_20 = arith.constant 0 : index
    %c0_21 = arith.constant 0 : index
    %46 = vector.load %arg6[%c0_20, %c0_21] : memref<64x32xbf16, #tpu.memory_space<vmem>>, vector<64x32xbf16>
    %cst_22 = arith.constant dense<0.000000e+00> : vector<16x32xf32>
    %47 = tpu.matmul %45, %46, %cst_22 {dimension_numbers = #tpu.dot_dimension_numbers<[1], [0], [0], [1], [0, 0, 1, 1], [], []>} : vector<16x64xbf16>, vector<64x32xbf16>, vector<16x32xf32> -> vector<16x32xf32>
    %c0_23 = arith.constant 0 : index
    %c0_24 = arith.constant 0 : index
    %48 = vector.load %arg7[%c0_23, %c0_24] : memref<1x32xf32, #tpu.memory_space<vmem>>, vector<1x32xf32>
    %49 = vector.broadcast %48 : vector<1x32xf32> to vector<16x32xf32>
    %50 = arith.addf %47, %49 : vector<16x32xf32>
    %51 = arith.mulf %50, %50 : vector<16x32xf32>
    %52 = arith.mulf %50, %51 : vector<16x32xf32>
    %cst_25 = arith.constant 4.471500e-02 : f32
    %53 = vector.broadcast %cst_25 : f32 to vector<16x32xf32>
    %54 = arith.mulf %53, %52 : vector<16x32xf32>
    %55 = arith.addf %50, %54 : vector<16x32xf32>
    %cst_26 = arith.constant 0.797884583 : f32
    %56 = vector.broadcast %cst_26 : f32 to vector<16x32xf32>
    %57 = arith.mulf %56, %55 : vector<16x32xf32>
    %58 = math.tanh %57 : vector<16x32xf32>
    %cst_27 = arith.constant 1.000000e+00 : f32
    %59 = vector.broadcast %cst_27 : f32 to vector<16x32xf32>
    %60 = arith.addf %59, %58 : vector<16x32xf32>
    %cst_28 = arith.constant 5.000000e-01 : f32
    %61 = vector.broadcast %cst_28 : f32 to vector<16x32xf32>
    %62 = arith.mulf %61, %60 : vector<16x32xf32>
    %63 = arith.mulf %50, %62 : vector<16x32xf32>
    %64 = arith.truncf %63 : vector<16x32xf32> to vector<16x32xbf16>
    %c0_29 = arith.constant 0 : index
    %c0_30 = arith.constant 0 : index
    %65 = vector.load %arg8[%c0_29, %c0_30] : memref<32x32xbf16, #tpu.memory_space<vmem>>, vector<32x32xbf16>
    %cst_31 = arith.constant dense<0.000000e+00> : vector<16x32xf32>
    %66 = tpu.matmul %64, %65, %cst_31 {dimension_numbers = #tpu.dot_dimension_numbers<[1], [0], [0], [1], [0, 0, 1, 1], [], []>} : vector<16x32xbf16>, vector<32x32xbf16>, vector<16x32xf32> -> vector<16x32xf32>
    %c0_32 = arith.constant 0 : index
    %c0_33 = arith.constant 0 : index
    %67 = vector.load %arg9[%c0_32, %c0_33] : memref<1x32xf32, #tpu.memory_space<vmem>>, vector<1x32xf32>
    %68 = vector.broadcast %67 : vector<1x32xf32> to vector<16x32xf32>
    %69 = arith.addf %66, %68 : vector<16x32xf32>
    %70 = arith.mulf %69, %69 : vector<16x32xf32>
    %71 = arith.mulf %69, %70 : vector<16x32xf32>
    %cst_34 = arith.constant 4.471500e-02 : f32
    %72 = vector.broadcast %cst_34 : f32 to vector<16x32xf32>
    %73 = arith.mulf %72, %71 : vector<16x32xf32>
    %74 = arith.addf %69, %73 : vector<16x32xf32>
    %cst_35 = arith.constant 0.797884583 : f32
    %75 = vector.broadcast %cst_35 : f32 to vector<16x32xf32>
    %76 = arith.mulf %75, %74 : vector<16x32xf32>
    %77 = math.tanh %76 : vector<16x32xf32>
    %cst_36 = arith.constant 1.000000e+00 : f32
    %78 = vector.broadcast %cst_36 : f32 to vector<16x32xf32>
    %79 = arith.addf %78, %77 : vector<16x32xf32>
    %cst_37 = arith.constant 5.000000e-01 : f32
    %80 = vector.broadcast %cst_37 : f32 to vector<16x32xf32>
    %81 = arith.mulf %80, %79 : vector<16x32xf32>
    %82 = arith.mulf %69, %81 : vector<16x32xf32>
    %83 = arith.truncf %82 : vector<16x32xf32> to vector<16x32xbf16>
    %c0_38 = arith.constant 0 : index
    %c0_39 = arith.constant 0 : index
    %84 = vector.load %arg10[%c0_38, %c0_39] : memref<32x32xbf16, #tpu.memory_space<vmem>>, vector<32x32xbf16>
    %cst_40 = arith.constant dense<0.000000e+00> : vector<16x32xf32>
    %85 = tpu.matmul %83, %84, %cst_40 {dimension_numbers = #tpu.dot_dimension_numbers<[1], [0], [0], [1], [0, 0, 1, 1], [], []>} : vector<16x32xbf16>, vector<32x32xbf16>, vector<16x32xf32> -> vector<16x32xf32>
    %c0_41 = arith.constant 0 : index
    %c0_42 = arith.constant 0 : index
    %86 = vector.load %arg11[%c0_41, %c0_42] : memref<1x32xf32, #tpu.memory_space<vmem>>, vector<1x32xf32>
    %87 = vector.broadcast %86 : vector<1x32xf32> to vector<16x32xf32>
    %88 = arith.addf %85, %87 : vector<16x32xf32>
    %89 = arith.truncf %82 : vector<16x32xf32> to vector<16x32xbf16>
    %c0_43 = arith.constant 0 : index
    %c0_44 = arith.constant 0 : index
    %90 = vector.load %arg12[%c0_43, %c0_44] : memref<32x32xbf16, #tpu.memory_space<vmem>>, vector<32x32xbf16>
    %cst_45 = arith.constant dense<0.000000e+00> : vector<16x32xf32>
    %91 = tpu.matmul %89, %90, %cst_45 {dimension_numbers = #tpu.dot_dimension_numbers<[1], [0], [0], [1], [0, 0, 1, 1], [], []>} : vector<16x32xbf16>, vector<32x32xbf16>, vector<16x32xf32> -> vector<16x32xf32>
    %c0_46 = arith.constant 0 : index
    %c0_47 = arith.constant 0 : index
    %92 = vector.load %arg13[%c0_46, %c0_47] : memref<1x32xf32, #tpu.memory_space<vmem>>, vector<1x32xf32>
    %93 = vector.broadcast %92 : vector<1x32xf32> to vector<16x32xf32>
    %94 = arith.addf %91, %93 : vector<16x32xf32>
    %95 = arith.truncf %82 : vector<16x32xf32> to vector<16x32xbf16>
    %c0_48 = arith.constant 0 : index
    %c0_49 = arith.constant 0 : index
    %96 = vector.load %arg14[%c0_48, %c0_49] : memref<32x32xbf16, #tpu.memory_space<vmem>>, vector<32x32xbf16>
    %cst_50 = arith.constant dense<0.000000e+00> : vector<16x32xf32>
    %97 = tpu.matmul %95, %96, %cst_50 {dimension_numbers = #tpu.dot_dimension_numbers<[1], [0], [0], [1], [0, 0, 1, 1], [], []>} : vector<16x32xbf16>, vector<32x32xbf16>, vector<16x32xf32> -> vector<16x32xf32>
    %c0_51 = arith.constant 0 : index
    %c0_52 = arith.constant 0 : index
    %98 = vector.load %arg15[%c0_51, %c0_52] : memref<1x32xf32, #tpu.memory_space<vmem>>, vector<1x32xf32>
    %99 = vector.broadcast %98 : vector<1x32xf32> to vector<16x32xf32>
    %100 = arith.addf %97, %99 : vector<16x32xf32>
    %101 = vector.extract_strided_slice %88 {offsets = [0, 0], sizes = [8, 32], strides = [1, 1]} : vector<16x32xf32> to vector<8x32xf32>
    %102 = vector.extract_strided_slice %94 {offsets = [0, 0], sizes = [8, 32], strides = [1, 1]} : vector<16x32xf32> to vector<8x32xf32>
    %103 = vector.extract_strided_slice %100 {offsets = [0, 0], sizes = [8, 32], strides = [1, 1]} : vector<16x32xf32> to vector<8x32xf32>
    %104 = arith.truncf %101 : vector<8x32xf32> to vector<8x32xbf16>
    %105 = arith.truncf %102 : vector<8x32xf32> to vector<8x32xbf16>
    %cst_53 = arith.constant dense<0.000000e+00> : vector<8x8xf32>
    %106 = tpu.matmul %104, %105, %cst_53 {dimension_numbers = #tpu.dot_dimension_numbers<[1], [1], [0], [0], [0, 0, 1, 0], [], []>} : vector<8x32xbf16>, vector<8x32xbf16>, vector<8x8xf32> -> vector<8x8xf32>
    %cst_54 = arith.constant dense<0xFF800000> : vector<8xf32>
    %107 = vector.multi_reduction <maximumf>, %106, %cst_54 [1] : vector<8x8xf32> to vector<8xf32>
    %108 = vector.shape_cast %107 : vector<8xf32> to vector<8x1xf32>
    %109 = vector.broadcast %108 : vector<8x1xf32> to vector<8x8xf32>
    %110 = arith.subf %106, %109 : vector<8x8xf32>
    %111 = math.exp %110 : vector<8x8xf32>
    %cst_55 = arith.constant dense<0.000000e+00> : vector<8xf32>
    %112 = vector.multi_reduction <add>, %111, %cst_55 [1] : vector<8x8xf32> to vector<8xf32>
    %113 = vector.shape_cast %112 : vector<8xf32> to vector<8x1xf32>
    %114 = arith.truncf %111 : vector<8x8xf32> to vector<8x8xbf16>
    %115 = arith.truncf %103 : vector<8x32xf32> to vector<8x32xbf16>
    %cst_56 = arith.constant dense<0.000000e+00> : vector<8x32xf32>
    %116 = tpu.matmul %114, %115, %cst_56 {dimension_numbers = #tpu.dot_dimension_numbers<[1], [0], [0], [1], [0, 0, 1, 1], [], []>} : vector<8x8xbf16>, vector<8x32xbf16>, vector<8x32xf32> -> vector<8x32xf32>
    %117 = tpu.reciprocal %113 {approx = true} : vector<8x1xf32> -> vector<8x1xf32>
    %118 = vector.broadcast %117 : vector<8x1xf32> to vector<8x32xf32>
    %119 = arith.mulf %116, %118 : vector<8x32xf32>
    %120 = vector.extract_strided_slice %88 {offsets = [8, 0], sizes = [8, 32], strides = [1, 1]} : vector<16x32xf32> to vector<8x32xf32>
    %121 = vector.extract_strided_slice %94 {offsets = [8, 0], sizes = [8, 32], strides = [1, 1]} : vector<16x32xf32> to vector<8x32xf32>
    %122 = vector.extract_strided_slice %100 {offsets = [8, 0], sizes = [8, 32], strides = [1, 1]} : vector<16x32xf32> to vector<8x32xf32>
    %123 = arith.truncf %120 : vector<8x32xf32> to vector<8x32xbf16>
    %124 = arith.truncf %121 : vector<8x32xf32> to vector<8x32xbf16>
    %cst_57 = arith.constant dense<0.000000e+00> : vector<8x8xf32>
    %125 = tpu.matmul %123, %124, %cst_57 {dimension_numbers = #tpu.dot_dimension_numbers<[1], [1], [0], [0], [0, 0, 1, 0], [], []>} : vector<8x32xbf16>, vector<8x32xbf16>, vector<8x8xf32> -> vector<8x8xf32>
    %cst_58 = arith.constant dense<0xFF800000> : vector<8xf32>
    %126 = vector.multi_reduction <maximumf>, %125, %cst_58 [1] : vector<8x8xf32> to vector<8xf32>
    %127 = vector.shape_cast %126 : vector<8xf32> to vector<8x1xf32>
    %128 = vector.broadcast %127 : vector<8x1xf32> to vector<8x8xf32>
    %129 = arith.subf %125, %128 : vector<8x8xf32>
    %130 = math.exp %129 : vector<8x8xf32>
    %cst_59 = arith.constant dense<0.000000e+00> : vector<8xf32>
    %131 = vector.multi_reduction <add>, %130, %cst_59 [1] : vector<8x8xf32> to vector<8xf32>
    %132 = vector.shape_cast %131 : vector<8xf32> to vector<8x1xf32>
    %133 = arith.truncf %130 : vector<8x8xf32> to vector<8x8xbf16>
    %134 = arith.truncf %122 : vector<8x32xf32> to vector<8x32xbf16>
    %cst_60 = arith.constant dense<0.000000e+00> : vector<8x32xf32>
    %135 = tpu.matmul %133, %134, %cst_60 {dimension_numbers = #tpu.dot_dimension_numbers<[1], [0], [0], [1], [0, 0, 1, 1], [], []>} : vector<8x8xbf16>, vector<8x32xbf16>, vector<8x32xf32> -> vector<8x32xf32>
    %136 = tpu.reciprocal %132 {approx = true} : vector<8x1xf32> -> vector<8x1xf32>
    %137 = vector.broadcast %136 : vector<8x1xf32> to vector<8x32xf32>
    %138 = arith.mulf %135, %137 : vector<8x32xf32>
    %139 = tpu.concatenate %119, %138 in 0 : vector<8x32xf32>, vector<8x32xf32> -> vector<16x32xf32>
    %140 = arith.truncf %139 : vector<16x32xf32> to vector<16x32xbf16>
    %c0_61 = arith.constant 0 : index
    %c0_62 = arith.constant 0 : index
    %141 = vector.load %arg16[%c0_61, %c0_62] : memref<32x32xbf16, #tpu.memory_space<vmem>>, vector<32x32xbf16>
    %cst_63 = arith.constant dense<0.000000e+00> : vector<16x32xf32>
    %142 = tpu.matmul %140, %141, %cst_63 {dimension_numbers = #tpu.dot_dimension_numbers<[1], [0], [0], [1], [0, 0, 1, 1], [], []>} : vector<16x32xbf16>, vector<32x32xbf16>, vector<16x32xf32> -> vector<16x32xf32>
    %c0_64 = arith.constant 0 : index
    %c0_65 = arith.constant 0 : index
    %143 = vector.load %arg17[%c0_64, %c0_65] : memref<1x32xf32, #tpu.memory_space<vmem>>, vector<1x32xf32>
    %144 = vector.broadcast %143 : vector<1x32xf32> to vector<16x32xf32>
    %145 = arith.addf %142, %144 : vector<16x32xf32>
    %146 = arith.addf %145, %6 : vector<16x32xf32>
    %c0_66 = arith.constant 0 : index
    %c0_67 = arith.constant 0 : index
    %147 = vector.load %arg18[%c0_66, %c0_67] : memref<1x32xf32, #tpu.memory_space<vmem>>, vector<1x32xf32>
    %c0_68 = arith.constant 0 : index
    %c0_69 = arith.constant 0 : index
    %148 = vector.load %arg19[%c0_68, %c0_69] : memref<1x32xf32, #tpu.memory_space<vmem>>, vector<1x32xf32>
    %cst_70 = arith.constant dense<0.000000e+00> : vector<16xf32>
    %149 = vector.multi_reduction <add>, %146, %cst_70 [1] : vector<16x32xf32> to vector<16xf32>
    %150 = vector.shape_cast %149 : vector<16xf32> to vector<16x1xf32>
    %cst_71 = arith.constant 3.200000e+01 : f32
    %151 = vector.broadcast %cst_71 : f32 to vector<16x1xf32>
    %152 = arith.divf %150, %151 : vector<16x1xf32>
    %153 = vector.broadcast %152 : vector<16x1xf32> to vector<16x32xf32>
    %154 = arith.subf %146, %153 : vector<16x32xf32>
    %155 = arith.mulf %154, %154 : vector<16x32xf32>
    %cst_72 = arith.constant dense<0.000000e+00> : vector<16xf32>
    %156 = vector.multi_reduction <add>, %155, %cst_72 [1] : vector<16x32xf32> to vector<16xf32>
    %157 = vector.shape_cast %156 : vector<16xf32> to vector<16x1xf32>
    %cst_73 = arith.constant 3.200000e+01 : f32
    %158 = vector.broadcast %cst_73 : f32 to vector<16x1xf32>
    %159 = arith.divf %157, %158 : vector<16x1xf32>
    %160 = vector.broadcast %152 : vector<16x1xf32> to vector<16x32xf32>
    %161 = arith.subf %146, %160 : vector<16x32xf32>
    %cst_74 = arith.constant 9.99999974E-6 : f32
    %162 = vector.broadcast %cst_74 : f32 to vector<16x1xf32>
    %163 = arith.addf %159, %162 : vector<16x1xf32>
    %164 = math.rsqrt %163 : vector<16x1xf32>
    %165 = vector.broadcast %164 : vector<16x1xf32> to vector<16x32xf32>
    %166 = arith.mulf %161, %165 : vector<16x32xf32>
    %167 = vector.broadcast %147 : vector<1x32xf32> to vector<16x32xf32>
    %168 = arith.mulf %166, %167 : vector<16x32xf32>
    %169 = vector.broadcast %148 : vector<1x32xf32> to vector<16x32xf32>
    %170 = arith.addf %168, %169 : vector<16x32xf32>
    %171 = arith.truncf %170 : vector<16x32xf32> to vector<16x32xbf16>
    %c0_75 = arith.constant 0 : index
    %c0_76 = arith.constant 0 : index
    %172 = vector.load %arg20[%c0_75, %c0_76] : memref<32x8xbf16, #tpu.memory_space<vmem>>, vector<32x8xbf16>
    %cst_77 = arith.constant dense<0.000000e+00> : vector<16x8xf32>
    %173 = tpu.matmul %171, %172, %cst_77 {dimension_numbers = #tpu.dot_dimension_numbers<[1], [0], [0], [1], [0, 0, 1, 1], [], []>} : vector<16x32xbf16>, vector<32x8xbf16>, vector<16x8xf32> -> vector<16x8xf32>
    %c0_78 = arith.constant 0 : index
    %c0_79 = arith.constant 0 : index
    %174 = vector.load %arg21[%c0_78, %c0_79] : memref<1x8xf32, #tpu.memory_space<vmem>>, vector<1x8xf32>
    %175 = vector.broadcast %174 : vector<1x8xf32> to vector<16x8xf32>
    %176 = arith.addf %173, %175 : vector<16x8xf32>
    %177 = arith.mulf %176, %176 : vector<16x8xf32>
    %178 = arith.mulf %176, %177 : vector<16x8xf32>
    %cst_80 = arith.constant 4.471500e-02 : f32
    %179 = vector.broadcast %cst_80 : f32 to vector<16x8xf32>
    %180 = arith.mulf %179, %178 : vector<16x8xf32>
    %181 = arith.addf %176, %180 : vector<16x8xf32>
    %cst_81 = arith.constant 0.797884583 : f32
    %182 = vector.broadcast %cst_81 : f32 to vector<16x8xf32>
    %183 = arith.mulf %182, %181 : vector<16x8xf32>
    %184 = math.tanh %183 : vector<16x8xf32>
    %cst_82 = arith.constant 1.000000e+00 : f32
    %185 = vector.broadcast %cst_82 : f32 to vector<16x8xf32>
    %186 = arith.addf %185, %184 : vector<16x8xf32>
    %cst_83 = arith.constant 5.000000e-01 : f32
    %187 = vector.broadcast %cst_83 : f32 to vector<16x8xf32>
    %188 = arith.mulf %187, %186 : vector<16x8xf32>
    %189 = arith.mulf %176, %188 : vector<16x8xf32>
    %190 = arith.truncf %189 : vector<16x8xf32> to vector<16x8xbf16>
    %c0_84 = arith.constant 0 : index
    %c0_85 = arith.constant 0 : index
    %191 = vector.load %arg22[%c0_84, %c0_85] : memref<8x32xbf16, #tpu.memory_space<vmem>>, vector<8x32xbf16>
    %cst_86 = arith.constant dense<0.000000e+00> : vector<16x32xf32>
    %192 = tpu.matmul %190, %191, %cst_86 {dimension_numbers = #tpu.dot_dimension_numbers<[1], [0], [0], [1], [0, 0, 1, 1], [], []>} : vector<16x8xbf16>, vector<8x32xbf16>, vector<16x32xf32> -> vector<16x32xf32>
    %c0_87 = arith.constant 0 : index
    %c0_88 = arith.constant 0 : index
    %193 = vector.load %arg23[%c0_87, %c0_88] : memref<1x32xf32, #tpu.memory_space<vmem>>, vector<1x32xf32>
    %194 = vector.broadcast %193 : vector<1x32xf32> to vector<16x32xf32>
    %195 = arith.addf %192, %194 : vector<16x32xf32>
    %196 = arith.addf %195, %170 : vector<16x32xf32>
    %c0_89 = arith.constant 0 : index
    %c0_90 = arith.constant 0 : index
    %197 = vector.load %arg24[%c0_89, %c0_90] : memref<1x32xf32, #tpu.memory_space<vmem>>, vector<1x32xf32>
    %c0_91 = arith.constant 0 : index
    %c0_92 = arith.constant 0 : index
    %198 = vector.load %arg25[%c0_91, %c0_92] : memref<1x32xf32, #tpu.memory_space<vmem>>, vector<1x32xf32>
    %cst_93 = arith.constant dense<0.000000e+00> : vector<16xf32>
    %199 = vector.multi_reduction <add>, %196, %cst_93 [1] : vector<16x32xf32> to vector<16xf32>
    %200 = vector.shape_cast %199 : vector<16xf32> to vector<16x1xf32>
    %cst_94 = arith.constant 3.200000e+01 : f32
    %201 = vector.broadcast %cst_94 : f32 to vector<16x1xf32>
    %202 = arith.divf %200, %201 : vector<16x1xf32>
    %203 = vector.broadcast %202 : vector<16x1xf32> to vector<16x32xf32>
    %204 = arith.subf %196, %203 : vector<16x32xf32>
    %205 = arith.mulf %204, %204 : vector<16x32xf32>
    %cst_95 = arith.constant dense<0.000000e+00> : vector<16xf32>
    %206 = vector.multi_reduction <add>, %205, %cst_95 [1] : vector<16x32xf32> to vector<16xf32>
    %207 = vector.shape_cast %206 : vector<16xf32> to vector<16x1xf32>
    %cst_96 = arith.constant 3.200000e+01 : f32
    %208 = vector.broadcast %cst_96 : f32 to vector<16x1xf32>
    %209 = arith.divf %207, %208 : vector<16x1xf32>
    %210 = vector.broadcast %202 : vector<16x1xf32> to vector<16x32xf32>
    %211 = arith.subf %196, %210 : vector<16x32xf32>
    %cst_97 = arith.constant 9.99999974E-6 : f32
    %212 = vector.broadcast %cst_97 : f32 to vector<16x1xf32>
    %213 = arith.addf %209, %212 : vector<16x1xf32>
    %214 = math.rsqrt %213 : vector<16x1xf32>
    %215 = vector.broadcast %214 : vector<16x1xf32> to vector<16x32xf32>
    %216 = arith.mulf %211, %215 : vector<16x32xf32>
    %217 = vector.broadcast %197 : vector<1x32xf32> to vector<16x32xf32>
    %218 = arith.mulf %216, %217 : vector<16x32xf32>
    %219 = vector.broadcast %198 : vector<1x32xf32> to vector<16x32xf32>
    %220 = arith.addf %218, %219 : vector<16x32xf32>
    %221 = arith.truncf %220 : vector<16x32xf32> to vector<16x32xbf16>
    %c0_98 = arith.constant 0 : index
    %c0_99 = arith.constant 0 : index
    %222 = vector.load %arg26[%c0_98, %c0_99] : memref<32x64xbf16, #tpu.memory_space<vmem>>, vector<32x64xbf16>
    %cst_100 = arith.constant dense<0.000000e+00> : vector<16x64xf32>
    %223 = tpu.matmul %221, %222, %cst_100 {dimension_numbers = #tpu.dot_dimension_numbers<[1], [0], [0], [1], [0, 0, 1, 1], [], []>} : vector<16x32xbf16>, vector<32x64xbf16>, vector<16x64xf32> -> vector<16x64xf32>
    %c0_101 = arith.constant 0 : index
    %c0_102 = arith.constant 0 : index
    %224 = vector.load %arg27[%c0_101, %c0_102] : memref<1x64xf32, #tpu.memory_space<vmem>>, vector<1x64xf32>
    %225 = vector.broadcast %224 : vector<1x64xf32> to vector<16x64xf32>
    %226 = arith.addf %223, %225 : vector<16x64xf32>
    %227 = arith.mulf %226, %226 : vector<16x64xf32>
    %228 = arith.mulf %226, %227 : vector<16x64xf32>
    %cst_103 = arith.constant 4.471500e-02 : f32
    %229 = vector.broadcast %cst_103 : f32 to vector<16x64xf32>
    %230 = arith.mulf %229, %228 : vector<16x64xf32>
    %231 = arith.addf %226, %230 : vector<16x64xf32>
    %cst_104 = arith.constant 0.797884583 : f32
    %232 = vector.broadcast %cst_104 : f32 to vector<16x64xf32>
    %233 = arith.mulf %232, %231 : vector<16x64xf32>
    %234 = math.tanh %233 : vector<16x64xf32>
    %cst_105 = arith.constant 1.000000e+00 : f32
    %235 = vector.broadcast %cst_105 : f32 to vector<16x64xf32>
    %236 = arith.addf %235, %234 : vector<16x64xf32>
    %cst_106 = arith.constant 5.000000e-01 : f32
    %237 = vector.broadcast %cst_106 : f32 to vector<16x64xf32>
    %238 = arith.mulf %237, %236 : vector<16x64xf32>
    %239 = arith.mulf %226, %238 : vector<16x64xf32>
    %240 = arith.truncf %239 : vector<16x64xf32> to vector<16x64xbf16>
    %c0_107 = arith.constant 0 : index
    %c0_108 = arith.constant 0 : index
    %241 = vector.load %arg28[%c0_107, %c0_108] : memref<64x64xbf16, #tpu.memory_space<vmem>>, vector<64x64xbf16>
    %cst_109 = arith.constant dense<0.000000e+00> : vector<16x64xf32>
    %242 = tpu.matmul %240, %241, %cst_109 {dimension_numbers = #tpu.dot_dimension_numbers<[1], [0], [0], [1], [0, 0, 1, 1], [], []>} : vector<16x64xbf16>, vector<64x64xbf16>, vector<16x64xf32> -> vector<16x64xf32>
    %c0_110 = arith.constant 0 : index
    %c0_111 = arith.constant 0 : index
    %243 = vector.load %arg29[%c0_110, %c0_111] : memref<1x64xf32, #tpu.memory_space<vmem>>, vector<1x64xf32>
    %244 = vector.broadcast %243 : vector<1x64xf32> to vector<16x64xf32>
    %245 = arith.addf %242, %244 : vector<16x64xf32>
    %246 = arith.mulf %245, %245 : vector<16x64xf32>
    %247 = arith.mulf %245, %246 : vector<16x64xf32>
    %cst_112 = arith.constant 4.471500e-02 : f32
    %248 = vector.broadcast %cst_112 : f32 to vector<16x64xf32>
    %249 = arith.mulf %248, %247 : vector<16x64xf32>
    %250 = arith.addf %245, %249 : vector<16x64xf32>
    %cst_113 = arith.constant 0.797884583 : f32
    %251 = vector.broadcast %cst_113 : f32 to vector<16x64xf32>
    %252 = arith.mulf %251, %250 : vector<16x64xf32>
    %253 = math.tanh %252 : vector<16x64xf32>
    %cst_114 = arith.constant 1.000000e+00 : f32
    %254 = vector.broadcast %cst_114 : f32 to vector<16x64xf32>
    %255 = arith.addf %254, %253 : vector<16x64xf32>
    %cst_115 = arith.constant 5.000000e-01 : f32
    %256 = vector.broadcast %cst_115 : f32 to vector<16x64xf32>
    %257 = arith.mulf %256, %255 : vector<16x64xf32>
    %258 = arith.mulf %245, %257 : vector<16x64xf32>
    %259 = arith.truncf %258 : vector<16x64xf32> to vector<16x64xbf16>
    %c0_116 = arith.constant 0 : index
    %c0_117 = arith.constant 0 : index
    %260 = vector.load %arg30[%c0_116, %c0_117] : memref<64x32xbf16, #tpu.memory_space<vmem>>, vector<64x32xbf16>
    %cst_118 = arith.constant dense<0.000000e+00> : vector<16x32xf32>
    %261 = tpu.matmul %259, %260, %cst_118 {dimension_numbers = #tpu.dot_dimension_numbers<[1], [0], [0], [1], [0, 0, 1, 1], [], []>} : vector<16x64xbf16>, vector<64x32xbf16>, vector<16x32xf32> -> vector<16x32xf32>
    %c0_119 = arith.constant 0 : index
    %c0_120 = arith.constant 0 : index
    %262 = vector.load %arg31[%c0_119, %c0_120] : memref<1x32xf32, #tpu.memory_space<vmem>>, vector<1x32xf32>
    %263 = vector.broadcast %262 : vector<1x32xf32> to vector<16x32xf32>
    %264 = arith.addf %261, %263 : vector<16x32xf32>
    %265 = arith.mulf %264, %264 : vector<16x32xf32>
    %266 = arith.mulf %264, %265 : vector<16x32xf32>
    %cst_121 = arith.constant 4.471500e-02 : f32
    %267 = vector.broadcast %cst_121 : f32 to vector<16x32xf32>
    %268 = arith.mulf %267, %266 : vector<16x32xf32>
    %269 = arith.addf %264, %268 : vector<16x32xf32>
    %cst_122 = arith.constant 0.797884583 : f32
    %270 = vector.broadcast %cst_122 : f32 to vector<16x32xf32>
    %271 = arith.mulf %270, %269 : vector<16x32xf32>
    %272 = math.tanh %271 : vector<16x32xf32>
    %cst_123 = arith.constant 1.000000e+00 : f32
    %273 = vector.broadcast %cst_123 : f32 to vector<16x32xf32>
    %274 = arith.addf %273, %272 : vector<16x32xf32>
    %cst_124 = arith.constant 5.000000e-01 : f32
    %275 = vector.broadcast %cst_124 : f32 to vector<16x32xf32>
    %276 = arith.mulf %275, %274 : vector<16x32xf32>
    %277 = arith.mulf %264, %276 : vector<16x32xf32>
    %278 = arith.truncf %277 : vector<16x32xf32> to vector<16x32xbf16>
    %c0_125 = arith.constant 0 : index
    %c0_126 = arith.constant 0 : index
    %279 = vector.load %arg32[%c0_125, %c0_126] : memref<32x32xbf16, #tpu.memory_space<vmem>>, vector<32x32xbf16>
    %cst_127 = arith.constant dense<0.000000e+00> : vector<16x32xf32>
    %280 = tpu.matmul %278, %279, %cst_127 {dimension_numbers = #tpu.dot_dimension_numbers<[1], [0], [0], [1], [0, 0, 1, 1], [], []>} : vector<16x32xbf16>, vector<32x32xbf16>, vector<16x32xf32> -> vector<16x32xf32>
    %c0_128 = arith.constant 0 : index
    %c0_129 = arith.constant 0 : index
    %281 = vector.load %arg33[%c0_128, %c0_129] : memref<1x32xf32, #tpu.memory_space<vmem>>, vector<1x32xf32>
    %282 = vector.broadcast %281 : vector<1x32xf32> to vector<16x32xf32>
    %283 = arith.addf %280, %282 : vector<16x32xf32>
    %284 = arith.mulf %283, %283 : vector<16x32xf32>
    %285 = arith.mulf %283, %284 : vector<16x32xf32>
    %cst_130 = arith.constant 4.471500e-02 : f32
    %286 = vector.broadcast %cst_130 : f32 to vector<16x32xf32>
    %287 = arith.mulf %286, %285 : vector<16x32xf32>
    %288 = arith.addf %283, %287 : vector<16x32xf32>
    %cst_131 = arith.constant 0.797884583 : f32
    %289 = vector.broadcast %cst_131 : f32 to vector<16x32xf32>
    %290 = arith.mulf %289, %288 : vector<16x32xf32>
    %291 = math.tanh %290 : vector<16x32xf32>
    %cst_132 = arith.constant 1.000000e+00 : f32
    %292 = vector.broadcast %cst_132 : f32 to vector<16x32xf32>
    %293 = arith.addf %292, %291 : vector<16x32xf32>
    %cst_133 = arith.constant 5.000000e-01 : f32
    %294 = vector.broadcast %cst_133 : f32 to vector<16x32xf32>
    %295 = arith.mulf %294, %293 : vector<16x32xf32>
    %296 = arith.mulf %283, %295 : vector<16x32xf32>
    %297 = arith.truncf %296 : vector<16x32xf32> to vector<16x32xbf16>
    %c0_134 = arith.constant 0 : index
    %c0_135 = arith.constant 0 : index
    %298 = vector.load %arg34[%c0_134, %c0_135] : memref<32x32xbf16, #tpu.memory_space<vmem>>, vector<32x32xbf16>
    %cst_136 = arith.constant dense<0.000000e+00> : vector<16x32xf32>
    %299 = tpu.matmul %297, %298, %cst_136 {dimension_numbers = #tpu.dot_dimension_numbers<[1], [0], [0], [1], [0, 0, 1, 1], [], []>} : vector<16x32xbf16>, vector<32x32xbf16>, vector<16x32xf32> -> vector<16x32xf32>
    %c0_137 = arith.constant 0 : index
    %c0_138 = arith.constant 0 : index
    %300 = vector.load %arg35[%c0_137, %c0_138] : memref<1x32xf32, #tpu.memory_space<vmem>>, vector<1x32xf32>
    %301 = vector.broadcast %300 : vector<1x32xf32> to vector<16x32xf32>
    %302 = arith.addf %299, %301 : vector<16x32xf32>
    %303 = arith.truncf %296 : vector<16x32xf32> to vector<16x32xbf16>
    %c0_139 = arith.constant 0 : index
    %c0_140 = arith.constant 0 : index
    %304 = vector.load %arg36[%c0_139, %c0_140] : memref<32x32xbf16, #tpu.memory_space<vmem>>, vector<32x32xbf16>
    %cst_141 = arith.constant dense<0.000000e+00> : vector<16x32xf32>
    %305 = tpu.matmul %303, %304, %cst_141 {dimension_numbers = #tpu.dot_dimension_numbers<[1], [0], [0], [1], [0, 0, 1, 1], [], []>} : vector<16x32xbf16>, vector<32x32xbf16>, vector<16x32xf32> -> vector<16x32xf32>
    %c0_142 = arith.constant 0 : index
    %c0_143 = arith.constant 0 : index
    %306 = vector.load %arg37[%c0_142, %c0_143] : memref<1x32xf32, #tpu.memory_space<vmem>>, vector<1x32xf32>
    %307 = vector.broadcast %306 : vector<1x32xf32> to vector<16x32xf32>
    %308 = arith.addf %305, %307 : vector<16x32xf32>
    %309 = arith.truncf %296 : vector<16x32xf32> to vector<16x32xbf16>
    %c0_144 = arith.constant 0 : index
    %c0_145 = arith.constant 0 : index
    %310 = vector.load %arg38[%c0_144, %c0_145] : memref<32x32xbf16, #tpu.memory_space<vmem>>, vector<32x32xbf16>
    %cst_146 = arith.constant dense<0.000000e+00> : vector<16x32xf32>
    %311 = tpu.matmul %309, %310, %cst_146 {dimension_numbers = #tpu.dot_dimension_numbers<[1], [0], [0], [1], [0, 0, 1, 1], [], []>} : vector<16x32xbf16>, vector<32x32xbf16>, vector<16x32xf32> -> vector<16x32xf32>
    %c0_147 = arith.constant 0 : index
    %c0_148 = arith.constant 0 : index
    %312 = vector.load %arg39[%c0_147, %c0_148] : memref<1x32xf32, #tpu.memory_space<vmem>>, vector<1x32xf32>
    %313 = vector.broadcast %312 : vector<1x32xf32> to vector<16x32xf32>
    %314 = arith.addf %311, %313 : vector<16x32xf32>
    %315 = vector.extract_strided_slice %302 {offsets = [0, 0], sizes = [8, 32], strides = [1, 1]} : vector<16x32xf32> to vector<8x32xf32>
    %316 = vector.extract_strided_slice %308 {offsets = [0, 0], sizes = [8, 32], strides = [1, 1]} : vector<16x32xf32> to vector<8x32xf32>
    %317 = vector.extract_strided_slice %314 {offsets = [0, 0], sizes = [8, 32], strides = [1, 1]} : vector<16x32xf32> to vector<8x32xf32>
    %318 = arith.truncf %315 : vector<8x32xf32> to vector<8x32xbf16>
    %319 = arith.truncf %316 : vector<8x32xf32> to vector<8x32xbf16>
    %cst_149 = arith.constant dense<0.000000e+00> : vector<8x8xf32>
    %320 = tpu.matmul %318, %319, %cst_149 {dimension_numbers = #tpu.dot_dimension_numbers<[1], [1], [0], [0], [0, 0, 1, 0], [], []>} : vector<8x32xbf16>, vector<8x32xbf16>, vector<8x8xf32> -> vector<8x8xf32>
    %cst_150 = arith.constant dense<0xFF800000> : vector<8xf32>
    %321 = vector.multi_reduction <maximumf>, %320, %cst_150 [1] : vector<8x8xf32> to vector<8xf32>
    %322 = vector.shape_cast %321 : vector<8xf32> to vector<8x1xf32>
    %323 = vector.broadcast %322 : vector<8x1xf32> to vector<8x8xf32>
    %324 = arith.subf %320, %323 : vector<8x8xf32>
    %325 = math.exp %324 : vector<8x8xf32>
    %cst_151 = arith.constant dense<0.000000e+00> : vector<8xf32>
    %326 = vector.multi_reduction <add>, %325, %cst_151 [1] : vector<8x8xf32> to vector<8xf32>
    %327 = vector.shape_cast %326 : vector<8xf32> to vector<8x1xf32>
    %328 = arith.truncf %325 : vector<8x8xf32> to vector<8x8xbf16>
    %329 = arith.truncf %317 : vector<8x32xf32> to vector<8x32xbf16>
    %cst_152 = arith.constant dense<0.000000e+00> : vector<8x32xf32>
    %330 = tpu.matmul %328, %329, %cst_152 {dimension_numbers = #tpu.dot_dimension_numbers<[1], [0], [0], [1], [0, 0, 1, 1], [], []>} : vector<8x8xbf16>, vector<8x32xbf16>, vector<8x32xf32> -> vector<8x32xf32>
    %331 = tpu.reciprocal %327 {approx = true} : vector<8x1xf32> -> vector<8x1xf32>
    %332 = vector.broadcast %331 : vector<8x1xf32> to vector<8x32xf32>
    %333 = arith.mulf %330, %332 : vector<8x32xf32>
    %334 = vector.extract_strided_slice %302 {offsets = [8, 0], sizes = [8, 32], strides = [1, 1]} : vector<16x32xf32> to vector<8x32xf32>
    %335 = vector.extract_strided_slice %308 {offsets = [8, 0], sizes = [8, 32], strides = [1, 1]} : vector<16x32xf32> to vector<8x32xf32>
    %336 = vector.extract_strided_slice %314 {offsets = [8, 0], sizes = [8, 32], strides = [1, 1]} : vector<16x32xf32> to vector<8x32xf32>
    %337 = arith.truncf %334 : vector<8x32xf32> to vector<8x32xbf16>
    %338 = arith.truncf %335 : vector<8x32xf32> to vector<8x32xbf16>
    %cst_153 = arith.constant dense<0.000000e+00> : vector<8x8xf32>
    %339 = tpu.matmul %337, %338, %cst_153 {dimension_numbers = #tpu.dot_dimension_numbers<[1], [1], [0], [0], [0, 0, 1, 0], [], []>} : vector<8x32xbf16>, vector<8x32xbf16>, vector<8x8xf32> -> vector<8x8xf32>
    %cst_154 = arith.constant dense<0xFF800000> : vector<8xf32>
    %340 = vector.multi_reduction <maximumf>, %339, %cst_154 [1] : vector<8x8xf32> to vector<8xf32>
    %341 = vector.shape_cast %340 : vector<8xf32> to vector<8x1xf32>
    %342 = vector.broadcast %341 : vector<8x1xf32> to vector<8x8xf32>
    %343 = arith.subf %339, %342 : vector<8x8xf32>
    %344 = math.exp %343 : vector<8x8xf32>
    %cst_155 = arith.constant dense<0.000000e+00> : vector<8xf32>
    %345 = vector.multi_reduction <add>, %344, %cst_155 [1] : vector<8x8xf32> to vector<8xf32>
    %346 = vector.shape_cast %345 : vector<8xf32> to vector<8x1xf32>
    %347 = arith.truncf %344 : vector<8x8xf32> to vector<8x8xbf16>
    %348 = arith.truncf %336 : vector<8x32xf32> to vector<8x32xbf16>
    %cst_156 = arith.constant dense<0.000000e+00> : vector<8x32xf32>
    %349 = tpu.matmul %347, %348, %cst_156 {dimension_numbers = #tpu.dot_dimension_numbers<[1], [0], [0], [1], [0, 0, 1, 1], [], []>} : vector<8x8xbf16>, vector<8x32xbf16>, vector<8x32xf32> -> vector<8x32xf32>
    %350 = tpu.reciprocal %346 {approx = true} : vector<8x1xf32> -> vector<8x1xf32>
    %351 = vector.broadcast %350 : vector<8x1xf32> to vector<8x32xf32>
    %352 = arith.mulf %349, %351 : vector<8x32xf32>
    %353 = tpu.concatenate %333, %352 in 0 : vector<8x32xf32>, vector<8x32xf32> -> vector<16x32xf32>
    %354 = arith.truncf %353 : vector<16x32xf32> to vector<16x32xbf16>
    %c0_157 = arith.constant 0 : index
    %c0_158 = arith.constant 0 : index
    %355 = vector.load %arg40[%c0_157, %c0_158] : memref<32x32xbf16, #tpu.memory_space<vmem>>, vector<32x32xbf16>
    %cst_159 = arith.constant dense<0.000000e+00> : vector<16x32xf32>
    %356 = tpu.matmul %354, %355, %cst_159 {dimension_numbers = #tpu.dot_dimension_numbers<[1], [0], [0], [1], [0, 0, 1, 1], [], []>} : vector<16x32xbf16>, vector<32x32xbf16>, vector<16x32xf32> -> vector<16x32xf32>
    %c0_160 = arith.constant 0 : index
    %c0_161 = arith.constant 0 : index
    %357 = vector.load %arg41[%c0_160, %c0_161] : memref<1x32xf32, #tpu.memory_space<vmem>>, vector<1x32xf32>
    %358 = vector.broadcast %357 : vector<1x32xf32> to vector<16x32xf32>
    %359 = arith.addf %356, %358 : vector<16x32xf32>
    %360 = arith.addf %359, %220 : vector<16x32xf32>
    %c0_162 = arith.constant 0 : index
    %c0_163 = arith.constant 0 : index
    %361 = vector.load %arg42[%c0_162, %c0_163] : memref<1x32xf32, #tpu.memory_space<vmem>>, vector<1x32xf32>
    %c0_164 = arith.constant 0 : index
    %c0_165 = arith.constant 0 : index
    %362 = vector.load %arg43[%c0_164, %c0_165] : memref<1x32xf32, #tpu.memory_space<vmem>>, vector<1x32xf32>
    %cst_166 = arith.constant dense<0.000000e+00> : vector<16xf32>
    %363 = vector.multi_reduction <add>, %360, %cst_166 [1] : vector<16x32xf32> to vector<16xf32>
    %364 = vector.shape_cast %363 : vector<16xf32> to vector<16x1xf32>
    %cst_167 = arith.constant 3.200000e+01 : f32
    %365 = vector.broadcast %cst_167 : f32 to vector<16x1xf32>
    %366 = arith.divf %364, %365 : vector<16x1xf32>
    %367 = vector.broadcast %366 : vector<16x1xf32> to vector<16x32xf32>
    %368 = arith.subf %360, %367 : vector<16x32xf32>
    %369 = arith.mulf %368, %368 : vector<16x32xf32>
    %cst_168 = arith.constant dense<0.000000e+00> : vector<16xf32>
    %370 = vector.multi_reduction <add>, %369, %cst_168 [1] : vector<16x32xf32> to vector<16xf32>
    %371 = vector.shape_cast %370 : vector<16xf32> to vector<16x1xf32>
    %cst_169 = arith.constant 3.200000e+01 : f32
    %372 = vector.broadcast %cst_169 : f32 to vector<16x1xf32>
    %373 = arith.divf %371, %372 : vector<16x1xf32>
    %374 = vector.broadcast %366 : vector<16x1xf32> to vector<16x32xf32>
    %375 = arith.subf %360, %374 : vector<16x32xf32>
    %cst_170 = arith.constant 9.99999974E-6 : f32
    %376 = vector.broadcast %cst_170 : f32 to vector<16x1xf32>
    %377 = arith.addf %373, %376 : vector<16x1xf32>
    %378 = math.rsqrt %377 : vector<16x1xf32>
    %379 = vector.broadcast %378 : vector<16x1xf32> to vector<16x32xf32>
    %380 = arith.mulf %375, %379 : vector<16x32xf32>
    %381 = vector.broadcast %361 : vector<1x32xf32> to vector<16x32xf32>
    %382 = arith.mulf %380, %381 : vector<16x32xf32>
    %383 = vector.broadcast %362 : vector<1x32xf32> to vector<16x32xf32>
    %384 = arith.addf %382, %383 : vector<16x32xf32>
    %385 = arith.truncf %384 : vector<16x32xf32> to vector<16x32xbf16>
    %c0_171 = arith.constant 0 : index
    %c0_172 = arith.constant 0 : index
    %386 = vector.load %arg44[%c0_171, %c0_172] : memref<32x8xbf16, #tpu.memory_space<vmem>>, vector<32x8xbf16>
    %cst_173 = arith.constant dense<0.000000e+00> : vector<16x8xf32>
    %387 = tpu.matmul %385, %386, %cst_173 {dimension_numbers = #tpu.dot_dimension_numbers<[1], [0], [0], [1], [0, 0, 1, 1], [], []>} : vector<16x32xbf16>, vector<32x8xbf16>, vector<16x8xf32> -> vector<16x8xf32>
    %c0_174 = arith.constant 0 : index
    %c0_175 = arith.constant 0 : index
    %388 = vector.load %arg45[%c0_174, %c0_175] : memref<1x8xf32, #tpu.memory_space<vmem>>, vector<1x8xf32>
    %389 = vector.broadcast %388 : vector<1x8xf32> to vector<16x8xf32>
    %390 = arith.addf %387, %389 : vector<16x8xf32>
    %391 = arith.mulf %390, %390 : vector<16x8xf32>
    %392 = arith.mulf %390, %391 : vector<16x8xf32>
    %cst_176 = arith.constant 4.471500e-02 : f32
    %393 = vector.broadcast %cst_176 : f32 to vector<16x8xf32>
    %394 = arith.mulf %393, %392 : vector<16x8xf32>
    %395 = arith.addf %390, %394 : vector<16x8xf32>
    %cst_177 = arith.constant 0.797884583 : f32
    %396 = vector.broadcast %cst_177 : f32 to vector<16x8xf32>
    %397 = arith.mulf %396, %395 : vector<16x8xf32>
    %398 = math.tanh %397 : vector<16x8xf32>
    %cst_178 = arith.constant 1.000000e+00 : f32
    %399 = vector.broadcast %cst_178 : f32 to vector<16x8xf32>
    %400 = arith.addf %399, %398 : vector<16x8xf32>
    %cst_179 = arith.constant 5.000000e-01 : f32
    %401 = vector.broadcast %cst_179 : f32 to vector<16x8xf32>
    %402 = arith.mulf %401, %400 : vector<16x8xf32>
    %403 = arith.mulf %390, %402 : vector<16x8xf32>
    %404 = arith.truncf %403 : vector<16x8xf32> to vector<16x8xbf16>
    %c0_180 = arith.constant 0 : index
    %c0_181 = arith.constant 0 : index
    %405 = vector.load %arg46[%c0_180, %c0_181] : memref<8x32xbf16, #tpu.memory_space<vmem>>, vector<8x32xbf16>
    %cst_182 = arith.constant dense<0.000000e+00> : vector<16x32xf32>
    %406 = tpu.matmul %404, %405, %cst_182 {dimension_numbers = #tpu.dot_dimension_numbers<[1], [0], [0], [1], [0, 0, 1, 1], [], []>} : vector<16x8xbf16>, vector<8x32xbf16>, vector<16x32xf32> -> vector<16x32xf32>
    %c0_183 = arith.constant 0 : index
    %c0_184 = arith.constant 0 : index
    %407 = vector.load %arg47[%c0_183, %c0_184] : memref<1x32xf32, #tpu.memory_space<vmem>>, vector<1x32xf32>
    %408 = vector.broadcast %407 : vector<1x32xf32> to vector<16x32xf32>
    %409 = arith.addf %406, %408 : vector<16x32xf32>
    %410 = arith.addf %409, %384 : vector<16x32xf32>
    %c0_185 = arith.constant 0 : index
    %c0_186 = arith.constant 0 : index
    %411 = vector.load %arg48[%c0_185, %c0_186] : memref<1x32xf32, #tpu.memory_space<vmem>>, vector<1x32xf32>
    %c0_187 = arith.constant 0 : index
    %c0_188 = arith.constant 0 : index
    %412 = vector.load %arg49[%c0_187, %c0_188] : memref<1x32xf32, #tpu.memory_space<vmem>>, vector<1x32xf32>
    %cst_189 = arith.constant dense<0.000000e+00> : vector<16xf32>
    %413 = vector.multi_reduction <add>, %410, %cst_189 [1] : vector<16x32xf32> to vector<16xf32>
    %414 = vector.shape_cast %413 : vector<16xf32> to vector<16x1xf32>
    %cst_190 = arith.constant 3.200000e+01 : f32
    %415 = vector.broadcast %cst_190 : f32 to vector<16x1xf32>
    %416 = arith.divf %414, %415 : vector<16x1xf32>
    %417 = vector.broadcast %416 : vector<16x1xf32> to vector<16x32xf32>
    %418 = arith.subf %410, %417 : vector<16x32xf32>
    %419 = arith.mulf %418, %418 : vector<16x32xf32>
    %cst_191 = arith.constant dense<0.000000e+00> : vector<16xf32>
    %420 = vector.multi_reduction <add>, %419, %cst_191 [1] : vector<16x32xf32> to vector<16xf32>
    %421 = vector.shape_cast %420 : vector<16xf32> to vector<16x1xf32>
    %cst_192 = arith.constant 3.200000e+01 : f32
    %422 = vector.broadcast %cst_192 : f32 to vector<16x1xf32>
    %423 = arith.divf %421, %422 : vector<16x1xf32>
    %424 = vector.broadcast %416 : vector<16x1xf32> to vector<16x32xf32>
    %425 = arith.subf %410, %424 : vector<16x32xf32>
    %cst_193 = arith.constant 9.99999974E-6 : f32
    %426 = vector.broadcast %cst_193 : f32 to vector<16x1xf32>
    %427 = arith.addf %423, %426 : vector<16x1xf32>
    %428 = math.rsqrt %427 : vector<16x1xf32>
    %429 = vector.broadcast %428 : vector<16x1xf32> to vector<16x32xf32>
    %430 = arith.mulf %425, %429 : vector<16x32xf32>
    %431 = vector.broadcast %411 : vector<1x32xf32> to vector<16x32xf32>
    %432 = arith.mulf %430, %431 : vector<16x32xf32>
    %433 = vector.broadcast %412 : vector<1x32xf32> to vector<16x32xf32>
    %434 = arith.addf %432, %433 : vector<16x32xf32>
    %435 = arith.truncf %434 : vector<16x32xf32> to vector<16x32xbf16>
    %c0_194 = arith.constant 0 : index
    %c0_195 = arith.constant 0 : index
    %436 = vector.load %arg50[%c0_194, %c0_195] : memref<32x64xbf16, #tpu.memory_space<vmem>>, vector<32x64xbf16>
    %cst_196 = arith.constant dense<0.000000e+00> : vector<16x64xf32>
    %437 = tpu.matmul %435, %436, %cst_196 {dimension_numbers = #tpu.dot_dimension_numbers<[1], [0], [0], [1], [0, 0, 1, 1], [], []>} : vector<16x32xbf16>, vector<32x64xbf16>, vector<16x64xf32> -> vector<16x64xf32>
    %c0_197 = arith.constant 0 : index
    %c0_198 = arith.constant 0 : index
    %438 = vector.load %arg51[%c0_197, %c0_198] : memref<1x64xf32, #tpu.memory_space<vmem>>, vector<1x64xf32>
    %439 = vector.broadcast %438 : vector<1x64xf32> to vector<16x64xf32>
    %440 = arith.addf %437, %439 : vector<16x64xf32>
    %441 = arith.mulf %440, %440 : vector<16x64xf32>
    %442 = arith.mulf %440, %441 : vector<16x64xf32>
    %cst_199 = arith.constant 4.471500e-02 : f32
    %443 = vector.broadcast %cst_199 : f32 to vector<16x64xf32>
    %444 = arith.mulf %443, %442 : vector<16x64xf32>
    %445 = arith.addf %440, %444 : vector<16x64xf32>
    %cst_200 = arith.constant 0.797884583 : f32
    %446 = vector.broadcast %cst_200 : f32 to vector<16x64xf32>
    %447 = arith.mulf %446, %445 : vector<16x64xf32>
    %448 = math.tanh %447 : vector<16x64xf32>
    %cst_201 = arith.constant 1.000000e+00 : f32
    %449 = vector.broadcast %cst_201 : f32 to vector<16x64xf32>
    %450 = arith.addf %449, %448 : vector<16x64xf32>
    %cst_202 = arith.constant 5.000000e-01 : f32
    %451 = vector.broadcast %cst_202 : f32 to vector<16x64xf32>
    %452 = arith.mulf %451, %450 : vector<16x64xf32>
    %453 = arith.mulf %440, %452 : vector<16x64xf32>
    %454 = arith.truncf %453 : vector<16x64xf32> to vector<16x64xbf16>
    %c0_203 = arith.constant 0 : index
    %c0_204 = arith.constant 0 : index
    %455 = vector.load %arg52[%c0_203, %c0_204] : memref<64x64xbf16, #tpu.memory_space<vmem>>, vector<64x64xbf16>
    %cst_205 = arith.constant dense<0.000000e+00> : vector<16x64xf32>
    %456 = tpu.matmul %454, %455, %cst_205 {dimension_numbers = #tpu.dot_dimension_numbers<[1], [0], [0], [1], [0, 0, 1, 1], [], []>} : vector<16x64xbf16>, vector<64x64xbf16>, vector<16x64xf32> -> vector<16x64xf32>
    %c0_206 = arith.constant 0 : index
    %c0_207 = arith.constant 0 : index
    %457 = vector.load %arg53[%c0_206, %c0_207] : memref<1x64xf32, #tpu.memory_space<vmem>>, vector<1x64xf32>
    %458 = vector.broadcast %457 : vector<1x64xf32> to vector<16x64xf32>
    %459 = arith.addf %456, %458 : vector<16x64xf32>
    %460 = arith.mulf %459, %459 : vector<16x64xf32>
    %461 = arith.mulf %459, %460 : vector<16x64xf32>
    %cst_208 = arith.constant 4.471500e-02 : f32
    %462 = vector.broadcast %cst_208 : f32 to vector<16x64xf32>
    %463 = arith.mulf %462, %461 : vector<16x64xf32>
    %464 = arith.addf %459, %463 : vector<16x64xf32>
    %cst_209 = arith.constant 0.797884583 : f32
    %465 = vector.broadcast %cst_209 : f32 to vector<16x64xf32>
    %466 = arith.mulf %465, %464 : vector<16x64xf32>
    %467 = math.tanh %466 : vector<16x64xf32>
    %cst_210 = arith.constant 1.000000e+00 : f32
    %468 = vector.broadcast %cst_210 : f32 to vector<16x64xf32>
    %469 = arith.addf %468, %467 : vector<16x64xf32>
    %cst_211 = arith.constant 5.000000e-01 : f32
    %470 = vector.broadcast %cst_211 : f32 to vector<16x64xf32>
    %471 = arith.mulf %470, %469 : vector<16x64xf32>
    %472 = arith.mulf %459, %471 : vector<16x64xf32>
    %473 = arith.truncf %472 : vector<16x64xf32> to vector<16x64xbf16>
    %c0_212 = arith.constant 0 : index
    %c0_213 = arith.constant 0 : index
    %474 = vector.load %arg54[%c0_212, %c0_213] : memref<64x32xbf16, #tpu.memory_space<vmem>>, vector<64x32xbf16>
    %cst_214 = arith.constant dense<0.000000e+00> : vector<16x32xf32>
    %475 = tpu.matmul %473, %474, %cst_214 {dimension_numbers = #tpu.dot_dimension_numbers<[1], [0], [0], [1], [0, 0, 1, 1], [], []>} : vector<16x64xbf16>, vector<64x32xbf16>, vector<16x32xf32> -> vector<16x32xf32>
    %c0_215 = arith.constant 0 : index
    %c0_216 = arith.constant 0 : index
    %476 = vector.load %arg55[%c0_215, %c0_216] : memref<1x32xf32, #tpu.memory_space<vmem>>, vector<1x32xf32>
    %477 = vector.broadcast %476 : vector<1x32xf32> to vector<16x32xf32>
    %478 = arith.addf %475, %477 : vector<16x32xf32>
    %479 = arith.mulf %478, %478 : vector<16x32xf32>
    %480 = arith.mulf %478, %479 : vector<16x32xf32>
    %cst_217 = arith.constant 4.471500e-02 : f32
    %481 = vector.broadcast %cst_217 : f32 to vector<16x32xf32>
    %482 = arith.mulf %481, %480 : vector<16x32xf32>
    %483 = arith.addf %478, %482 : vector<16x32xf32>
    %cst_218 = arith.constant 0.797884583 : f32
    %484 = vector.broadcast %cst_218 : f32 to vector<16x32xf32>
    %485 = arith.mulf %484, %483 : vector<16x32xf32>
    %486 = math.tanh %485 : vector<16x32xf32>
    %cst_219 = arith.constant 1.000000e+00 : f32
    %487 = vector.broadcast %cst_219 : f32 to vector<16x32xf32>
    %488 = arith.addf %487, %486 : vector<16x32xf32>
    %cst_220 = arith.constant 5.000000e-01 : f32
    %489 = vector.broadcast %cst_220 : f32 to vector<16x32xf32>
    %490 = arith.mulf %489, %488 : vector<16x32xf32>
    %491 = arith.mulf %478, %490 : vector<16x32xf32>
    %492 = arith.truncf %491 : vector<16x32xf32> to vector<16x32xbf16>
    %c0_221 = arith.constant 0 : index
    %c0_222 = arith.constant 0 : index
    %493 = vector.load %arg56[%c0_221, %c0_222] : memref<32x32xbf16, #tpu.memory_space<vmem>>, vector<32x32xbf16>
    %cst_223 = arith.constant dense<0.000000e+00> : vector<16x32xf32>
    %494 = tpu.matmul %492, %493, %cst_223 {dimension_numbers = #tpu.dot_dimension_numbers<[1], [0], [0], [1], [0, 0, 1, 1], [], []>} : vector<16x32xbf16>, vector<32x32xbf16>, vector<16x32xf32> -> vector<16x32xf32>
    %c0_224 = arith.constant 0 : index
    %c0_225 = arith.constant 0 : index
    %495 = vector.load %arg57[%c0_224, %c0_225] : memref<1x32xf32, #tpu.memory_space<vmem>>, vector<1x32xf32>
    %496 = vector.broadcast %495 : vector<1x32xf32> to vector<16x32xf32>
    %497 = arith.addf %494, %496 : vector<16x32xf32>
    %498 = arith.mulf %497, %497 : vector<16x32xf32>
    %499 = arith.mulf %497, %498 : vector<16x32xf32>
    %cst_226 = arith.constant 4.471500e-02 : f32
    %500 = vector.broadcast %cst_226 : f32 to vector<16x32xf32>
    %501 = arith.mulf %500, %499 : vector<16x32xf32>
    %502 = arith.addf %497, %501 : vector<16x32xf32>
    %cst_227 = arith.constant 0.797884583 : f32
    %503 = vector.broadcast %cst_227 : f32 to vector<16x32xf32>
    %504 = arith.mulf %503, %502 : vector<16x32xf32>
    %505 = math.tanh %504 : vector<16x32xf32>
    %cst_228 = arith.constant 1.000000e+00 : f32
    %506 = vector.broadcast %cst_228 : f32 to vector<16x32xf32>
    %507 = arith.addf %506, %505 : vector<16x32xf32>
    %cst_229 = arith.constant 5.000000e-01 : f32
    %508 = vector.broadcast %cst_229 : f32 to vector<16x32xf32>
    %509 = arith.mulf %508, %507 : vector<16x32xf32>
    %510 = arith.mulf %497, %509 : vector<16x32xf32>
    %511 = arith.truncf %510 : vector<16x32xf32> to vector<16x32xbf16>
    %c0_230 = arith.constant 0 : index
    %c0_231 = arith.constant 0 : index
    %512 = vector.load %arg58[%c0_230, %c0_231] : memref<32x32xbf16, #tpu.memory_space<vmem>>, vector<32x32xbf16>
    %cst_232 = arith.constant dense<0.000000e+00> : vector<16x32xf32>
    %513 = tpu.matmul %511, %512, %cst_232 {dimension_numbers = #tpu.dot_dimension_numbers<[1], [0], [0], [1], [0, 0, 1, 1], [], []>} : vector<16x32xbf16>, vector<32x32xbf16>, vector<16x32xf32> -> vector<16x32xf32>
    %c0_233 = arith.constant 0 : index
    %c0_234 = arith.constant 0 : index
    %514 = vector.load %arg59[%c0_233, %c0_234] : memref<1x32xf32, #tpu.memory_space<vmem>>, vector<1x32xf32>
    %515 = vector.broadcast %514 : vector<1x32xf32> to vector<16x32xf32>
    %516 = arith.addf %513, %515 : vector<16x32xf32>
    %517 = arith.truncf %510 : vector<16x32xf32> to vector<16x32xbf16>
    %c0_235 = arith.constant 0 : index
    %c0_236 = arith.constant 0 : index
    %518 = vector.load %arg60[%c0_235, %c0_236] : memref<32x32xbf16, #tpu.memory_space<vmem>>, vector<32x32xbf16>
    %cst_237 = arith.constant dense<0.000000e+00> : vector<16x32xf32>
    %519 = tpu.matmul %517, %518, %cst_237 {dimension_numbers = #tpu.dot_dimension_numbers<[1], [0], [0], [1], [0, 0, 1, 1], [], []>} : vector<16x32xbf16>, vector<32x32xbf16>, vector<16x32xf32> -> vector<16x32xf32>
    %c0_238 = arith.constant 0 : index
    %c0_239 = arith.constant 0 : index
    %520 = vector.load %arg61[%c0_238, %c0_239] : memref<1x32xf32, #tpu.memory_space<vmem>>, vector<1x32xf32>
    %521 = vector.broadcast %520 : vector<1x32xf32> to vector<16x32xf32>
    %522 = arith.addf %519, %521 : vector<16x32xf32>
    %523 = arith.truncf %510 : vector<16x32xf32> to vector<16x32xbf16>
    %c0_240 = arith.constant 0 : index
    %c0_241 = arith.constant 0 : index
    %524 = vector.load %arg62[%c0_240, %c0_241] : memref<32x32xbf16, #tpu.memory_space<vmem>>, vector<32x32xbf16>
    %cst_242 = arith.constant dense<0.000000e+00> : vector<16x32xf32>
    %525 = tpu.matmul %523, %524, %cst_242 {dimension_numbers = #tpu.dot_dimension_numbers<[1], [0], [0], [1], [0, 0, 1, 1], [], []>} : vector<16x32xbf16>, vector<32x32xbf16>, vector<16x32xf32> -> vector<16x32xf32>
    %c0_243 = arith.constant 0 : index
    %c0_244 = arith.constant 0 : index
    %526 = vector.load %arg63[%c0_243, %c0_244] : memref<1x32xf32, #tpu.memory_space<vmem>>, vector<1x32xf32>
    %527 = vector.broadcast %526 : vector<1x32xf32> to vector<16x32xf32>
    %528 = arith.addf %525, %527 : vector<16x32xf32>
    %529 = vector.extract_strided_slice %516 {offsets = [0, 0], sizes = [8, 32], strides = [1, 1]} : vector<16x32xf32> to vector<8x32xf32>
    %530 = vector.extract_strided_slice %522 {offsets = [0, 0], sizes = [8, 32], strides = [1, 1]} : vector<16x32xf32> to vector<8x32xf32>
    %531 = vector.extract_strided_slice %528 {offsets = [0, 0], sizes = [8, 32], strides = [1, 1]} : vector<16x32xf32> to vector<8x32xf32>
    %532 = arith.truncf %529 : vector<8x32xf32> to vector<8x32xbf16>
    %533 = arith.truncf %530 : vector<8x32xf32> to vector<8x32xbf16>
    %cst_245 = arith.constant dense<0.000000e+00> : vector<8x8xf32>
    %534 = tpu.matmul %532, %533, %cst_245 {dimension_numbers = #tpu.dot_dimension_numbers<[1], [1], [0], [0], [0, 0, 1, 0], [], []>} : vector<8x32xbf16>, vector<8x32xbf16>, vector<8x8xf32> -> vector<8x8xf32>
    %cst_246 = arith.constant dense<0xFF800000> : vector<8xf32>
    %535 = vector.multi_reduction <maximumf>, %534, %cst_246 [1] : vector<8x8xf32> to vector<8xf32>
    %536 = vector.shape_cast %535 : vector<8xf32> to vector<8x1xf32>
    %537 = vector.broadcast %536 : vector<8x1xf32> to vector<8x8xf32>
    %538 = arith.subf %534, %537 : vector<8x8xf32>
    %539 = math.exp %538 : vector<8x8xf32>
    %cst_247 = arith.constant dense<0.000000e+00> : vector<8xf32>
    %540 = vector.multi_reduction <add>, %539, %cst_247 [1] : vector<8x8xf32> to vector<8xf32>
    %541 = vector.shape_cast %540 : vector<8xf32> to vector<8x1xf32>
    %542 = arith.truncf %539 : vector<8x8xf32> to vector<8x8xbf16>
    %543 = arith.truncf %531 : vector<8x32xf32> to vector<8x32xbf16>
    %cst_248 = arith.constant dense<0.000000e+00> : vector<8x32xf32>
    %544 = tpu.matmul %542, %543, %cst_248 {dimension_numbers = #tpu.dot_dimension_numbers<[1], [0], [0], [1], [0, 0, 1, 1], [], []>} : vector<8x8xbf16>, vector<8x32xbf16>, vector<8x32xf32> -> vector<8x32xf32>
    %545 = tpu.reciprocal %541 {approx = true} : vector<8x1xf32> -> vector<8x1xf32>
    %546 = vector.broadcast %545 : vector<8x1xf32> to vector<8x32xf32>
    %547 = arith.mulf %544, %546 : vector<8x32xf32>
    %548 = vector.extract_strided_slice %516 {offsets = [8, 0], sizes = [8, 32], strides = [1, 1]} : vector<16x32xf32> to vector<8x32xf32>
    %549 = vector.extract_strided_slice %522 {offsets = [8, 0], sizes = [8, 32], strides = [1, 1]} : vector<16x32xf32> to vector<8x32xf32>
    %550 = vector.extract_strided_slice %528 {offsets = [8, 0], sizes = [8, 32], strides = [1, 1]} : vector<16x32xf32> to vector<8x32xf32>
    %551 = arith.truncf %548 : vector<8x32xf32> to vector<8x32xbf16>
    %552 = arith.truncf %549 : vector<8x32xf32> to vector<8x32xbf16>
    %cst_249 = arith.constant dense<0.000000e+00> : vector<8x8xf32>
    %553 = tpu.matmul %551, %552, %cst_249 {dimension_numbers = #tpu.dot_dimension_numbers<[1], [1], [0], [0], [0, 0, 1, 0], [], []>} : vector<8x32xbf16>, vector<8x32xbf16>, vector<8x8xf32> -> vector<8x8xf32>
    %cst_250 = arith.constant dense<0xFF800000> : vector<8xf32>
    %554 = vector.multi_reduction <maximumf>, %553, %cst_250 [1] : vector<8x8xf32> to vector<8xf32>
    %555 = vector.shape_cast %554 : vector<8xf32> to vector<8x1xf32>
    %556 = vector.broadcast %555 : vector<8x1xf32> to vector<8x8xf32>
    %557 = arith.subf %553, %556 : vector<8x8xf32>
    %558 = math.exp %557 : vector<8x8xf32>
    %cst_251 = arith.constant dense<0.000000e+00> : vector<8xf32>
    %559 = vector.multi_reduction <add>, %558, %cst_251 [1] : vector<8x8xf32> to vector<8xf32>
    %560 = vector.shape_cast %559 : vector<8xf32> to vector<8x1xf32>
    %561 = arith.truncf %558 : vector<8x8xf32> to vector<8x8xbf16>
    %562 = arith.truncf %550 : vector<8x32xf32> to vector<8x32xbf16>
    %cst_252 = arith.constant dense<0.000000e+00> : vector<8x32xf32>
    %563 = tpu.matmul %561, %562, %cst_252 {dimension_numbers = #tpu.dot_dimension_numbers<[1], [0], [0], [1], [0, 0, 1, 1], [], []>} : vector<8x8xbf16>, vector<8x32xbf16>, vector<8x32xf32> -> vector<8x32xf32>
    %564 = tpu.reciprocal %560 {approx = true} : vector<8x1xf32> -> vector<8x1xf32>
    %565 = vector.broadcast %564 : vector<8x1xf32> to vector<8x32xf32>
    %566 = arith.mulf %563, %565 : vector<8x32xf32>
    %567 = tpu.concatenate %547, %566 in 0 : vector<8x32xf32>, vector<8x32xf32> -> vector<16x32xf32>
    %568 = arith.truncf %567 : vector<16x32xf32> to vector<16x32xbf16>
    %c0_253 = arith.constant 0 : index
    %c0_254 = arith.constant 0 : index
    %569 = vector.load %arg64[%c0_253, %c0_254] : memref<32x32xbf16, #tpu.memory_space<vmem>>, vector<32x32xbf16>
    %cst_255 = arith.constant dense<0.000000e+00> : vector<16x32xf32>
    %570 = tpu.matmul %568, %569, %cst_255 {dimension_numbers = #tpu.dot_dimension_numbers<[1], [0], [0], [1], [0, 0, 1, 1], [], []>} : vector<16x32xbf16>, vector<32x32xbf16>, vector<16x32xf32> -> vector<16x32xf32>
    %c0_256 = arith.constant 0 : index
    %c0_257 = arith.constant 0 : index
    %571 = vector.load %arg65[%c0_256, %c0_257] : memref<1x32xf32, #tpu.memory_space<vmem>>, vector<1x32xf32>
    %572 = vector.broadcast %571 : vector<1x32xf32> to vector<16x32xf32>
    %573 = arith.addf %570, %572 : vector<16x32xf32>
    %574 = arith.addf %573, %434 : vector<16x32xf32>
    %c0_258 = arith.constant 0 : index
    %c0_259 = arith.constant 0 : index
    %575 = vector.load %arg66[%c0_258, %c0_259] : memref<1x32xf32, #tpu.memory_space<vmem>>, vector<1x32xf32>
    %c0_260 = arith.constant 0 : index
    %c0_261 = arith.constant 0 : index
    %576 = vector.load %arg67[%c0_260, %c0_261] : memref<1x32xf32, #tpu.memory_space<vmem>>, vector<1x32xf32>
    %cst_262 = arith.constant dense<0.000000e+00> : vector<16xf32>
    %577 = vector.multi_reduction <add>, %574, %cst_262 [1] : vector<16x32xf32> to vector<16xf32>
    %578 = vector.shape_cast %577 : vector<16xf32> to vector<16x1xf32>
    %cst_263 = arith.constant 3.200000e+01 : f32
    %579 = vector.broadcast %cst_263 : f32 to vector<16x1xf32>
    %580 = arith.divf %578, %579 : vector<16x1xf32>
    %581 = vector.broadcast %580 : vector<16x1xf32> to vector<16x32xf32>
    %582 = arith.subf %574, %581 : vector<16x32xf32>
    %583 = arith.mulf %582, %582 : vector<16x32xf32>
    %cst_264 = arith.constant dense<0.000000e+00> : vector<16xf32>
    %584 = vector.multi_reduction <add>, %583, %cst_264 [1] : vector<16x32xf32> to vector<16xf32>
    %585 = vector.shape_cast %584 : vector<16xf32> to vector<16x1xf32>
    %cst_265 = arith.constant 3.200000e+01 : f32
    %586 = vector.broadcast %cst_265 : f32 to vector<16x1xf32>
    %587 = arith.divf %585, %586 : vector<16x1xf32>
    %588 = vector.broadcast %580 : vector<16x1xf32> to vector<16x32xf32>
    %589 = arith.subf %574, %588 : vector<16x32xf32>
    %cst_266 = arith.constant 9.99999974E-6 : f32
    %590 = vector.broadcast %cst_266 : f32 to vector<16x1xf32>
    %591 = arith.addf %587, %590 : vector<16x1xf32>
    %592 = math.rsqrt %591 : vector<16x1xf32>
    %593 = vector.broadcast %592 : vector<16x1xf32> to vector<16x32xf32>
    %594 = arith.mulf %589, %593 : vector<16x32xf32>
    %595 = vector.broadcast %575 : vector<1x32xf32> to vector<16x32xf32>
    %596 = arith.mulf %594, %595 : vector<16x32xf32>
    %597 = vector.broadcast %576 : vector<1x32xf32> to vector<16x32xf32>
    %598 = arith.addf %596, %597 : vector<16x32xf32>
    %599 = arith.truncf %598 : vector<16x32xf32> to vector<16x32xbf16>
    %c0_267 = arith.constant 0 : index
    %c0_268 = arith.constant 0 : index
    %600 = vector.load %arg68[%c0_267, %c0_268] : memref<32x8xbf16, #tpu.memory_space<vmem>>, vector<32x8xbf16>
    %cst_269 = arith.constant dense<0.000000e+00> : vector<16x8xf32>
    %601 = tpu.matmul %599, %600, %cst_269 {dimension_numbers = #tpu.dot_dimension_numbers<[1], [0], [0], [1], [0, 0, 1, 1], [], []>} : vector<16x32xbf16>, vector<32x8xbf16>, vector<16x8xf32> -> vector<16x8xf32>
    %c0_270 = arith.constant 0 : index
    %c0_271 = arith.constant 0 : index
    %602 = vector.load %arg69[%c0_270, %c0_271] : memref<1x8xf32, #tpu.memory_space<vmem>>, vector<1x8xf32>
    %603 = vector.broadcast %602 : vector<1x8xf32> to vector<16x8xf32>
    %604 = arith.addf %601, %603 : vector<16x8xf32>
    %605 = arith.mulf %604, %604 : vector<16x8xf32>
    %606 = arith.mulf %604, %605 : vector<16x8xf32>
    %cst_272 = arith.constant 4.471500e-02 : f32
    %607 = vector.broadcast %cst_272 : f32 to vector<16x8xf32>
    %608 = arith.mulf %607, %606 : vector<16x8xf32>
    %609 = arith.addf %604, %608 : vector<16x8xf32>
    %cst_273 = arith.constant 0.797884583 : f32
    %610 = vector.broadcast %cst_273 : f32 to vector<16x8xf32>
    %611 = arith.mulf %610, %609 : vector<16x8xf32>
    %612 = math.tanh %611 : vector<16x8xf32>
    %cst_274 = arith.constant 1.000000e+00 : f32
    %613 = vector.broadcast %cst_274 : f32 to vector<16x8xf32>
    %614 = arith.addf %613, %612 : vector<16x8xf32>
    %cst_275 = arith.constant 5.000000e-01 : f32
    %615 = vector.broadcast %cst_275 : f32 to vector<16x8xf32>
    %616 = arith.mulf %615, %614 : vector<16x8xf32>
    %617 = arith.mulf %604, %616 : vector<16x8xf32>
    %618 = arith.truncf %617 : vector<16x8xf32> to vector<16x8xbf16>
    %c0_276 = arith.constant 0 : index
    %c0_277 = arith.constant 0 : index
    %619 = vector.load %arg70[%c0_276, %c0_277] : memref<8x32xbf16, #tpu.memory_space<vmem>>, vector<8x32xbf16>
    %cst_278 = arith.constant dense<0.000000e+00> : vector<16x32xf32>
    %620 = tpu.matmul %618, %619, %cst_278 {dimension_numbers = #tpu.dot_dimension_numbers<[1], [0], [0], [1], [0, 0, 1, 1], [], []>} : vector<16x8xbf16>, vector<8x32xbf16>, vector<16x32xf32> -> vector<16x32xf32>
    %c0_279 = arith.constant 0 : index
    %c0_280 = arith.constant 0 : index
    %621 = vector.load %arg71[%c0_279, %c0_280] : memref<1x32xf32, #tpu.memory_space<vmem>>, vector<1x32xf32>
    %622 = vector.broadcast %621 : vector<1x32xf32> to vector<16x32xf32>
    %623 = arith.addf %620, %622 : vector<16x32xf32>
    %624 = arith.addf %623, %598 : vector<16x32xf32>
    %c0_281 = arith.constant 0 : index
    %c0_282 = arith.constant 0 : index
    %625 = vector.load %arg72[%c0_281, %c0_282] : memref<1x32xf32, #tpu.memory_space<vmem>>, vector<1x32xf32>
    %c0_283 = arith.constant 0 : index
    %c0_284 = arith.constant 0 : index
    %626 = vector.load %arg73[%c0_283, %c0_284] : memref<1x32xf32, #tpu.memory_space<vmem>>, vector<1x32xf32>
    %cst_285 = arith.constant dense<0.000000e+00> : vector<16xf32>
    %627 = vector.multi_reduction <add>, %624, %cst_285 [1] : vector<16x32xf32> to vector<16xf32>
    %628 = vector.shape_cast %627 : vector<16xf32> to vector<16x1xf32>
    %cst_286 = arith.constant 3.200000e+01 : f32
    %629 = vector.broadcast %cst_286 : f32 to vector<16x1xf32>
    %630 = arith.divf %628, %629 : vector<16x1xf32>
    %631 = vector.broadcast %630 : vector<16x1xf32> to vector<16x32xf32>
    %632 = arith.subf %624, %631 : vector<16x32xf32>
    %633 = arith.mulf %632, %632 : vector<16x32xf32>
    %cst_287 = arith.constant dense<0.000000e+00> : vector<16xf32>
    %634 = vector.multi_reduction <add>, %633, %cst_287 [1] : vector<16x32xf32> to vector<16xf32>
    %635 = vector.shape_cast %634 : vector<16xf32> to vector<16x1xf32>
    %cst_288 = arith.constant 3.200000e+01 : f32
    %636 = vector.broadcast %cst_288 : f32 to vector<16x1xf32>
    %637 = arith.divf %635, %636 : vector<16x1xf32>
    %638 = vector.broadcast %630 : vector<16x1xf32> to vector<16x32xf32>
    %639 = arith.subf %624, %638 : vector<16x32xf32>
    %cst_289 = arith.constant 9.99999974E-6 : f32
    %640 = vector.broadcast %cst_289 : f32 to vector<16x1xf32>
    %641 = arith.addf %637, %640 : vector<16x1xf32>
    %642 = math.rsqrt %641 : vector<16x1xf32>
    %643 = vector.broadcast %642 : vector<16x1xf32> to vector<16x32xf32>
    %644 = arith.mulf %639, %643 : vector<16x32xf32>
    %645 = vector.broadcast %625 : vector<1x32xf32> to vector<16x32xf32>
    %646 = arith.mulf %644, %645 : vector<16x32xf32>
    %647 = vector.broadcast %626 : vector<1x32xf32> to vector<16x32xf32>
    %648 = arith.addf %646, %647 : vector<16x32xf32>
    %649 = vector.extract_strided_slice %648 {offsets = [0, 0], sizes = [8, 32], strides = [1, 1]} : vector<16x32xf32> to vector<8x32xf32>
    %cst_290 = arith.constant dense<0.000000e+00> : vector<32xf32>
    %650 = vector.multi_reduction <add>, %649, %cst_290 [0] : vector<8x32xf32> to vector<32xf32>
    %651 = vector.shape_cast %650 : vector<32xf32> to vector<1x32xf32>
    %cst_291 = arith.constant 8.000000e+00 : f32
    %652 = vector.broadcast %cst_291 : f32 to vector<1x32xf32>
    %653 = arith.divf %651, %652 : vector<1x32xf32>
    %654 = vector.extract_strided_slice %648 {offsets = [8, 0], sizes = [8, 32], strides = [1, 1]} : vector<16x32xf32> to vector<8x32xf32>
    %cst_292 = arith.constant dense<0.000000e+00> : vector<32xf32>
    %655 = vector.multi_reduction <add>, %654, %cst_292 [0] : vector<8x32xf32> to vector<32xf32>
    %656 = vector.shape_cast %655 : vector<32xf32> to vector<1x32xf32>
    %cst_293 = arith.constant 8.000000e+00 : f32
    %657 = vector.broadcast %cst_293 : f32 to vector<1x32xf32>
    %658 = arith.divf %656, %657 : vector<1x32xf32>
    %659 = tpu.concatenate %653, %658 in 0 : vector<1x32xf32>, vector<1x32xf32> -> vector<2x32xf32>
    %c0_294 = arith.constant 0 : index
    %c0_295 = arith.constant 0 : index
    %660 = vector.load %arg74[%c0_294, %c0_295] : memref<32x2xf32, #tpu.memory_space<vmem>>, vector<32x2xf32>
    %cst_296 = arith.constant dense<0.000000e+00> : vector<2x2xf32>
    %661 = tpu.matmul %659, %660, %cst_296 {dimension_numbers = #tpu.dot_dimension_numbers<[1], [0], [0], [1], [0, 0, 1, 1], [], []>} : vector<2x32xf32>, vector<32x2xf32>, vector<2x2xf32> -> vector<2x2xf32>
    %c0_297 = arith.constant 0 : index
    %c0_298 = arith.constant 0 : index
    %662 = vector.load %arg75[%c0_297, %c0_298] : memref<1x2xf32, #tpu.memory_space<vmem>>, vector<1x2xf32>
    %663 = vector.broadcast %662 : vector<1x2xf32> to vector<2x2xf32>
    %664 = arith.addf %661, %663 : vector<2x2xf32>
    %c0_299 = arith.constant 0 : index
    %c0_300 = arith.constant 0 : index
    %665 = vector.load %arg76[%c0_299, %c0_300] : memref<2x2xf32, #tpu.memory_space<vmem>>, vector<2x2xf32>
    tpu.vector_store %arg76[%c0_299, %c0_300], %664 {strides = array<i32>} : memref<2x2xf32, #tpu.memory_space<vmem>>, vector<2x2xf32>,
    return
  }
}

</mosaic_0001>

<bundles_post_ra>
// kernel: delight_classifier_forward.1
= control target key start
LH: loop header
LB: loop body
LE: loop exit
PB: predicated region body
PF: predicated region fallthrough
CT: control target
= control target key end

     0   :  { %s6053_s6 = smov 1   ;;  %s6054_s10 = smov 2   ;;  %s6985_s0 = inlined_call_operand.smem [shape: u32[77], index: -1, kind: input, shape index: {}] }
   0x1   :  { %s6182_s5 = sld [smem:[%s6985_s0]]   ;;  %s6055_s14 = smov 3  }
   0x2   :  { %s6187_s9 = sld [smem:[%s6985_s0 + %s6053_s6]]   ;;  %s6056_s18 = smov 4  }
   0x3   :  { %s6192_s13 = sld [smem:[%s6985_s0 + %s6054_s10]]   ;;  %s6057_s22 = smov 5  }
   0x4   :  { %s6197_s17 = sld [smem:[%s6985_s0 + %s6055_s14]]   ;;  %s6058_s26 = smov 6  }
   0x5   :  { %s6202_s21 = sld [smem:[%s6985_s0 + %s6056_s18]]   ;;  %s6059_s30 = smov 7  }
   0x6   :  { %s6207_s25 = sld [smem:[%s6985_s0 + %s6057_s22]]   ;;  %s6060_s4 = smov 8  }
   0x7   :  { %7009 = sst [smem:[#allocation87_spill]] %s6182_s5  ;;  %s6061_s10 = smov 9  }
   0x8   :  { %7010 = sst [smem:[#allocation88_spill]] %s6187_s9  ;;  %s6062_s15 = smov 10  }
   0x9   :  { %7011 = sst [smem:[#allocation89_spill]] %s6192_s13  ;;  %s6063_s20 = smov 11  }
   0xa   :  { %7012 = sst [smem:[#allocation90_spill]] %s6197_s17  ;;  %s6065_s1 = smov 13  }
   0xb   :  { %7013 = sst [smem:[#allocation91_spill]] %s6202_s21  ;;  %s6066_s7 = smov 14  }
   0xc   :  { %s6212_s29 = sld [smem:[%s6985_s0 + %s6058_s26]]   ;;  %s6064_s26 = smov 12  }
   0xd   :  { %s6217_s3 = sld [smem:[%s6985_s0 + %s6059_s30]]   ;;  %s6068_s22 = smov 16  }
   0xe   :  { %s6222_s8 = sld [smem:[%s6985_s0 + %s6060_s4]]   ;;  %s6069_s28 = smov 17  }
   0xf   :  { %s6227_s14 = sld [smem:[%s6985_s0 + %s6061_s10]]  }
  0x10   :  { %s6232_s19 = sld [smem:[%s6985_s0 + %s6062_s15]]   ;;  %s6067_s15 = smov 15  }
  0x11   :  { %s6237_s24 = sld [smem:[%s6985_s0 + %s6063_s20]]  }
  0x12   :  { %7014 = sst [smem:[#allocation92_spill]] %s6212_s29 }
  0x13   :  { %7015 = sst [smem:[#allocation93_spill]] %s6217_s3 }
  0x14   :  { %7016 = sst [smem:[#allocation94_spill]] %s6222_s8 }
  0x15   :  { %s6242_s30 = sld [smem:[%s6985_s0 + %s6064_s26]]  }
  0x16   :  { %7017 = sst [smem:[#allocation95_spill]] %s6232_s19 }
  0x17   :  { %7018 = sst [smem:[#allocation96_spill]] %s6237_s24 }
  0x18   :  { %s6247_s6 = sld [smem:[%s6985_s0 + %s6065_s1]]  }
  0x19   :  { %s6252_s12 = sld [smem:[%s6985_s0 + %s6066_s7]]   ;;  %s6070_s7 = smov 18  }
  0x1a   :  { %s6257_s20 = sld [smem:[%s6985_s0 + %s6067_s15]]   ;;  %s6071_s15 = smov 19  }
  0x1b   :  { %7019 = sst [smem:[#allocation97_spill]] %s6242_s30 }
  0x1c   :  { %s6262_s27 = sld [smem:[%s6985_s0 + %s6068_s22]]   ;;  %s6072_s22 = smov 20  }
  0x1d   :  { %s6267_s4 = sld [smem:[%s6985_s0 + %s6069_s28]]   ;;  %s6073_s28 = smov 21  }
  0x1e   :  { %s6277_s30 = sld [smem:[%s6985_s0 + %s6071_s15]]   ;;  %s6075_s15 = smov 23  }
  0x1f   :  { %7020 = sst [smem:[#allocation98_spill]] %s6252_s12 }
  0x20   :  { %7021 = sst [smem:[#allocation99_spill]] %s6257_s20 }
  0x21   :  { %s6272_s12 = sld [smem:[%s6985_s0 + %s6070_s7]]   ;;  %s6074_s7 = smov 22  }
  0x22   :  { %7022 = sst [smem:[#allocation100_spill]] %s6262_s27 }
  0x23   :  { %s6282_s27 = sld [smem:[%s6985_s0 + %s6072_s22]]   ;;  %s6076_s22 = smov 24  }
  0x24   :  { %s6287_s19 = sld [smem:[%s6985_s0 + %s6073_s28]]   ;;  %s6077_s28 = smov 25  }
  0x25   :  { %s6292_s8 = sld [smem:[%s6985_s0 + %s6074_s7]]   ;;  %s6078_s7 = smov 26  }
  0x26   :  { %s6297_s29 = sld [smem:[%s6985_s0 + %s6075_s15]]   ;;  %s6079_s15 = smov 27  }
  0x27   :  { %7023 = sst [smem:[#allocation101_spill]] %s6272_s12 }
  0x28   :  { %s6307_s21 = sld [smem:[%s6985_s0 + %s6077_s28]]   ;;  %s6081_s28 = smov 29  }
  0x29   :  { %7024 = sst [smem:[#allocation102_spill]] %s6282_s27 }
  0x2a   :  { %7025 = sst [smem:[#allocation103_spill]] %s6287_s19 }
  0x2b   :  { %s6302_s27 = sld [smem:[%s6985_s0 + %s6076_s22]]   ;;  %s6080_s22 = smov 28  }
  0x2c   :  { %7026 = sst [smem:[#allocation104_spill]] %s6297_s29 }
  0x2d   :  { %s6312_s9 = sld [smem:[%s6985_s0 + %s6078_s7]]   ;;  %s6082_s7 = smov 30  }
  0x2e   :  { %7027 = sst [smem:[#allocation105_spill]] %s6307_s21 }
  0x2f   :  { %s6317_s5 = sld [smem:[%s6985_s0 + %s6079_s15]]   ;;  %s6083_s15 = smov 31  }
  0x30   :  { %s6322_s13 = sld [smem:[%s6985_s0 + %s6080_s22]]   ;;  %s6084_s22 = smov 32  }
  0x31   :  { %s6327_s21 = sld [smem:[%s6985_s0 + %s6081_s28]]   ;;  %s6085_s28 = smov 33  }
  0x32   :  { %s6337_s29 = sld [smem:[%s6985_s0 + %s6083_s15]]   ;;  %s6087_s15 = smov 35  }
  0x33   :  { %7028 = sst [smem:[#allocation106_spill]] %s6312_s9 }
  0x34   :  { %s6332_s9 = sld [smem:[%s6985_s0 + %s6082_s7]]   ;;  %s6086_s7 = smov 34  }
  0x35   :  { %s6357_s19 = sld [smem:[%s6985_s0 + %s6087_s15]]   ;;  %s6091_s15 = smov 39  }
  0x36   :  { %7029 = sst [smem:[#allocation107_spill]] %s6322_s13 }
  0x37   :  { %7030 = sst [smem:[#allocation108_spill]] %s6327_s21 }
  0x38   :  { %s6342_s13 = sld [smem:[%s6985_s0 + %s6084_s22]]   ;;  %s6088_s22 = smov 36  }
  0x39   :  { %s6347_s21 = sld [smem:[%s6985_s0 + %s6085_s28]]   ;;  %s6089_s28 = smov 37  }
  0x3a   :  { %7031 = sst [smem:[#allocation109_spill]] %s6332_s9 }
  0x3b   :  { %s6352_s9 = sld [smem:[%s6985_s0 + %s6086_s7]]   ;;  %s6090_s7 = smov 38  }
  0x3c   :  { %s6377_s12 = sld [smem:[%s6985_s0 + %s6091_s15]]   ;;  %s6095_s15 = smov 43  }
  0x3d   :  { %s6397_s20 = sld [smem:[%s6985_s0 + %s6095_s15]]   ;;  %s6099_s15 = smov 47  }
  0x3e   :  { %7032 = sst [smem:[#allocation110_spill]] %s6342_s13 }
  0x3f   :  { %7033 = sst [smem:[#allocation111_spill]] %s6347_s21 }
  0x40   :  { %s6362_s13 = sld [smem:[%s6985_s0 + %s6088_s22]]   ;;  %s6092_s22 = smov 40  }
  0x41   :  { %7034 = sst [smem:[#allocation112_spill]] %s6352_s9 }
  0x42   :  { %s6367_s21 = sld [smem:[%s6985_s0 + %s6089_s28]]   ;;  %s6093_s28 = smov 41  }
  0x43   :  { %s6372_s9 = sld [smem:[%s6985_s0 + %s6090_s7]]   ;;  %s6094_s7 = smov 42  }
  0x44   :  { %s6417_s3 = sld [smem:[%s6985_s0 + %s6099_s15]]   ;;  %s6103_s15 = smov 51  }
  0x46   :  { %7035 = sst [smem:[#allocation113_spill]] %s6362_s13 }
  0x47   :  { %s6382_s13 = sld [smem:[%s6985_s0 + %s6092_s22]]   ;;  %s6096_s22 = smov 44  }
  0x48   :  { %7036 = sst [smem:[#allocation114_spill]] %s6367_s21 }
  0x49   :  { %7037 = sst [smem:[#allocation115_spill]] %s6372_s9 }
  0x4a   :  { %s6387_s21 = sld [smem:[%s6985_s0 + %s6093_s28]]   ;;  %s6097_s28 = smov 45  }
  0x4b   :  { %s6392_s9 = sld [smem:[%s6985_s0 + %s6094_s7]]   ;;  %s6098_s7 = smov 46  }
  0x4c   :  { %s6407_s24 = sld [smem:[%s6985_s0 + %s6097_s28]]   ;;  %s6101_s28 = smov 49  }
  0x4d   :  { %7038 = sst [smem:[#allocation116_spill]] %s6382_s13 }
  0x4e   :  { %s6402_s13 = sld [smem:[%s6985_s0 + %s6096_s22]]   ;;  %s6100_s22 = smov 48  }
  0x4f   :  { %7042 = sst [smem:[#allocation120_spill]] %s6417_s3 }
  0x50   :  { %s6437_s3 = sld [smem:[%s6985_s0 + %s6103_s15]]   ;;  %s6107_s15 = smov 55  }
  0x51   :  { %7039 = sst [smem:[#allocation117_spill]] %s6392_s9 }
  0x52   :  { %7041 = sst [smem:[#allocation119_spill]] %s6407_s24 }
  0x53   :  { %s6412_s9 = sld [smem:[%s6985_s0 + %s6098_s7]]   ;;  %s6102_s7 = smov 50  }
  0x54   :  { %7040 = sst [smem:[#allocation118_spill]] %s6402_s13 }
  0x55   :  { %s6422_s13 = sld [smem:[%s6985_s0 + %s6100_s22]]   ;;  %s6104_s22 = smov 52  }
  0x56   :  { %s6427_s24 = sld [smem:[%s6985_s0 + %s6101_s28]]   ;;  %s6105_s28 = smov 53  }
  0x57   :  { %s6432_s17 = sld [smem:[%s6985_s0 + %s6102_s7]]   ;;  %s6106_s7 = smov 54  }
  0x58   :  { %7046 = sst [smem:[#allocation124_spill]] %s6437_s3 }
  0x59   :  { %s6457_s3 = sld [smem:[%s6985_s0 + %s6107_s15]]   ;;  %s6111_s15 = smov 59  }
  0x5b   :  { %7043 = sst [smem:[#allocation121_spill]] %s6422_s13 }
  0x5c   :  { %7044 = sst [smem:[#allocation122_spill]] %s6427_s24 }
  0x5d   :  { %7045 = sst [smem:[#allocation123_spill]] %s6432_s17 }
  0x5e   :  { %s6442_s13 = sld [smem:[%s6985_s0 + %s6104_s22]]   ;;  %s6108_s22 = smov 56  }
  0x5f   :  { %s6447_s24 = sld [smem:[%s6985_s0 + %s6105_s28]]   ;;  %s6109_s28 = smov 57  }
  0x60   :  { %s6452_s17 = sld [smem:[%s6985_s0 + %s6106_s7]]   ;;  %s6110_s7 = smov 58  }
  0x61   :  { %7050 = sst [smem:[#allocation128_spill]] %s6457_s3 }
  0x62   :  { %s6477_s3 = sld [smem:[%s6985_s0 + %s6111_s15]]   ;;  %s6115_s15 = smov 63  }
  0x64   :  { %7047 = sst [smem:[#allocation125_spill]] %s6442_s13 }
  0x65   :  { %7048 = sst [smem:[#allocation126_spill]] %s6447_s24 }
  0x66   :  { %7049 = sst [smem:[#allocation127_spill]] %s6452_s17 }
  0x67   :  { %s6462_s13 = sld [smem:[%s6985_s0 + %s6108_s22]]   ;;  %s6112_s22 = smov 60  }
  0x68   :  { %s6467_s24 = sld [smem:[%s6985_s0 + %s6109_s28]]   ;;  %s6113_s28 = smov 61  }
  0x69   :  { %s6472_s17 = sld [smem:[%s6985_s0 + %s6110_s7]]   ;;  %s6114_s7 = smov 62  }
  0x6a   :  { %7054 = sst [smem:[#allocation132_spill]] %s6477_s3 }
  0x6b   :  { %s6497_s3 = sld [smem:[%s6985_s0 + %s6115_s15]]   ;;  %s6119_s15 = smov 67  }
  0x6d   :  { %7051 = sst [smem:[#allocation129_spill]] %s6462_s13 }
  0x6e   :  { %7052 = sst [smem:[#allocation130_spill]] %s6467_s24 }
  0x6f   :  { %7053 = sst [smem:[#allocation131_spill]] %s6472_s17 }
  0x70   :  { %s6482_s13 = sld [smem:[%s6985_s0 + %s6112_s22]]   ;;  %s6116_s22 = smov 64  }
  0x71   :  { %s6487_s24 = sld [smem:[%s6985_s0 + %s6113_s28]]   ;;  %s6117_s28 = smov 65  }
  0x72   :  { %s6492_s17 = sld [smem:[%s6985_s0 + %s6114_s7]]   ;;  %s6118_s7 = smov 66  }
  0x73   :  { %7058 = sst [smem:[#allocation136_spill]] %s6497_s3 }
  0x74   :  { %s6517_s3 = sld [smem:[%s6985_s0 + %s6119_s15]]   ;;  %s6123_s15 = smov 71  }
  0x76   :  { %7055 = sst [smem:[#allocation133_spill]] %s6482_s13 }
  0x77   :  { %7056 = sst [smem:[#allocation134_spill]] %s6487_s24 }
  0x78   :  { %7057 = sst [smem:[#allocation135_spill]] %s6492_s17 }
  0x79   :  { %s6502_s13 = sld [smem:[%s6985_s0 + %s6116_s22]]   ;;  %s6120_s22 = smov 68  }
  0x7a   :  { %s6507_s24 = sld [smem:[%s6985_s0 + %s6117_s28]]   ;;  %s6121_s28 = smov 69  }
  0x7b   :  { %s6512_s17 = sld [smem:[%s6985_s0 + %s6118_s7]]   ;;  %s6122_s7 = smov 70  }
  0x7c   :  { %7062 = sst [smem:[#allocation140_spill]] %s6517_s3 }
  0x7d   :  { %s6537_s3 = sld [smem:[%s6985_s0 + %s6123_s15]]   ;;  %s6127_s15 = smov 75  }
  0x7f   :  { %7059 = sst [smem:[#allocation137_spill]] %s6502_s13 }
  0x80   :  { %7060 = sst [smem:[#allocation138_spill]] %s6507_s24 }
  0x81   :  { %7061 = sst [smem:[#allocation139_spill]] %s6512_s17 }
  0x82   :  { %s6522_s13 = sld [smem:[%s6985_s0 + %s6120_s22]]   ;;  %s6124_s22 = smov 72  }
  0x83   :  { %s6527_s24 = sld [smem:[%s6985_s0 + %s6121_s28]]   ;;  %s6125_s28 = smov 73  }
  0x84   :  { %s6532_s17 = sld [smem:[%s6985_s0 + %s6122_s7]]   ;;  %s6126_s7 = smov 74  }
  0x85   :  { %7066 = sst [smem:[#allocation144_spill]] %s6537_s3 }
  0x86   :  { %s6557_s3 = sld [smem:[%s6985_s0 + %s6127_s15]]  }
  0x88   :  { %7063 = sst [smem:[#allocation141_spill]] %s6522_s13 }
  0x89   :  { %7064 = sst [smem:[#allocation142_spill]] %s6527_s24 }
  0x8a   :  { %7065 = sst [smem:[#allocation143_spill]] %s6532_s17 }
  0x8b   :  { %s6542_s13 = sld [smem:[%s6985_s0 + %s6124_s22]]   ;;  %s6128_s22 = smov 76  }
  0x8c   :  { %s6547_s24 = sld [smem:[%s6985_s0 + %s6125_s28]]  }
  0x8d   :  { %s6552_s17 = sld [smem:[%s6985_s0 + %s6126_s7]]  }
  0x91   :  { %7067 = sst [smem:[#allocation145_spill]] %s6542_s13 }
  0x92   :  { %s6562_s13 = sld [smem:[%s6985_s0 + %s6128_s22]]  }
  0x93   :  { %158 = vsyncpa [#allocation3], 0 }
  0x94   :  { %159 = vsyncpa [#allocation6], 0 }
  0x95   :  { %160 = vsyncpa [#allocation9], 0 }
  0x96   :  { %161 = vsyncpa [#allocation12], 0 }
  0x97   :  { %162 = vsyncpa [#allocation15], 0 }
  0x98   :  { %163 = vsyncpa [#allocation18], 0 }
  0x99   :  { %164 = vsyncpa [#allocation21], 0 }
  0x9a   :  { %165 = vsyncpa [#allocation24], 0 }
  0x9b   :  { %166 = vsyncpa [#allocation27], 0 }
  0x9c   :  { %167 = vsyncpa [#allocation30], 0 }
  0x9d   :  { %168 = vsyncpa [#allocation33], 0 }
  0x9e   :  { %169 = vsyncpa [#allocation36], 0 }
  0x9f   :  { %170 = vsyncpa [#allocation39], 0 }
  0xa0   :  { %171 = vsyncpa [#allocation42], 0 }
  0xa1   :  { %172 = vsyncpa [#allocation45], 0 }
  0xa2   :  { %173 = vsyncpa [#allocation48], 0 }
  0xa3   :  { %174 = vsyncpa [#allocation51], 0 }
  0xa4   :  { %175 = vsyncpa [#allocation54], 0 }
  0xa5   :  { %176 = vsyncpa [#allocation57], 0 }
  0xa6   :  { %177 = vsyncpa [#allocation60], 0 }
  0xa7   :  { %178 = vsyncpa [#allocation63], 0 }
  0xa8   :  { %179 = vsyncpa [#allocation4], 0  ;;  %s6129_s0 = smov [#allocation5]   ;;  %s6130_s1 = smov [#allocation8]  }
  0xa9   :  { %s204_s28 = sshll.u32 %s6129_s0, 4  ;;  %s228_s2 = sshll.u32 %s6130_s1, 4  ;;  %s205_s28 = int_to_ptr.vmem [resolvable:$true] %s204_s28  ;;  %s229_s2 = int_to_ptr.vmem [resolvable:$true] %s228_s2 }
  0xaa   :  { %s5197_s7 = scalar_lea.vmem %s205_s28, 16  ;;  %s5201_s10 = scalar_lea.vmem %s205_s28, 32 }
  0xab   :  { %p5198_p0 = scmp.ne.s32.totalorder %s205_s28, %s5197_s7  ;;  %p5202_p1 = scmp.lt.s32.totalorder %s205_s28, %s205_s28 }
  0xac   :  { %p5203_p2 = scmp.lt.s32.totalorder %s5201_s10, %s5197_s7 }
  0xae   :  { %p5204_p3 = por %p5203_p2, %p5202_p1 }
  0xb0   :  { %p5205_p4 = pnand %p5204_p3, %p5198_p0 }
  0xb2   :  { %5208 = shalt.err (!%p5205_p4)
}
  0xb3   :  { %207 = dma.hbm_to_vmem [thread:$0]  %s6207_s25, 16, %s205_s28, [#allocation6]  }
  0xb4   :  { %s5217_s11 = scalar_lea.vmem %s229_s2, 16  ;;  %s5221_s15 = scalar_lea.vmem %s229_s2, 32 }
  0xb5   :  { %p5218_p5 = scmp.ne.s32.totalorder %s229_s2, %s5217_s11  ;;  %p5222_p6 = scmp.lt.s32.totalorder %s229_s2, %s229_s2 }
  0xb6   :  { %p5223_p7 = scmp.lt.s32.totalorder %s5221_s15, %s5217_s11 }
  0xb8   :  { %p5224_p8 = por %p5223_p7, %p5222_p6 }
  0xba   :  { %p5225_p9 = pnand %p5224_p8, %p5218_p5 }
  0xbc   :  { %5228 = shalt.err (!%p5225_p9)
}
  0xbd   :  { %231 = dma.hbm_to_vmem [thread:$0]  %s6227_s14, 16, %s229_s2, [#allocation9]  }
  0xbe   :  { %s6131_s16 = smov [#allocation11]   ;;  %s6132_s22 = smov [#allocation14]  }
  0xbf   :  { %s252_s18 = sshll.u32 %s6131_s16, 4  ;;  %s276_s23 = sshll.u32 %s6132_s22, 4  ;;  %s253_s18 = int_to_ptr.vmem [resolvable:$true] %s252_s18  ;;  %s277_s23 = int_to_ptr.vmem [resolvable:$true] %s276_s23 }
  0xc0   :  { %s5237_s26 = scalar_lea.vmem %s253_s18, 16  ;;  %s5241_s0 = scalar_lea.vmem %s253_s18, 32 }
  0xc1   :  { %p5238_p10 = scmp.ne.s32.totalorder %s253_s18, %s5237_s26  ;;  %p5242_p11 = scmp.lt.s32.totalorder %s253_s18, %s253_s18 }
  0xc2   :  { %p5243_p12 = scmp.lt.s32.totalorder %s5241_s0, %s5237_s26 }
  0xc4   :  { %p5244_p13 = por %p5243_p12, %p5242_p11 }
  0xc6   :  { %p5245_p0 = pnand %p5244_p13, %p5238_p10 }
  0xc8   :  { %5248 = shalt.err (!%p5245_p0)
}
  0xc9   :  { %255 = dma.hbm_to_vmem [thread:$0]  %s6247_s6, 16, %s253_s18, [#allocation12]  }
  0xca   :  { %s5257_s25 = scalar_lea.vmem %s277_s23, 16  ;;  %s5261_s28 = scalar_lea.vmem %s277_s23, 32 }
  0xcb   :  { %p5258_p1 = scmp.ne.s32.totalorder %s277_s23, %s5257_s25  ;;  %p5262_p2 = scmp.lt.s32.totalorder %s277_s23, %s277_s23 }
  0xcc   :  { %p5263_p3 = scmp.lt.s32.totalorder %s5261_s28, %s5257_s25 }
  0xce   :  { %p5264_p4 = por %p5263_p3, %p5262_p2 }
  0xd0   :  { %p5265_p5 = pnand %p5264_p4, %p5258_p1 }
  0xd2   :  { %5268 = shalt.err (!%p5265_p5)
}
  0xd3   :  { %279 = dma.hbm_to_vmem [thread:$0]  %s6267_s4, 16, %s277_s23, [#allocation15]  }
  0xd4   :  { %s6133_s14 = smov [#allocation17]   ;;  %s6134_s2 = smov [#allocation20]  }
  0xd5   :  { %s296_s1 = sshll.u32 %s6133_s14, 4  ;;  %s318_s7 = sshll.u32 %s6134_s2, 4  ;;  %s297_s1 = int_to_ptr.vmem [resolvable:$true] %s296_s1  ;;  %s319_s7 = int_to_ptr.vmem [resolvable:$true] %s318_s7 }
  0xd6   :  { %s5277_s10 = scalar_lea.vmem %s297_s1, 16  ;;  %s5281_s11 = scalar_lea.vmem %s297_s1, 32 }
  0xd7   :  { %p5278_p6 = scmp.ne.s32.totalorder %s297_s1, %s5277_s10  ;;  %p5282_p7 = scmp.lt.s32.totalorder %s297_s1, %s297_s1 }
  0xd8   :  { %p5283_p8 = scmp.lt.s32.totalorder %s5281_s11, %s5277_s10 }
  0xda   :  { %p5284_p9 = por %p5283_p8, %p5282_p7 }
  0xdc   :  { %p5285_p10 = pnand %p5284_p9, %p5278_p6 }
  0xde   :  { %5288 = shalt.err (!%p5285_p10)
}
  0xdf   :  { %299 = dma.hbm_to_vmem [thread:$0]  %s6277_s30, 16, %s297_s1, [#allocation18]  }
  0xe0   :  { %s5297_s6 = scalar_lea.vmem %s319_s7, 64  ;;  %p5302_p12 = scmp.lt.s32.totalorder %s319_s7, %s319_s7 }
  0xe1   :  { %p5298_p11 = scmp.ne.s32.totalorder %s319_s7, %s5297_s6  ;;  %p5303_p13 = scmp.lt.s32.totalorder %s5297_s6, %s5297_s6 }
  0xe3   :  { %p5304_p0 = por %p5303_p13, %p5302_p12 }
  0xe5   :  { %p5305_p1 = pnand %p5304_p0, %p5298_p11 }
  0xe7   :  { %5308 = shalt.err (!%p5305_p1)
}
  0xe8   :  { %321 = dma.hbm_to_vmem [thread:$0]  %s6292_s8, 64, %s319_s7, [#allocation21]  }
  0xe9   :  { %s6135_s4 = smov [#allocation23]   ;;  %s6136_s16 = smov [#allocation26]  }
  0xea   :  { %s338_s15 = sshll.u32 %s6135_s4, 4  ;;  %s360_s18 = sshll.u32 %s6136_s16, 4  ;;  %s339_s15 = int_to_ptr.vmem [resolvable:$true] %s338_s15  ;;  %s361_s18 = int_to_ptr.vmem [resolvable:$true] %s360_s18 }
  0xeb   :  { %s5317_s22 = scalar_lea.vmem %s339_s15, 16  ;;  %s5321_s23 = scalar_lea.vmem %s339_s15, 32 }
  0xec   :  { %p5318_p2 = scmp.ne.s32.totalorder %s339_s15, %s5317_s22  ;;  %p5322_p3 = scmp.lt.s32.totalorder %s339_s15, %s339_s15 }
  0xed   :  { %p5323_p4 = scmp.lt.s32.totalorder %s5321_s23, %s5317_s22 }
  0xef   :  { %p5324_p5 = por %p5323_p4, %p5322_p3 }
  0xf1   :  { %p5325_p6 = pnand %p5324_p5, %p5318_p2 }
  0xf3   :  { %5328 = shalt.err (!%p5325_p6)
}
  0xf4   :  { %341 = dma.hbm_to_vmem [thread:$0]  %s6302_s27, 16, %s339_s15, [#allocation24]  }
  0xf5   :  { %s5337_s30 = scalar_lea.vmem %s361_s18, 16  ;;  %s5341_s26 = scalar_lea.vmem %s361_s18, 32 }
  0xf6   :  { %p5338_p7 = scmp.ne.s32.totalorder %s361_s18, %s5337_s30  ;;  %p5342_p8 = scmp.lt.s32.totalorder %s361_s18, %s361_s18 }
  0xf7   :  { %p5343_p9 = scmp.lt.s32.totalorder %s5341_s26, %s5337_s30 }
  0xf9   :  { %p5344_p10 = por %p5343_p9, %p5342_p8 }
  0xfb   :  { %p5345_p11 = pnand %p5344_p10, %p5338_p7 }
  0xfd   :  { %5348 = shalt.err (!%p5345_p11)
}
  0xfe   :  { %363 = dma.hbm_to_vmem [thread:$0]  %s6317_s5, 16, %s361_s18, [#allocation27]  }
  0xff   :  { %s6137_s8 = smov [#allocation29]   ;;  %s6138_s25 = smov [#allocation32]  }
 0x100   :  { %s384_s0 = sshll.u32 %s6137_s8, 4  ;;  %s408_s28 = sshll.u32 %s6138_s25, 4  ;;  %s385_s0 = int_to_ptr.vmem [resolvable:$true] %s384_s0  ;;  %s409_s28 = int_to_ptr.vmem [resolvable:$true] %s408_s28 }
 0x101   :  { %s5357_s14 = scalar_lea.vmem %s385_s0, 16  ;;  %s5361_s1 = scalar_lea.vmem %s385_s0, 32 }
 0x102   :  { %p5358_p12 = scmp.ne.s32.totalorder %s385_s0, %s5357_s14  ;;  %p5362_p13 = scmp.lt.s32.totalorder %s385_s0, %s385_s0 }
 0x103   :  { %p5363_p0 = scmp.lt.s32.totalorder %s5361_s1, %s5357_s14 }
 0x105   :  { %p5364_p1 = por %p5363_p0, %p5362_p13 }
 0x107   :  { %p5365_p2 = pnand %p5364_p1, %p5358_p12 }
 0x109   :  { %5368 = shalt.err (!%p5365_p2)
}
 0x10a   :  { %387 = dma.hbm_to_vmem [thread:$0]  %s6337_s29, 16, %s385_s0, [#allocation30]  }
 0x10b   :  { %s5377_s27 = scalar_lea.vmem %s409_s28, 16  ;;  %s5381_s2 = scalar_lea.vmem %s409_s28, 32 }
 0x10c   :  { %p5378_p3 = scmp.ne.s32.totalorder %s409_s28, %s5377_s27  ;;  %p5382_p4 = scmp.lt.s32.totalorder %s409_s28, %s409_s28 }
 0x10d   :  { %p5383_p5 = scmp.lt.s32.totalorder %s5381_s2, %s5377_s27 }
 0x10f   :  { %p5384_p6 = por %p5383_p5, %p5382_p4 }
 0x111   :  { %p5385_p7 = pnand %p5384_p6, %p5378_p3 }
 0x113   :  { %5388 = shalt.err (!%p5385_p7)
}
 0x114   :  { %411 = dma.hbm_to_vmem [thread:$0]  %s6357_s19, 16, %s409_s28, [#allocation33]  }
 0x115   :  { %s6139_s5 = smov [#allocation35]   ;;  %s6140_s10 = smov [#allocation38]  }
 0x116   :  { %s432_s7 = sshll.u32 %s6139_s5, 4  ;;  %s454_s11 = sshll.u32 %s6140_s10, 4  ;;  %s433_s7 = int_to_ptr.vmem [resolvable:$true] %s432_s7  ;;  %s455_s11 = int_to_ptr.vmem [resolvable:$true] %s454_s11 }
 0x117   :  { %s5397_s6 = scalar_lea.vmem %s433_s7, 16  ;;  %s5401_s4 = scalar_lea.vmem %s433_s7, 32 }
 0x118   :  { %p5398_p8 = scmp.ne.s32.totalorder %s433_s7, %s5397_s6  ;;  %p5402_p9 = scmp.lt.s32.totalorder %s433_s7, %s433_s7 }
 0x119   :  { %p5403_p10 = scmp.lt.s32.totalorder %s5401_s4, %s5397_s6 }
 0x11b   :  { %p5404_p11 = por %p5403_p10, %p5402_p9 }
 0x11d   :  { %p5405_p12 = pnand %p5404_p11, %p5398_p8 }
 0x11f   :  { %5408 = shalt.err (!%p5405_p12)
}
 0x120   :  { %435 = dma.hbm_to_vmem [thread:$0]  %s6377_s12, 16, %s433_s7, [#allocation36]  }
 0x121   :  { %s5417_s29 = scalar_lea.vmem %s455_s11, 16  ;;  %s5421_s15 = scalar_lea.vmem %s455_s11, 32 }
 0x122   :  { %p5418_p13 = scmp.ne.s32.totalorder %s455_s11, %s5417_s29  ;;  %p5422_p0 = scmp.lt.s32.totalorder %s455_s11, %s455_s11 }
 0x123   :  { %p5423_p1 = scmp.lt.s32.totalorder %s5421_s15, %s5417_s29 }
 0x125   :  { %p5424_p2 = por %p5423_p1, %p5422_p0 }
 0x127   :  { %p5425_p3 = pnand %p5424_p2, %p5418_p13 }
 0x129   :  { %5428 = shalt.err (!%p5425_p3)
}
 0x12a   :  { %457 = dma.hbm_to_vmem [thread:$0]  %s6387_s21, 16, %s455_s11, [#allocation39]  }
 0x12b   :  { %s6141_s19 = smov [#allocation41]   ;;  %s6142_s18 = smov [#allocation44]  }
 0x12c   :  { %s474_s16 = sshll.u32 %s6141_s19, 4  ;;  %s496_s22 = sshll.u32 %s6142_s18, 4  ;;  %s475_s16 = int_to_ptr.vmem [resolvable:$true] %s474_s16  ;;  %s497_s22 = int_to_ptr.vmem [resolvable:$true] %s496_s22 }
 0x12d   :  { %s5437_s23 = scalar_lea.vmem %s475_s16, 16  ;;  %s5441_s30 = scalar_lea.vmem %s475_s16, 32 }
 0x12e   :  { %p5438_p4 = scmp.ne.s32.totalorder %s475_s16, %s5437_s23  ;;  %p5442_p5 = scmp.lt.s32.totalorder %s475_s16, %s475_s16 }
 0x12f   :  { %p5443_p6 = scmp.lt.s32.totalorder %s5441_s30, %s5437_s23 }
 0x131   :  { %p5444_p7 = por %p5443_p6, %p5442_p5 }
 0x133   :  { %p5445_p8 = pnand %p5444_p7, %p5438_p4 }
 0x135   :  { %5448 = shalt.err (!%p5445_p8)
}
 0x136   :  { %477 = dma.hbm_to_vmem [thread:$0]  %s6397_s20, 16, %s475_s16, [#allocation42]  }
 0x137   :  { %s5457_s12 = scalar_lea.vmem %s497_s22, 64  ;;  %p5462_p10 = scmp.lt.s32.totalorder %s497_s22, %s497_s22 }
 0x138   :  { %p5458_p9 = scmp.ne.s32.totalorder %s497_s22, %s5457_s12  ;;  %p5463_p11 = scmp.lt.s32.totalorder %s5457_s12, %s5457_s12 }
 0x13a   :  { %p5464_p12 = por %p5463_p11, %p5462_p10 }
 0x13c   :  { %p5465_p13 = pnand %p5464_p12, %p5458_p9 }
 0x13e   :  { %5468 = shalt.err (!%p5465_p13)
}
 0x13f   :  { %499 = dma.hbm_to_vmem [thread:$0]  %s6412_s9, 64, %s497_s22, [#allocation45]  }
 0x140   :  { %s6143_s21 = smov [#allocation47]   ;;  %s6144_s8 = smov [#allocation50]  }
 0x141   :  { %s516_s26 = sshll.u32 %s6143_s21, 4  ;;  %s538_s0 = sshll.u32 %s6144_s8, 4  ;;  %s517_s26 = int_to_ptr.vmem [resolvable:$true] %s516_s26  ;;  %s539_s0 = int_to_ptr.vmem [resolvable:$true] %s538_s0 }
 0x142   :  { %s5477_s25 = scalar_lea.vmem %s517_s26, 16  ;;  %s5481_s28 = scalar_lea.vmem %s517_s26, 32 }
 0x143   :  { %p5478_p0 = scmp.ne.s32.totalorder %s517_s26, %s5477_s25  ;;  %p5482_p1 = scmp.lt.s32.totalorder %s517_s26, %s517_s26 }
 0x144   :  { %p5483_p2 = scmp.lt.s32.totalorder %s5481_s28, %s5477_s25 }
 0x146   :  { %p5484_p3 = por %p5483_p2, %p5482_p1 }
 0x148   :  { %p5485_p4 = pnand %p5484_p3, %p5478_p0 }
 0x14a   :  { %5488 = shalt.err (!%p5485_p4)
}
 0x14b   :  { %s7068_s20 = sld [smem:[#allocation121_spill]]  ;;  %s5497_s14 = scalar_lea.vmem %s539_s0, 16 }
 0x14c   :  { %p5498_p5 = scmp.ne.s32.totalorder %s539_s0, %s5497_s14  ;;  %s5501_s1 = scalar_lea.vmem %s539_s0, 32 }
 0x14d   :  { %p5502_p6 = scmp.lt.s32.totalorder %s539_s0, %s539_s0  ;;  %p5503_p7 = scmp.lt.s32.totalorder %s5501_s1, %s5497_s14 }
 0x14f   :  { %p5504_p8 = por %p5503_p7, %p5502_p6 }
 0x151   :  { %519 = dma.hbm_to_vmem [thread:$0]  %s7068_s20, 16, %s517_s26, [#allocation48]  }
 0x152   :  { %p5505_p9 = pnand %p5504_p8, %p5498_p5 }
 0x154   :  { %5508 = shalt.err (!%p5505_p9)
}
 0x155   :  { %s7069_s9 = sld [smem:[#allocation124_spill]]  ;;  %s6145_s27 = smov [#allocation53]  }
 0x156   :  { %s562_s2 = sshll.u32 %s6145_s27, 4  ;;  %s6146_s5 = smov [#allocation56]   ;;  %s563_s2 = int_to_ptr.vmem [resolvable:$true] %s562_s2 }
 0x157   :  { %s584_s7 = sshll.u32 %s6146_s5, 4  ;;  %s5517_s10 = scalar_lea.vmem %s563_s2, 16  ;;  %s585_s7 = int_to_ptr.vmem [resolvable:$true] %s584_s7 }
 0x158   :  { %p5518_p10 = scmp.ne.s32.totalorder %s563_s2, %s5517_s10  ;;  %s5521_s11 = scalar_lea.vmem %s563_s2, 32 }
 0x159   :  { %p5522_p11 = scmp.lt.s32.totalorder %s563_s2, %s563_s2  ;;  %p5523_p12 = scmp.lt.s32.totalorder %s5521_s11, %s5517_s10 }
 0x15b   :  { %541 = dma.hbm_to_vmem [thread:$0]  %s7069_s9, 16, %s539_s0, [#allocation51]  }
 0x15c   :  { %p5524_p13 = por %p5523_p12, %p5522_p11 }
 0x15e   :  { %p5525_p0 = pnand %p5524_p13, %p5518_p10 }
 0x160   :  { %5528 = shalt.err (!%p5525_p0)
}
 0x161   :  { %s7070_s6 = sld [smem:[#allocation128_spill]]  ;;  %s5537_s4 = scalar_lea.vmem %s585_s7, 16 }
 0x162   :  { %p5538_p1 = scmp.ne.s32.totalorder %s585_s7, %s5537_s4  ;;  %s5541_s29 = scalar_lea.vmem %s585_s7, 32 }
 0x163   :  { %p5542_p2 = scmp.lt.s32.totalorder %s585_s7, %s585_s7  ;;  %p5543_p3 = scmp.lt.s32.totalorder %s5541_s29, %s5537_s4 }
 0x165   :  { %p5544_p4 = por %p5543_p3, %p5542_p2 }
 0x167   :  { %565 = dma.hbm_to_vmem [thread:$0]  %s7070_s6, 16, %s563_s2, [#allocation54]  }
 0x168   :  { %p5545_p5 = pnand %p5544_p4, %p5538_p1 }
 0x16a   :  { %5548 = shalt.err (!%p5545_p5)
}
 0x16b   :  { %s7071_s15 = sld [smem:[#allocation130_spill]]  ;;  %s6147_s19 = smov [#allocation59]  }
 0x16c   :  { %s605_s16 = sshll.u32 %s6147_s19, 4  ;;  %s6148_s18 = smov [#allocation2]   ;;  %s606_s16 = int_to_ptr.vmem [resolvable:$true] %s605_s16 }
 0x16d   :  { %s192_s22 = sshll.u32 %s6148_s18, 4  ;;  %s5557_s23 = scalar_lea.vmem %s606_s16, 256  ;;  %s193_s22 = int_to_ptr.vmem [resolvable:$true] %s192_s22 }
 0x16e   :  { %p5558_p6 = scmp.ne.s32.totalorder %s606_s16, %s5557_s23  ;;  %p5562_p7 = scmp.lt.s32.totalorder %s606_s16, %s606_s16 }
 0x16f   :  { %p5563_p8 = scmp.lt.s32.totalorder %s5557_s23, %s5557_s23 }
 0x171   :  { %587 = dma.hbm_to_vmem [thread:$0]  %s7071_s15, 16, %s585_s7, [#allocation57]  }
 0x172   :  { %p5564_p9 = por %p5563_p8, %p5562_p7 }
 0x174   :  { %p5565_p10 = pnand %p5564_p9, %p5558_p6 }
 0x176   :  { %5568 = shalt.err (!%p5565_p10)
}
 0x177   :  { %s6149_s30 = smov 64   ;;  %s7072_s12 = sld [smem:[#allocation133_spill]] }
 0x178   :  { %s6150_s21 = smov 4   ;;  %s5577_s26 = scalar_lea.vmem %s193_s22, 16 }
 0x179   :  { %p5578_p11 = scmp.ne.s32.totalorder %s193_s22, %s5577_s26  ;;  %s5581_s8 = scalar_lea.vmem %s193_s22, 32 }
 0x17a   :  { %p5582_p12 = scmp.lt.s32.totalorder %s193_s22, %s193_s22  ;;  %p5583_p13 = scmp.lt.s32.totalorder %s5581_s8, %s5577_s26 }
 0x17c   :  { %p5584_p0 = por %p5583_p13, %p5582_p12 }
 0x17d   :  { %611 = dma.hbm_to_vmem [thread:$0]  %s7072_s12, 256, %s606_s16, [#allocation60], %s6149_s30, %s6149_s30, %s6150_s21  }
 0x17e   :  { %p5585_p1 = pnand %p5584_p0, %p5578_p11 }
 0x180   :  { %5588 = shalt.err (!%p5585_p1)
}
 0x181   :  { %s7073_s0 = sld [smem:[#allocation90_spill]]  ;;  %s6151_s25 = smov [#allocation7]  }
 0x182   :  { %s216_s28 = sshll.u32 %s6151_s25, 4  ;;  %s6152_s20 = smov [#allocation10]   ;;  %s217_s28 = int_to_ptr.vmem [resolvable:$true] %s216_s28 }
 0x183   :  { %s240_s14 = sshll.u32 %s6152_s20, 4  ;;  %s5597_s1 = scalar_lea.vmem %s217_s28, 16  ;;  %s241_s14 = int_to_ptr.vmem [resolvable:$true] %s240_s14 }
 0x184   :  { %p5598_p2 = scmp.ne.s32.totalorder %s217_s28, %s5597_s1  ;;  %s5601_s9 = scalar_lea.vmem %s217_s28, 32 }
 0x185   :  { %p5602_p3 = scmp.lt.s32.totalorder %s217_s28, %s217_s28  ;;  %p5603_p4 = scmp.lt.s32.totalorder %s5601_s9, %s5597_s1 }
 0x187   :  { %195 = dma.hbm_to_vmem [thread:$0]  %s7073_s0, 16, %s193_s22, [#allocation3]  }
 0x188   :  { %p5604_p5 = por %p5603_p4, %p5602_p3 }
 0x18a   :  { %p5605_p6 = pnand %p5604_p5, %p5598_p2 }
 0x18c   :  { %5608 = shalt.err (!%p5605_p6)
}
 0x18d   :  { %s7074_s27 = sld [smem:[#allocation93_spill]]  ;;  %s5617_s2 = scalar_lea.vmem %s241_s14, 16 }
 0x18e   :  { %p5618_p7 = scmp.ne.s32.totalorder %s241_s14, %s5617_s2  ;;  %s5621_s5 = scalar_lea.vmem %s241_s14, 32 }
 0x18f   :  { %p5622_p8 = scmp.lt.s32.totalorder %s241_s14, %s241_s14  ;;  %p5623_p9 = scmp.lt.s32.totalorder %s5621_s5, %s5617_s2 }
 0x191   :  { %p5624_p10 = por %p5623_p9, %p5622_p8 }
 0x193   :  { %219 = dma.hbm_to_vmem [thread:$0]  %s7074_s27, 16, %s217_s28, [#allocation6]  }
 0x194   :  { %p5625_p11 = pnand %p5624_p10, %p5618_p7 }
 0x196   :  { %5628 = shalt.err (!%p5625_p11)
}
 0x197   :  { %s7075_s7 = sld [smem:[#allocation96_spill]]  ;;  %s6153_s10 = smov [#allocation13]  }
 0x198   :  { %s264_s11 = sshll.u32 %s6153_s10, 4  ;;  %s6154_s6 = smov [#allocation16]   ;;  %s265_s11 = int_to_ptr.vmem [resolvable:$true] %s264_s11 }
 0x199   :  { %s286_s4 = sshll.u32 %s6154_s6, 4  ;;  %s5637_s29 = scalar_lea.vmem %s265_s11, 16  ;;  %s287_s4 = int_to_ptr.vmem [resolvable:$true] %s286_s4 }
 0x19a   :  { %p5638_p12 = scmp.ne.s32.totalorder %s265_s11, %s5637_s29  ;;  %s5641_s15 = scalar_lea.vmem %s265_s11, 32 }
 0x19b   :  { %p5642_p13 = scmp.lt.s32.totalorder %s265_s11, %s265_s11  ;;  %p5643_p0 = scmp.lt.s32.totalorder %s5641_s15, %s5637_s29 }
 0x19d   :  { %243 = dma.hbm_to_vmem [thread:$0]  %s7075_s7, 16, %s241_s14, [#allocation9]  }
 0x19e   :  { %p5644_p1 = por %p5643_p0, %p5642_p13 }
 0x1a0   :  { %p5645_p2 = pnand %p5644_p1, %p5638_p12 }
 0x1a2   :  { %5648 = shalt.err (!%p5645_p2)
}
 0x1a3   :  { %s7076_s19 = sld [smem:[#allocation99_spill]]  ;;  %s5657_s16 = scalar_lea.vmem %s287_s4, 16 }
 0x1a4   :  { %p5658_p3 = scmp.ne.s32.totalorder %s287_s4, %s5657_s16  ;;  %s5661_s18 = scalar_lea.vmem %s287_s4, 32 }
 0x1a5   :  { %p5662_p4 = scmp.lt.s32.totalorder %s287_s4, %s287_s4  ;;  %p5663_p5 = scmp.lt.s32.totalorder %s5661_s18, %s5657_s16 }
 0x1a7   :  { %p5664_p6 = por %p5663_p5, %p5662_p4 }
 0x1a9   :  { %267 = dma.hbm_to_vmem [thread:$0]  %s7076_s19, 16, %s265_s11, [#allocation12]  }
 0x1aa   :  { %p5665_p7 = pnand %p5664_p6, %p5658_p3 }
 0x1ac   :  { %5668 = shalt.err (!%p5665_p7)
}
 0x1ad   :  { %s7077_s22 = sld [smem:[#allocation101_spill]]  ;;  %s6155_s23 = smov [#allocation19]  }
 0x1ae   :  { %s308_s12 = sshll.u32 %s6155_s23, 4  ;;  %s6156_s26 = smov [#allocation22]   ;;  %s309_s12 = int_to_ptr.vmem [resolvable:$true] %s308_s12 }
 0x1af   :  { %s328_s8 = sshll.u32 %s6156_s26, 4  ;;  %s5677_s0 = scalar_lea.vmem %s309_s12, 16  ;;  %s329_s8 = int_to_ptr.vmem [resolvable:$true] %s328_s8 }
 0x1b0   :  { %p5678_p8 = scmp.ne.s32.totalorder %s309_s12, %s5677_s0  ;;  %s5681_s25 = scalar_lea.vmem %s309_s12, 32 }
 0x1b1   :  { %p5682_p9 = scmp.lt.s32.totalorder %s309_s12, %s309_s12  ;;  %p5683_p10 = scmp.lt.s32.totalorder %s5681_s25, %s5677_s0 }
 0x1b3   :  { %289 = dma.hbm_to_vmem [thread:$0]  %s7077_s22, 16, %s287_s4, [#allocation15]  }
 0x1b4   :  { %p5684_p11 = por %p5683_p10, %p5682_p9 }
 0x1b6   :  { %p5685_p12 = pnand %p5684_p11, %p5678_p8 }
 0x1b8   :  { %5688 = shalt.err (!%p5685_p12)
}
 0x1b9   :  { %s7078_s28 = sld [smem:[#allocation103_spill]]  ;;  %s5697_s20 = scalar_lea.vmem %s329_s8, 16 }
 0x1ba   :  { %p5698_p13 = scmp.ne.s32.totalorder %s329_s8, %s5697_s20  ;;  %s5701_s14 = scalar_lea.vmem %s329_s8, 32 }
 0x1bb   :  { %p5702_p0 = scmp.lt.s32.totalorder %s329_s8, %s329_s8  ;;  %p5703_p1 = scmp.lt.s32.totalorder %s5701_s14, %s5697_s20 }
 0x1bd   :  { %p5704_p2 = por %p5703_p1, %p5702_p0 }
 0x1bf   :  { %311 = dma.hbm_to_vmem [thread:$0]  %s7078_s28, 16, %s309_s12, [#allocation18]  }
 0x1c0   :  { %p5705_p3 = pnand %p5704_p2, %p5698_p13 }
 0x1c2   :  { %5708 = shalt.err (!%p5705_p3)
}
 0x1c3   :  { %s7079_s1 = sld [smem:[#allocation104_spill]]  ;;  %s6157_s9 = smov [#allocation25]  }
 0x1c4   :  { %s348_s27 = sshll.u32 %s6157_s9, 4  ;;  %s6158_s2 = smov [#allocation28]   ;;  %s349_s27 = int_to_ptr.vmem [resolvable:$true] %s348_s27 }
 0x1c5   :  { %s372_s5 = sshll.u32 %s6158_s2, 4  ;;  %s5717_s7 = scalar_lea.vmem %s349_s27, 16  ;;  %s373_s5 = int_to_ptr.vmem [resolvable:$true] %s372_s5 }
 0x1c6   :  { %p5718_p4 = scmp.ne.s32.totalorder %s349_s27, %s5717_s7  ;;  %s5721_s10 = scalar_lea.vmem %s349_s27, 32 }
 0x1c7   :  { %p5722_p5 = scmp.lt.s32.totalorder %s349_s27, %s349_s27  ;;  %p5723_p6 = scmp.lt.s32.totalorder %s5721_s10, %s5717_s7 }
 0x1c9   :  { %331 = dma.hbm_to_vmem [thread:$0]  %s7079_s1, 16, %s329_s8, [#allocation21]  }
 0x1ca   :  { %p5724_p7 = por %p5723_p6, %p5722_p5 }
 0x1cc   :  { %p5725_p8 = pnand %p5724_p7, %p5718_p4 }
 0x1ce   :  { %5728 = shalt.err (!%p5725_p8)
}
 0x1cf   :  { %s7080_s11 = sld [smem:[#allocation105_spill]]  ;;  %s5737_s6 = scalar_lea.vmem %s373_s5, 16 }
 0x1d0   :  { %p5738_p9 = scmp.ne.s32.totalorder %s373_s5, %s5737_s6  ;;  %s5741_s4 = scalar_lea.vmem %s373_s5, 32 }
 0x1d1   :  { %p5742_p10 = scmp.lt.s32.totalorder %s373_s5, %s373_s5  ;;  %p5743_p11 = scmp.lt.s32.totalorder %s5741_s4, %s5737_s6 }
 0x1d3   :  { %p5744_p12 = por %p5743_p11, %p5742_p10 }
 0x1d5   :  { %351 = dma.hbm_to_vmem [thread:$0]  %s7080_s11, 16, %s349_s27, [#allocation24]  }
 0x1d6   :  { %p5745_p13 = pnand %p5744_p12, %p5738_p9 }
 0x1d8   :  { %5748 = shalt.err (!%p5745_p13)
}
 0x1d9   :  { %s7081_s29 = sld [smem:[#allocation108_spill]]  ;;  %s6159_s15 = smov [#allocation31]  }
 0x1da   :  { %s396_s19 = sshll.u32 %s6159_s15, 4  ;;  %s6160_s16 = smov [#allocation34]   ;;  %s397_s19 = int_to_ptr.vmem [resolvable:$true] %s396_s19 }
 0x1db   :  { %s420_s18 = sshll.u32 %s6160_s16, 4  ;;  %s5757_s22 = scalar_lea.vmem %s397_s19, 16  ;;  %s421_s18 = int_to_ptr.vmem [resolvable:$true] %s420_s18 }
 0x1dc   :  { %p5758_p0 = scmp.ne.s32.totalorder %s397_s19, %s5757_s22  ;;  %s5761_s23 = scalar_lea.vmem %s397_s19, 32 }
 0x1dd   :  { %p5762_p1 = scmp.lt.s32.totalorder %s397_s19, %s397_s19  ;;  %p5763_p2 = scmp.lt.s32.totalorder %s5761_s23, %s5757_s22 }
 0x1df   :  { %375 = dma.hbm_to_vmem [thread:$0]  %s7081_s29, 16, %s373_s5, [#allocation27]  }
 0x1e0   :  { %p5764_p3 = por %p5763_p2, %p5762_p1 }
 0x1e2   :  { %p5765_p4 = pnand %p5764_p3, %p5758_p0 }
 0x1e4   :  { %5768 = shalt.err (!%p5765_p4)
}
 0x1e5   :  { %s7082_s12 = sld [smem:[#allocation111_spill]]  ;;  %s5777_s26 = scalar_lea.vmem %s421_s18, 16 }
 0x1e6   :  { %p5778_p5 = scmp.ne.s32.totalorder %s421_s18, %s5777_s26  ;;  %s5781_s8 = scalar_lea.vmem %s421_s18, 32 }
 0x1e7   :  { %p5782_p6 = scmp.lt.s32.totalorder %s421_s18, %s421_s18  ;;  %p5783_p7 = scmp.lt.s32.totalorder %s5781_s8, %s5777_s26 }
 0x1e9   :  { %p5784_p8 = por %p5783_p7, %p5782_p6 }
 0x1eb   :  { %399 = dma.hbm_to_vmem [thread:$0]  %s7082_s12, 16, %s397_s19, [#allocation30]  }
 0x1ec   :  { %p5785_p9 = pnand %p5784_p8, %p5778_p5 }
 0x1ee   :  { %5788 = shalt.err (!%p5785_p9)
}
 0x1ef   :  { %s7083_s0 = sld [smem:[#allocation114_spill]]  ;;  %s6161_s25 = smov [#allocation37]  }
 0x1f0   :  { %s441_s28 = sshll.u32 %s6161_s25, 4  ;;  %s6162_s20 = smov [#allocation40]   ;;  %s442_s28 = int_to_ptr.vmem [resolvable:$true] %s441_s28 }
 0x1f1   :  { %s464_s14 = sshll.u32 %s6162_s20, 4  ;;  %s5797_s1 = scalar_lea.vmem %s442_s28, 256  ;;  %s465_s14 = int_to_ptr.vmem [resolvable:$true] %s464_s14 }
 0x1f2   :  { %p5798_p10 = scmp.ne.s32.totalorder %s442_s28, %s5797_s1  ;;  %p5802_p11 = scmp.lt.s32.totalorder %s442_s28, %s442_s28 }
 0x1f3   :  { %p5803_p12 = scmp.lt.s32.totalorder %s5797_s1, %s5797_s1 }
 0x1f5   :  { %423 = dma.hbm_to_vmem [thread:$0]  %s7083_s0, 16, %s421_s18, [#allocation33]  }
 0x1f6   :  { %p5804_p13 = por %p5803_p12, %p5802_p11 }
 0x1f8   :  { %p5805_p0 = pnand %p5804_p13, %p5798_p10 }
 0x1fa   :  { %5808 = shalt.err (!%p5805_p0)
}
 0x1fb   :  { %s7084_s9 = sld [smem:[#allocation116_spill]]  ;;  %s5817_s27 = scalar_lea.vmem %s465_s14, 16 }
 0x1fc   :  { %p5818_p1 = scmp.ne.s32.totalorder %s465_s14, %s5817_s27  ;;  %s5821_s2 = scalar_lea.vmem %s465_s14, 32 }
 0x1fd   :  { %p5822_p2 = scmp.lt.s32.totalorder %s465_s14, %s465_s14  ;;  %p5823_p3 = scmp.lt.s32.totalorder %s5821_s2, %s5817_s27 }
 0x1ff   :  { %p5824_p4 = por %p5823_p3, %p5822_p2 }
 0x201   :  { %447 = dma.hbm_to_vmem [thread:$0]  %s7084_s9, 256, %s442_s28, [#allocation36], %s6149_s30, %s6149_s30, %s6150_s21  }
 0x202   :  { %p5825_p5 = pnand %p5824_p4, %p5818_p1 }
 0x204   :  { %5828 = shalt.err (!%p5825_p5)
}
 0x205   :  { %s7085_s5 = sld [smem:[#allocation117_spill]]  ;;  %s6163_s7 = smov [#allocation43]  }
 0x206   :  { %s486_s10 = sshll.u32 %s6163_s7, 4  ;;  %s6164_s11 = smov [#allocation46]   ;;  %s487_s10 = int_to_ptr.vmem [resolvable:$true] %s486_s10 }
 0x207   :  { %s506_s6 = sshll.u32 %s6164_s11, 4  ;;  %s5837_s4 = scalar_lea.vmem %s487_s10, 16  ;;  %s507_s6 = int_to_ptr.vmem [resolvable:$true] %s506_s6 }
 0x208   :  { %p5838_p6 = scmp.ne.s32.totalorder %s487_s10, %s5837_s4  ;;  %s5841_s29 = scalar_lea.vmem %s487_s10, 32 }
 0x209   :  { %p5842_p7 = scmp.lt.s32.totalorder %s487_s10, %s487_s10  ;;  %p5843_p8 = scmp.lt.s32.totalorder %s5841_s29, %s5837_s4 }
 0x20b   :  { %467 = dma.hbm_to_vmem [thread:$0]  %s7085_s5, 16, %s465_s14, [#allocation39]  }
 0x20c   :  { %p5844_p9 = por %p5843_p8, %p5842_p7 }
 0x20e   :  { %p5845_p10 = pnand %p5844_p9, %p5838_p6 }
 0x210   :  { %5848 = shalt.err (!%p5845_p10)
}
 0x211   :  { %s7086_s15 = sld [smem:[#allocation119_spill]]  ;;  %s5857_s19 = scalar_lea.vmem %s507_s6, 16 }
 0x212   :  { %p5858_p11 = scmp.ne.s32.totalorder %s507_s6, %s5857_s19  ;;  %s5861_s16 = scalar_lea.vmem %s507_s6, 32 }
 0x213   :  { %p5862_p12 = scmp.lt.s32.totalorder %s507_s6, %s507_s6  ;;  %p5863_p13 = scmp.lt.s32.totalorder %s5861_s16, %s5857_s19 }
 0x215   :  { %p5864_p0 = por %p5863_p13, %p5862_p12 }
 0x217   :  { %489 = dma.hbm_to_vmem [thread:$0]  %s7086_s15, 16, %s487_s10, [#allocation42]  }
 0x218   :  { %p5865_p1 = pnand %p5864_p0, %p5858_p11 }
 0x21a   :  { %5868 = shalt.err (!%p5865_p1)
}
 0x21b   :  { %s7087_s18 = sld [smem:[#allocation120_spill]]  ;;  %s6165_s22 = smov [#allocation49]  }
 0x21c   :  { %s526_s23 = sshll.u32 %s6165_s22, 4  ;;  %s6166_s12 = smov [#allocation52]   ;;  %s527_s23 = int_to_ptr.vmem [resolvable:$true] %s526_s23 }
 0x21d   :  { %s550_s26 = sshll.u32 %s6166_s12, 4  ;;  %s5877_s8 = scalar_lea.vmem %s527_s23, 16  ;;  %s551_s26 = int_to_ptr.vmem [resolvable:$true] %s550_s26 }
 0x21e   :  { %p5878_p2 = scmp.ne.s32.totalorder %s527_s23, %s5877_s8  ;;  %s5881_s0 = scalar_lea.vmem %s527_s23, 32 }
 0x21f   :  { %p5882_p3 = scmp.lt.s32.totalorder %s527_s23, %s527_s23  ;;  %p5883_p4 = scmp.lt.s32.totalorder %s5881_s0, %s5877_s8 }
 0x221   :  { %509 = dma.hbm_to_vmem [thread:$0]  %s7087_s18, 16, %s507_s6, [#allocation45]  }
 0x222   :  { %p5884_p5 = por %p5883_p4, %p5882_p3 }
 0x224   :  { %p5885_p6 = pnand %p5884_p5, %p5878_p2 }
 0x226   :  { %5888 = shalt.err (!%p5885_p6)
}
 0x227   :  { %s7088_s25 = sld [smem:[#allocation122_spill]]  ;;  %s5897_s28 = scalar_lea.vmem %s551_s26, 16 }
 0x228   :  { %p5898_p7 = scmp.ne.s32.totalorder %s551_s26, %s5897_s28  ;;  %s5901_s20 = scalar_lea.vmem %s551_s26, 32 }
 0x229   :  { %p5902_p8 = scmp.lt.s32.totalorder %s551_s26, %s551_s26  ;;  %p5903_p9 = scmp.lt.s32.totalorder %s5901_s20, %s5897_s28 }
 0x22b   :  { %p5904_p10 = por %p5903_p9, %p5902_p8 }
 0x22d   :  { %529 = dma.hbm_to_vmem [thread:$0]  %s7088_s25, 16, %s527_s23, [#allocation48]  }
 0x22e   :  { %p5905_p11 = pnand %p5904_p10, %p5898_p7 }
 0x230   :  { %5908 = shalt.err (!%p5905_p11)
}
 0x231   :  { %s7089_s14 = sld [smem:[#allocation126_spill]]  ;;  %s6167_s1 = smov [#allocation55]  }
 0x232   :  { %s571_s9 = sshll.u32 %s6167_s1, 4  ;;  %s6168_s27 = smov [#allocation58]   ;;  %s572_s9 = int_to_ptr.vmem [resolvable:$true] %s571_s9 }
 0x233   :  { %s596_s2 = sshll.u32 %s6168_s27, 4  ;;  %s5917_s5 = scalar_lea.vmem %s572_s9, 256  ;;  %s597_s2 = int_to_ptr.vmem [resolvable:$true] %s596_s2 }
 0x234   :  { %p5918_p12 = scmp.ne.s32.totalorder %s572_s9, %s5917_s5  ;;  %p5922_p13 = scmp.lt.s32.totalorder %s572_s9, %s572_s9 }
 0x235   :  { %p5923_p0 = scmp.lt.s32.totalorder %s5917_s5, %s5917_s5 }
 0x237   :  { %553 = dma.hbm_to_vmem [thread:$0]  %s7089_s14, 16, %s551_s26, [#allocation51]  }
 0x238   :  { %p5924_p1 = por %p5923_p0, %p5922_p13 }
 0x23a   :  { %p5925_p2 = pnand %p5924_p1, %p5918_p12 }
 0x23c   :  { %5928 = shalt.err (!%p5925_p2)
}
 0x23d   :  { %s7090_s7 = sld [smem:[#allocation129_spill]]  ;;  %s5937_s10 = scalar_lea.vmem %s597_s2, 16 }
 0x23e   :  { %p5938_p3 = scmp.ne.s32.totalorder %s597_s2, %s5937_s10  ;;  %s5941_s11 = scalar_lea.vmem %s597_s2, 32 }
 0x23f   :  { %p5942_p4 = scmp.lt.s32.totalorder %s597_s2, %s597_s2  ;;  %p5943_p5 = scmp.lt.s32.totalorder %s5941_s11, %s5937_s10 }
 0x241   :  { %p5944_p6 = por %p5943_p5, %p5942_p4 }
 0x243   :  { %577 = dma.hbm_to_vmem [thread:$0]  %s7090_s7, 256, %s572_s9, [#allocation54], %s6149_s30, %s6149_s30, %s6150_s21  }
 0x244   :  { %p5945_p7 = pnand %p5944_p6, %p5938_p3 }
 0x246   :  { %5948 = shalt.err (!%p5945_p7)
}
 0x247   :  { %s7091_s6 = sld [smem:[#allocation132_spill]]  ;;  %s6169_s4 = smov [#allocation61]  }
 0x248   :  { %s619_s29 = sshll.u32 %s6169_s4, 4  ;;  %s6170_s15 = smov [#allocation62]   ;;  %s620_s29 = int_to_ptr.vmem [resolvable:$true] %s619_s29 }
 0x249   :  { %s633_s19 = sshll.u32 %s6170_s15, 4  ;;  %s5957_s16 = scalar_lea.vmem %s620_s29, 256  ;;  %s634_s19 = int_to_ptr.vmem [resolvable:$true] %s633_s19 }
 0x24a   :  { %p5958_p8 = scmp.ne.s32.totalorder %s620_s29, %s5957_s16  ;;  %p5962_p9 = scmp.lt.s32.totalorder %s620_s29, %s620_s29 }
 0x24b   :  { %p5963_p10 = scmp.lt.s32.totalorder %s5957_s16, %s5957_s16 }
 0x24d   :  { %599 = dma.hbm_to_vmem [thread:$0]  %s7091_s6, 16, %s597_s2, [#allocation57]  }
 0x24e   :  { %p5964_p11 = por %p5963_p10, %p5962_p9 }
 0x250   :  { %p5965_p12 = pnand %p5964_p11, %p5958_p8 }
 0x252   :  { %5968 = shalt.err (!%p5965_p12)
}
 0x253   :  { %s7092_s18 = sld [smem:[#allocation135_spill]]  ;;  %s5977_s22 = scalar_lea.vmem %s634_s19, 256 }
 0x254   :  { %p5978_p13 = scmp.ne.s32.totalorder %s634_s19, %s5977_s22  ;;  %p5982_p0 = scmp.lt.s32.totalorder %s634_s19, %s634_s19 }
 0x255   :  { %p5983_p1 = scmp.lt.s32.totalorder %s5977_s22, %s5977_s22 }
 0x257   :  { %p5984_p2 = por %p5983_p1, %p5982_p0 }
 0x259   :  { %625 = dma.hbm_to_vmem [thread:$0]  %s7092_s18, 256, %s620_s29, [#allocation60], %s6149_s30, %s6149_s30, %s6150_s21  }
 0x25a   :  { %p5985_p3 = pnand %p5984_p2, %p5978_p13 }
 0x25c   :  { %5988 = shalt.err (!%p5985_p3)
}
 0x25d   :  { %s7093_s23 = sld [smem:[#allocation137_spill]] }
 0x263   :  { %639 = dma.hbm_to_vmem [thread:$0]  %s7093_s23, 256, %s634_s19, [#allocation63], %s6149_s30, %s6149_s30, %s6150_s21  }
 0x264   :  { %6009 = dma.done.wait [#allocation3], 16  }
 0x265   :  { %6010 = vsyncadd [#allocation3], 4294967280 }
 0x266   :  { %6011 = dma.done.wait [#allocation6], 32  }
 0x267   :  { %6012 = vsyncadd [#allocation6], 4294967264 }
 0x268   :  { %6013 = dma.done.wait [#allocation9], 32  }
 0x269   :  { %6014 = vsyncadd [#allocation9], 4294967264 }
 0x26a   :  { %6015 = dma.done.wait [#allocation12], 32  }
 0x26b   :  { %6016 = vsyncadd [#allocation12], 4294967264 }
 0x26c   :  { %6017 = dma.done.wait [#allocation15], 32  }
 0x26d   :  { %6018 = vsyncadd [#allocation15], 4294967264 }
 0x26e   :  { %6019 = dma.done.wait [#allocation18], 32  }
 0x26f   :  { %6020 = vsyncadd [#allocation18], 4294967264 }
 0x270   :  { %6021 = dma.done.wait [#allocation21], 80  }
 0x271   :  { %6022 = vsyncadd [#allocation21], 4294967216 }
 0x272   :  { %6023 = dma.done.wait [#allocation24], 32  }
 0x273   :  { %6024 = vsyncadd [#allocation24], 4294967264 }
 0x274   :  { %6025 = dma.done.wait [#allocation27], 32  }
 0x275   :  { %6026 = vsyncadd [#allocation27], 4294967264 }
 0x276   :  { %6027 = dma.done.wait [#allocation30], 32  }
 0x277   :  { %6028 = vsyncadd [#allocation30], 4294967264 }
 0x278   :  { %6029 = dma.done.wait [#allocation33], 32  }
 0x279   :  { %6030 = vsyncadd [#allocation33], 4294967264 }
 0x27a   :  { %6031 = dma.done.wait [#allocation36], 272  }
 0x27b   :  { %6032 = vsyncadd [#allocation36], 4294967024 }
 0x27c   :  { %6033 = dma.done.wait [#allocation39], 32  }
 0x27d   :  { %6034 = vsyncadd [#allocation39], 4294967264 }
 0x27e   :  { %6035 = dma.done.wait [#allocation42], 32  }
 0x27f   :  { %6036 = vsyncadd [#allocation42], 4294967264 }
 0x280   :  { %6037 = dma.done.wait [#allocation45], 80  }
 0x281   :  { %6038 = vsyncadd [#allocation45], 4294967216 }
 0x282   :  { %6039 = dma.done.wait [#allocation48], 32  }
 0x283   :  { %6040 = vsyncadd [#allocation48], 4294967264 }
 0x284   :  { %6041 = dma.done.wait [#allocation51], 32  }
 0x285   :  { %6042 = vsyncadd [#allocation51], 4294967264 }
 0x286   :  { %6043 = dma.done.wait [#allocation54], 272  }
 0x287   :  { %6044 = vsyncadd [#allocation54], 4294967024 }
 0x288   :  { %6045 = dma.done.wait [#allocation57], 32  }
 0x289   :  { %6046 = vsyncadd [#allocation57], 4294967264 }
 0x28a   :  { %6047 = dma.done.wait [#allocation60], 512  }
 0x28b   :  { %6048 = vsyncadd [#allocation60], 4294966784 }
 0x28c   :  { %6049 = dma.done.wait [#allocation63], 256  }
 0x28d   :  { %6050 = vsyncadd [#allocation63], 4294967040  ;;  %s7094_s30 = sld [smem:[#allocation89_spill]]  ;;  %v6171_v0 = vmov 0.0   ;;  %vm6172_vm0 = vmmov 0   ;;  %vm812_vm1 = vcmask 261120  }
 0x28e   :  { %s7095_s21 = sld [smem:[#allocation87_spill]]  ;;  %4553 = vmatprep.subr.bf16.mxu0 %v6171_v0  ;;  %4557 = vmatprep.mubr.msk.bf16.mxu0 %vm6172_vm0, %v6171_v0  ;;  %v4273_v13 = vld [vmem:[#allocation2] ss:$0 sm:$0xff]  ;;  %vm915_vm2 = vcmask 523264   ;;  %v4277_v43 = vld [vmem:[#allocation5] ss:$0 sm:$0xff] }
 0x28f   :  { %s7096_s12 = sld [smem:[#allocation88_spill]]  ;;  %4561 = vmatprep.subr.bf16.mxu1 %v6171_v0  ;;  %4569 = vmatprep.mubr.msk.bf16.mxu1 %vm6172_vm0, %v6171_v0  ;;  %vm1425_vm3 = vcmask 1043456   ;;  %vm1410_vm4 = vcmask 64512   ;;  %vm4074_vm5 = vcmask 1040384   ;;  %vm4160_vm6 = vcmask 9216  }
 0x290   :  { %s7097_s26 = sld [smem:[#allocation91_spill]] }
 0x291   :  { %s7098_s8 = sld [smem:[#allocation92_spill]] }
 0x292   :  { %s7099_s0 = sld [smem:[#allocation94_spill]] }
 0x293   :  { %v5015_v1 = vld [vmem:[%s7094_s30 + $0x8] sm:$0xff]   ;;  %v5016_v2 = vld [vmem:[%s7094_s30] sm:$0xff]   ;;  %s7100_s25 = sld [smem:[#allocation95_spill]] }
 0x294   :  { %4554 = vmatpush3.bf16.msra.mxu0 %v5015_v1  ;;  %v783_v3 = vld [vmem:[%s7095_s21] sm:$0xff]  ;;  %v784_v4 = vld [vmem:[%s7095_s21 + $0x8] sm:$0xff]  ;;  %s7101_s28 = sld [smem:[#allocation97_spill]] }
 0x295   :  { %v785_v5 = vld [vmem:[%s7096_s12] sm:$0xff]  ;;  %4555 = vmatprep.subr.bf16.mxu0 %v6171_v0  ;;  %s7102_s20 = sld [smem:[#allocation98_spill]] }
 0x296   :  { %v6631_v6 = vadd.f32 %v785_v5, %v783_v3  ;;  %v6633_v7 = vadd.f32 %v785_v5, %v784_v4  ;;  %v5017_v9 = vld [vmem:[%s7097_s26 + $0x18] sm:$0xff]   ;;  %v5018_v10 = vld [vmem:[%s7097_s26 + $0x10] sm:$0xff]   ;;  %v5019_v11 = vld [vmem:[%s7097_s26 + $0x8] sm:$0xff]   ;;  %s7103_s14 = sld [smem:[#allocation100_spill]] }
 0x297   :  { %4562 = vmatpush3.bf16.msra.mxu1 %v5017_v9  ;;  %v5020_v12 = vld [vmem:[%s7097_s26] sm:$0xff]   ;;  %v5021_v39 = vld [vmem:[%s7098_s8 + $0x18] sm:$0xff]   ;;  %v5022_v40 = vld [vmem:[%s7098_s8 + $0x10] sm:$0xff]   ;;  %s7104_s1 = sld [smem:[#allocation102_spill]] }
 0x298   :  { %v788_v8 = vpack.c.bf16 %v6633_v7, %v6631_v6  ;;  %4556 = vmatpush3.bf16.msra.mxu0 %v5016_v2  ;;  %4563 = vmatprep.subr.bf16.mxu1 %v6171_v0  ;;  %v5023_v41 = vld [vmem:[%s7098_s8 + $0x8] sm:$0xff]   ;;  %v5024_v42 = vld [vmem:[%s7098_s8] sm:$0xff]   ;;  %s7105_s9 = sld [smem:[#allocation106_spill]] }
 0x299   :  { %4573 = vmatprep.subr.bf16.mxu0 %v6171_v0  ;;  %v5026_v9 = vld [vmem:[%s7099_s0] sm:$0xff]   ;;  %s7106_s27 = sld [smem:[#allocation107_spill]] }
 0x29a   :  { %s7107_s2 = sld [smem:[#allocation109_spill]] }
 0x29b   :  { %4558 = vmatmul.mubr.msk.bf16.vlgmr.msra.gmra.mxu0 %vm812_vm1, %v788_v8  ;;  %4564 = vmatpush3.bf16.msra.mxu1 %v5018_v10  ;;  %v5025_v8 = vld [vmem:[%s7099_s0 + $0x8] sm:$0xff]   ;;  %v4283_v10 = vld [vmem:[#allocation7] ss:$0 sm:$0xff]  ;;  %s7108_s5 = sld [smem:[#allocation110_spill]] }
 0x29c   :  { %4581 = vmatprep.mubr.msk.bf16.mxu0 %vm6172_vm0, %v6171_v0  ;;  %4565 = vmatprep.subr.bf16.mxu1 %v6171_v0  ;;  %s7109_s7 = sld [smem:[#allocation112_spill]] }
 0x29d   :  { %4574 = vmatpush3.bf16.msra.mxu0 %v5021_v39  ;;  %v5030_v39 = vld [vmem:[%s7101_s28] sm:$0xff]   ;;  %s7110_s10 = sld [smem:[#allocation113_spill]] }
 0x29e   :  { %4575 = vmatprep.subr.bf16.mxu0 %v6171_v0  ;;  %s7111_s11 = sld [smem:[#allocation115_spill]] }
 0x29f   :  { %4566 = vmatpush3.bf16.msra.mxu1 %v5019_v11  ;;  %s7112_s6 = sld [smem:[#allocation118_spill]] }
 0x2a0   :  { %4567 = vmatprep.subr.bf16.mxu1 %v6171_v0  ;;  %s7113_s4 = sld [smem:[#allocation123_spill]] }
 0x2a1   :  { %4576 = vmatpush3.bf16.msra.mxu0 %v5022_v40  ;;  %v4289_v40 = vld [vmem:[#allocation8] ss:$0 sm:$0xff]  ;;  %s7114_s29 = sld [smem:[#allocation125_spill]] }
 0x2a2   :  { %4577 = vmatprep.subr.bf16.mxu0 %v6171_v0  ;;  %s7115_s15 = sld [smem:[#allocation127_spill]] }
 0x2a3   :  { %4568 = vmatpush3.bf16.msra.mxu1 %v5020_v12  ;;  %s7116_s19 = sld [smem:[#allocation131_spill]] }
 0x2a4   :  { %4585 = vmatprep.subr.bf16.mxu1 %v6171_v0  ;;  %s7117_s16 = sld [smem:[#allocation134_spill]] }
 0x2a5   :  { %4578 = vmatpush3.bf16.msra.mxu0 %v5023_v41  ;;  %s7118_s18 = sld [smem:[#allocation136_spill]] }
 0x2a6   :  { %4579 = vmatprep.subr.bf16.mxu0 %v6171_v0  ;;  %s7119_s22 = sld [smem:[#allocation138_spill]] }
 0x2a7   :  { %s7120_s23 = sld [smem:[#allocation141_spill]] }
 0x2a8   :  { %s7121_s30 = sld [smem:[#allocation139_spill]] }
 0x2a9   :  { %4580 = vmatpush3.bf16.msra.mxu0 %v5024_v42  ;;  %s7122_s21 = sld [smem:[#allocation140_spill]] }
 0x2aa   :  { %4593 = vmatprep.subr.bf16.mxu0 %v6171_v0  ;;  %s7123_s12 = sld [smem:[#allocation143_spill]] }
 0x2ab   :  { %s7124_s26 = sld [smem:[#allocation142_spill]] }
 0x2ac   :  { %s7125_s8 = sld [smem:[#allocation144_spill]] }
 0x2ad   :  { %s7126_s0 = sld [smem:[#allocation145_spill]] }
 0x35b   :  { %v850_v14 = vpop.f32.mrf.mxu0 }
 0x35c   :  { %v851_v15 = vadd.f32 %v4273_v13, %v850_v14 }
 0x35d   :  { %v4559_v16 = vpop.f32.mrf.mxu0 }
 0x35e   :  { %v857_v17 = vmul.f32 %v851_v15, %v851_v15 }
 0x35f   :  { %v853_v18 = vpop.f32.mrf.mxu0 }
 0x360   :  { %v859_v19 = vmul.f32 %v857_v17, %v851_v15  ;;  %v854_v20 = vadd.f32 %v4273_v13, %v853_v18 }
 0x361   :  { %v4560_v21 = vpop.f32.mrf.mxu0 }
 0x362   :  { %v861_v22 = vmul.f32 0.044715, %v859_v19  ;;  %v858_v23 = vmul.f32 %v854_v20, %v854_v20 }
 0x364   :  { %v863_v24 = vadd.f32 %v861_v22, %v851_v15  ;;  %v860_v25 = vmul.f32 %v858_v23, %v854_v20 }
 0x366   :  { %v865_v26 = vmul.f32 0.7978846, %v863_v24  ;;  %v862_v27 = vmul.f32 0.044715, %v860_v25 }
 0x368   :  { %5081 = vtanh.f32 %v865_v26  ;;  %v864_v28 = vadd.f32 %v862_v27, %v854_v20 }
 0x36a   :  { %v866_v29 = vmul.f32 0.7978846, %v864_v28 }
 0x36c   :  { %5083 = vtanh.f32 %v866_v29 }
 0x375   :  { %v5082_v30 = vpop.eup %5081 }
 0x376   :  { %v869_v31 = vadd.f32 1.0, %v5082_v30 }
 0x378   :  { %v871_v33 = vmul.f32 0.5, %v869_v31 }
 0x379   :  { %v5084_v32 = vpop.eup %5083 }
 0x37a   :  { %v870_v34 = vadd.f32 1.0, %v5084_v32  ;;  %v873_v36 = vmul.f32 %v871_v33, %v851_v15 }
 0x37c   :  { %v872_v35 = vmul.f32 0.5, %v870_v34 }
 0x37e   :  { %v874_v37 = vmul.f32 %v872_v35, %v854_v20 }
 0x380   :  { %v875_v38 = vpack.c.bf16 %v874_v37, %v873_v36  ;;  %v5027_v36 = vld [vmem:[%s7100_s25 + $0x8] sm:$0xff]  }
 0x381   :  { %v5028_v37 = vld [vmem:[%s7101_s28 + $0x8] sm:$0xff]  }
 0x382   :  { %4570 = vmatmul.mubr.msk.bf16.vlgmr.msra.gmra.mxu1 %vm915_vm2, %v875_v38  ;;  %v5029_v38 = vld [vmem:[%s7100_s25] sm:$0xff]  }
 0x383   :  { %4589 = vmatprep.mubr.msk.bf16.mxu1 %vm6172_vm0, %v6171_v0  ;;  %4586 = vmatpush3.bf16.msra.mxu1 %v5025_v8 }
 0x384   :  { %4587 = vmatprep.subr.bf16.mxu1 %v6171_v0 }
 0x387   :  { %4588 = vmatpush3.bf16.msra.mxu1 %v5026_v9 }
 0x388   :  { %4601 = vmatprep.subr.bf16.mxu1 %v6171_v0 }
 0x442   :  { %v953_v44 = vpop.f32.mrf.mxu1 }
 0x443   :  { %v954_v45 = vadd.f32 %v4277_v43, %v953_v44 }
 0x444   :  { %v4571_v46 = vpop.f32.mrf.mxu1 }
 0x445   :  { %v960_v47 = vmul.f32 %v954_v45, %v954_v45 }
 0x446   :  { %v956_v48 = vpop.f32.mrf.mxu1 }
 0x447   :  { %v962_v49 = vmul.f32 %v960_v47, %v954_v45  ;;  %v957_v50 = vadd.f32 %v4277_v43, %v956_v48 }
 0x448   :  { %v4572_v51 = vpop.f32.mrf.mxu1 }
 0x449   :  { %v964_v52 = vmul.f32 0.044715, %v962_v49  ;;  %v961_v53 = vmul.f32 %v957_v50, %v957_v50 }
 0x44b   :  { %v966_v54 = vadd.f32 %v964_v52, %v954_v45  ;;  %v963_v55 = vmul.f32 %v961_v53, %v957_v50 }
 0x44d   :  { %v968_v56 = vmul.f32 0.7978846, %v966_v54  ;;  %v965_v57 = vmul.f32 0.044715, %v963_v55 }
 0x44f   :  { %5085 = vtanh.f32 %v968_v56  ;;  %v967_v58 = vadd.f32 %v965_v57, %v957_v50 }
 0x451   :  { %v969_v59 = vmul.f32 0.7978846, %v967_v58 }
 0x453   :  { %5087 = vtanh.f32 %v969_v59 }
 0x45c   :  { %v5086_v60 = vpop.eup %5085 }
 0x45d   :  { %v972_v61 = vadd.f32 1.0, %v5086_v60 }
 0x45f   :  { %v974_v63 = vmul.f32 0.5, %v972_v61 }
 0x460   :  { %v5088_v62 = vpop.eup %5087 }
 0x461   :  { %v973_v1 = vadd.f32 1.0, %v5088_v62  ;;  %v976_v3 = vmul.f32 %v974_v63, %v954_v45 }
 0x463   :  { %v975_v2 = vmul.f32 0.5, %v973_v1 }
 0x465   :  { %v977_v4 = vmul.f32 %v975_v2, %v957_v50  ;;  %v5031_v2 = vld [vmem:[%s7102_s20 + $0x8] sm:$0xff]  }
 0x467   :  { %v978_v5 = vpack.c.bf16 %v977_v4, %v976_v3  ;;  %v5032_v4 = vld [vmem:[%s7102_s20] sm:$0xff]  }
 0x469   :  { %4582 = vmatmul.mubr.msk.bf16.vlgmr.msra.gmra.mxu0 %vm915_vm2, %v978_v5  ;;  %v4297_v5 = vld [vmem:[#allocation11] ss:$0 sm:$0xff] }
 0x46a   :  { %4597 = vmatprep.mubr.msk.bf16.mxu0 %vm6172_vm0, %v6171_v0  ;;  %4594 = vmatpush3.bf16.msra.mxu0 %v5027_v36 }
 0x46b   :  { %4595 = vmatprep.subr.bf16.mxu0 %v6171_v0 }
 0x46e   :  { %4596 = vmatpush3.bf16.msra.mxu0 %v5029_v38 }
 0x46f   :  { %4609 = vmatprep.subr.bf16.mxu0 %v6171_v0 }
 0x529   :  { %v1055_v11 = vpop.f32.mrf.mxu0 }
 0x52a   :  { %v1056_v12 = vadd.f32 %v4283_v10, %v1055_v11 }
 0x52b   :  { %v4583_v13 = vpop.f32.mrf.mxu0 }
 0x52c   :  { %v1062_v14 = vmul.f32 %v1056_v12, %v1056_v12 }
 0x52d   :  { %v1058_v15 = vpop.f32.mrf.mxu0 }
 0x52e   :  { %v1064_v16 = vmul.f32 %v1062_v14, %v1056_v12  ;;  %v1059_v17 = vadd.f32 %v4283_v10, %v1058_v15  ;;  %v4293_v14 = vld [vmem:[#allocation10] ss:$0 sm:$0xff] }
 0x52f   :  { %v4584_v18 = vpop.f32.mrf.mxu0 }
 0x530   :  { %v1066_v19 = vmul.f32 0.044715, %v1064_v16  ;;  %v1063_v20 = vmul.f32 %v1059_v17, %v1059_v17 }
 0x532   :  { %v1068_v21 = vadd.f32 %v1066_v19, %v1056_v12  ;;  %v1065_v22 = vmul.f32 %v1063_v20, %v1059_v17 }
 0x534   :  { %v1070_v23 = vmul.f32 0.7978846, %v1068_v21  ;;  %v1067_v24 = vmul.f32 0.044715, %v1065_v22  ;;  %v4301_v21 = vld [vmem:[#allocation13] ss:$0 sm:$0xff] }
 0x536   :  { %5089 = vtanh.f32 %v1070_v23  ;;  %v1069_v25 = vadd.f32 %v1067_v24, %v1059_v17 }
 0x538   :  { %v1071_v26 = vmul.f32 0.7978846, %v1069_v25 }
 0x53a   :  { %5091 = vtanh.f32 %v1071_v26 }
 0x543   :  { %v5090_v27 = vpop.eup %5089 }
 0x544   :  { %v1074_v28 = vadd.f32 1.0, %v5090_v27 }
 0x546   :  { %v1076_v30 = vmul.f32 0.5, %v1074_v28 }
 0x547   :  { %v5092_v29 = vpop.eup %5091 }
 0x548   :  { %v1075_v31 = vadd.f32 1.0, %v5092_v29  ;;  %v1078_v33 = vmul.f32 %v1076_v30, %v1056_v12 }
 0x54a   :  { %v1077_v32 = vmul.f32 0.5, %v1075_v31 }
 0x54c   :  { %v1079_v34 = vmul.f32 %v1077_v32, %v1059_v17 }
 0x54e   :  { %v1080_v35 = vpack.c.bf16 %v1079_v34, %v1078_v33 }
 0x550   :  { %4590 = vmatmul.mubr.msk.bf16.vlgmr.msra.gmra.mxu1 %vm812_vm1, %v1080_v35 }
 0x551   :  { %4605 = vmatprep.mubr.msk.bf16.mxu1 %vm6172_vm0, %v6171_v0  ;;  %4602 = vmatpush3.bf16.msra.mxu1 %v5028_v37 }
 0x552   :  { %4603 = vmatprep.subr.bf16.mxu1 %v6171_v0 }
 0x555   :  { %4604 = vmatpush3.bf16.msra.mxu1 %v5030_v39 }
 0x556   :  { %4617 = vmatprep.subr.bf16.mxu1 %v6171_v0 }
 0x610   :  { %v1141_v41 = vpop.f32.mrf.mxu1 }
 0x611   :  { %v1142_v42 = vadd.f32 %v4289_v40, %v1141_v41 }
 0x612   :  { %v4591_v43 = vpop.f32.mrf.mxu1 }
 0x613   :  { %v1148_v44 = vmul.f32 %v1142_v42, %v1142_v42 }
 0x614   :  { %v1144_v45 = vpop.f32.mrf.mxu1 }
 0x615   :  { %v1150_v46 = vmul.f32 %v1148_v44, %v1142_v42  ;;  %v1145_v47 = vadd.f32 %v4289_v40, %v1144_v45 }
 0x616   :  { %v4592_v48 = vpop.f32.mrf.mxu1 }
 0x617   :  { %v1152_v49 = vmul.f32 0.044715, %v1150_v46  ;;  %v1149_v50 = vmul.f32 %v1145_v47, %v1145_v47 }
 0x619   :  { %v1154_v51 = vadd.f32 %v1152_v49, %v1142_v42  ;;  %v1151_v52 = vmul.f32 %v1149_v50, %v1145_v47 }
 0x61b   :  { %v1156_v53 = vmul.f32 0.7978846, %v1154_v51  ;;  %v1153_v54 = vmul.f32 0.044715, %v1151_v52 }
 0x61d   :  { %5093 = vtanh.f32 %v1156_v53  ;;  %v1155_v55 = vadd.f32 %v1153_v54, %v1145_v47 }
 0x61f   :  { %v1157_v56 = vmul.f32 0.7978846, %v1155_v55 }
 0x621   :  { %5095 = vtanh.f32 %v1157_v56 }
 0x62a   :  { %v5094_v57 = vpop.eup %5093 }
 0x62b   :  { %v1160_v58 = vadd.f32 1.0, %v5094_v57 }
 0x62d   :  { %v1162_v60 = vmul.f32 0.5, %v1160_v58 }
 0x62e   :  { %v5096_v59 = vpop.eup %5095 }
 0x62f   :  { %v1161_v61 = vadd.f32 1.0, %v5096_v59  ;;  %v1164_v63 = vmul.f32 %v1162_v60, %v1142_v42  ;;  %v5033_v60 = vld [vmem:[%s7103_s14 + $0x8] sm:$0xff]  }
 0x631   :  { %v1163_v62 = vmul.f32 0.5, %v1161_v61  ;;  %v5034_v61 = vld [vmem:[%s7103_s14] sm:$0xff]  }
 0x633   :  { %v1165_v1 = vmul.f32 %v1163_v62, %v1145_v47 }
 0x635   :  { %v1166_v3 = vpack.c.bf16 %v1165_v1, %v1164_v63 }
 0x637   :  { %4598 = vmatmul.mubr.msk.bf16.vlgmr.msra.gmra.mxu0 %vm812_vm1, %v1166_v3  ;;  %4606 = vmatmul.mubr.msk.bf16.vlgmr.msra.gmra.mxu1 %vm812_vm1, %v1166_v3 }
 0x638   :  { %4610 = vmatpush3.bf16.msra.mxu0 %v5031_v2  ;;  %4613 = vmatprep.mubr.msk.bf16.mxu0 %vm6172_vm0, %v6171_v0 }
 0x639   :  { %4611 = vmatprep.subr.bf16.mxu0 %v6171_v0  ;;  %4619 = vmatprep.mubr.msk.bf16.mxu1 %vm6172_vm0, %v6171_v0 }
 0x63c   :  { %4612 = vmatpush3.bf16.msra.mxu0 %v5032_v4 }
 0x63d   :  { %4623 = vmatprep.subr.bf16.mxu0 %v6171_v0 }
 0x63f   :  { %4614 = vmatmul.mubr.msk.bf16.vlgmr.msra.gmra.mxu0 %vm812_vm1, %v1166_v3 }
 0x640   :  { %4625 = vmatprep.mubr.msk.bf16.mxu0 %vm6172_vm0, %v6171_v0 }
 0x6f7   :  { %v1227_v8 = vpop.f32.mrf.mxu0  ;;  %v1291_v9 = vpop.f32.mrf.mxu1 }
 0x6f8   :  { %v1292_v10 = vadd.f32 %v4297_v5, %v1291_v9  ;;  %v1228_v22 = vadd.f32 %v4293_v14, %v1227_v8 }
 0x6f9   :  { %v4599_v11 = vpop.f32.mrf.mxu0  ;;  %v4607_v12 = vpop.f32.mrf.mxu1 }
 0x6fa   :  { %v1363_v13 = vpack.c.bf16 %v1292_v10, %v1292_v10  ;;  %v1362_v27 = vpack.c.bf16 %v1228_v22, %v1228_v22 }
 0x6fb   :  { %v1230_v15 = vpop.f32.mrf.mxu0  ;;  %v1294_v16 = vpop.f32.mrf.mxu1 }
 0x6fc   :  { %v1368_v17 = vsel %vm812_vm1, %v1363_v13, 0  ;;  %v1295_v18 = vadd.f32 %v4297_v5, %v1294_v16  ;;  %v1231_v34 = vadd.f32 %v4293_v14, %v1230_v15  ;;  %v4309_v16 = vld [vmem:[#allocation14] ss:$0 sm:$0xff] }
 0x6fd   :  { %v4600_v19 = vpop.f32.mrf.mxu0  ;;  %v4608_v20 = vpop.f32.mrf.mxu1  ;;  %4618 = vmatpush3.bf16.xpose.msra.mxu1 %v1368_v17 }
 0x6fe   :  { %4629 = vmatprep.subr.bf16.mxu1 %v6171_v0  ;;  %v1472_v24 = vpack.c.bf16 %v1295_v18, %v1295_v18  ;;  %v1471_v35 = vpack.c.bf16 %v1231_v34, %v1231_v34 }
 0x6ff   :  { %v1355_v23 = vpop.f32.mrf.mxu0 }
 0x700   :  { %v1356_v25 = vadd.f32 %v4301_v21, %v1355_v23  ;;  %v1477_v30 = vsel %vm812_vm1, %v1472_v24, 0 }
 0x701   :  { %v4615_v26 = vpop.f32.mrf.mxu0 }
 0x702   :  { %v1421_v28 = vpack.c.bf16 %v1356_v25, %v1356_v25 }
 0x703   :  { %v1358_v29 = vpop.f32.mrf.mxu0 }
 0x704   :  { %v1427_v31 = vsel %vm1425_vm3, %v1421_v28, 0  ;;  %v1359_v32 = vadd.f32 %v4301_v21, %v1358_v29  ;;  %4620 = vmatmul.mubr.msk.bf16.vlgmr.msra.gmra.mxu1 %vm812_vm1, %v1362_v27 }
 0x705   :  { %v4616_v33 = vpop.f32.mrf.mxu0  ;;  %4624 = vmatpush3.bf16.msra.mxu0 %v1427_v31  ;;  %4630 = vmatpush3.bf16.xpose.msra.mxu1 %v1477_v30 }
 0x706   :  { %4631 = vmatprep.mubr.msk.bf16.mxu1 %vm6172_vm0, %v6171_v0  ;;  %4635 = vmatprep.subr.bf16.mxu0 %v6171_v0  ;;  %v1529_v52 = vpack.c.bf16 %v1359_v32, %v1359_v32 }
 0x707   :  { %4641 = vmatprep.subr.bf16.mxu1 %v6171_v0 }
 0x708   :  { %v1534_v56 = vsel %vm1425_vm3, %v1529_v52, 0 }
 0x70c   :  { %4632 = vmatmul.mubr.msk.bf16.vlgmr.msra.gmra.mxu1 %vm812_vm1, %v1471_v35 }
 0x70d   :  { %4645 = vmatprep.mubr.msk.bf16.mxu1 %vm6172_vm0, %v6171_v0  ;;  %4642 = vmatpush3.bf16.msra.mxu1 %v5033_v60 }
 0x70e   :  { %4643 = vmatprep.subr.bf16.mxu1 %v6171_v0 }
 0x711   :  { %4644 = vmatpush3.bf16.msra.mxu1 %v5034_v61 }
 0x712   :  { %4657 = vmatprep.subr.bf16.mxu1 %v6171_v0 }
 0x7c4   :  { %v1404_v36 = vpop.f32.mrf.mxu1 }
 0x7c5   :  { %v1411_v37 = vsel %vm1410_vm4, %v1404_v36, -inf }
 0x7c6   :  { %1412 = vmax.xlane.f32.xlu0 %v1411_v37  ;;  %v4621_v38 = vpop.f32.mrf.mxu1 }
 0x7c8   :  { %v1407_v39 = vpop.f32.mrf.mxu1 }
 0x7ca   :  { %v4622_v40 = vpop.f32.mrf.mxu1 }
 0x7cc   :  { %v1513_v41 = vpop.f32.mrf.mxu1 }
 0x7cd   :  { %v1519_v42 = vsel %vm1410_vm4, %v1513_v41, -inf }
 0x7ce   :  { %1520 = vmax.xlane.f32.xlu0 %v1519_v42  ;;  %v4633_v43 = vpop.f32.mrf.mxu1 }
 0x7d0   :  { %v1516_v44 = vpop.f32.mrf.mxu1 }
 0x7d2   :  { %v4634_v45 = vpop.f32.mrf.mxu1 }
 0x7d3   :  { %v4313_v45 = vld [vmem:[#allocation16] ss:$0 sm:$0xff] }
 0x84f   :  { %v1413_v46 = vpop.xlane.xlu0 %1412 }
 0x850   :  { %v1414_v47 = vsub.f32 %v1404_v36, %v1413_v46  ;;  %v5035_v36 = vld [vmem:[%s7104_s1 + $0x8] sm:$0xff]  }
 0x852   :  { %v1415_v48 = vmul.f32 1.442695, %v1414_v47 }
 0x854   :  { %5097 = vpow2.f32 %v1415_v48 }
 0x857   :  { %v1521_v49 = vpop.xlane.xlu0 %1520 }
 0x858   :  { %v1522_v50 = vsub.f32 %v1513_v41, %v1521_v49  ;;  %v4314_v49 = vld [vmem:[#allocation17] ss:$0 sm:$0xff] }
 0x85a   :  { %v1523_v51 = vmul.f32 1.442695, %v1522_v50 }
 0x85c   :  { %5099 = vpow2.f32 %v1523_v51 }
 0x861   :  { %v5098_v53 = vpop.eup %5097 }
 0x862   :  { %v1417_v54 = vsel %vm1410_vm4, %v5098_v53, 0.0  ;;  %v1420_v55 = vpack.c.bf16 %v5098_v53, %v5098_v53 }
 0x863   :  { %1418 = vadd.xlane.f32.xlu1 %v1417_v54  ;;  %v1780_v54 = vld [vmem:[#allocation20] sm:$0xf] }
 0x864   :  { %4626 = vmatmul.mubr.msk.bf16.vlgmr.msra.gmra.mxu0 %vm1410_vm4, %v1420_v55  ;;  %v1792_v55 = vsel %vm1425_vm3, %v1780_v54, 0  ;;  %v4322_v54 = vld [vmem:[#allocation25] ss:$0 sm:$0xff] }
 0x865   :  { %4636 = vmatpush3.bf16.msra.mxu0 %v1534_v56  ;;  %4637 = vmatprep.mubr.msk.bf16.mxu0 %vm6172_vm0, %v6171_v0  ;;  %v4315_v56 = vld [vmem:[#allocation19] ss:$0 sm:$0xff] }
 0x866   :  { %4649 = vmatprep.subr.bf16.mxu0 %v6171_v0 }
 0x869   :  { %v5100_v57 = vpop.eup %5099 }
 0x86a   :  { %v1525_v58 = vsel %vm1410_vm4, %v5100_v57, 0.0  ;;  %v1528_v59 = vpack.c.bf16 %v5100_v57, %v5100_v57 }
 0x86b   :  { %1526 = vadd.xlane.f32.xlu1 %v1525_v58 }
 0x86c   :  { %4638 = vmatmul.mubr.msk.bf16.vlgmr.msra.gmra.mxu0 %vm1410_vm4, %v1528_v59 }
 0x86d   :  { %4653 = vmatprep.mubr.msk.bf16.mxu0 %vm6172_vm0, %v6171_v0  ;;  %4650 = vmatpush3.bf16.msra.mxu0 %v5035_v36 }
 0x86e   :  { %4651 = vmatprep.subr.bf16.mxu0 %v6171_v0 }
 0x8ec   :  { %v1419_v62 = vpop.xlane.xlu1 %1418 }
 0x8ed   :  { %5101 = vrcp.f32 %v1419_v62 }
 0x8f4   :  { %v1527_v63 = vpop.xlane.xlu1 %1526 }
 0x8f5   :  { %5103 = vrcp.f32 %v1527_v63 }
 0x8fa   :  { %v5102_v5 = vpop.eup %5101 }
 0x902   :  { %v5104_v8 = vpop.eup %5103 }
 0x924   :  { %v1463_v1 = vpop.f32.mrf.mxu0 }
 0x925   :  { %v1470_v10 = vmul.f32 %v5102_v5, %v1463_v1 }
 0x926   :  { %v4627_v2 = vpop.f32.mrf.mxu0 }
 0x928   :  { %v1466_v3 = vpop.f32.mrf.mxu0 }
 0x92a   :  { %v4628_v4 = vpop.f32.mrf.mxu0 }
 0x92c   :  { %v1570_v9 = vpop.f32.mrf.mxu0 }
 0x92d   :  { %v1577_v11 = vmul.f32 %v5104_v8, %v1570_v9 }
 0x92e   :  { %v4639_v12 = vpop.f32.mrf.mxu0 }
 0x92f   :  { %v1578_v13 = vpack.c.bf16 %v1577_v11, %v1470_v10 }
 0x930   :  { %v1573_v14 = vpop.f32.mrf.mxu0 }
 0x931   :  { %4646 = vmatmul.mubr.msk.bf16.vlgmr.msra.gmra.mxu1 %vm812_vm1, %v1578_v13 }
 0x932   :  { %v4640_v15 = vpop.f32.mrf.mxu0  ;;  %4659 = vmatprep.mubr.msk.bf16.mxu1 %vm6172_vm0, %v6171_v0  ;;  %4658 = vmatpush3.bf16.msra.mxu1 %v1792_v55 }
 0x933   :  { %4671 = vmatprep.subr.bf16.mxu1 %v6171_v0 }
 0x9f1   :  { %v1639_v17 = vpop.f32.mrf.mxu1 }
 0x9f2   :  { %v1640_v18 = vadd.f32 %v4309_v16, %v1639_v17 }
 0x9f3   :  { %v4647_v19 = vpop.f32.mrf.mxu1 }
 0x9f4   :  { %v1646_v20 = vadd.f32 %v1640_v18, %v6631_v6 }
 0x9f5   :  { %v1642_v21 = vpop.f32.mrf.mxu1 }
 0x9f6   :  { %v1643_v22 = vadd.f32 %v4309_v16, %v1642_v21  ;;  %v1650_v23 = vsel %vm812_vm1, %v1646_v20, 0.0  ;;  %v4319_v21 = vld [vmem:[#allocation22] ss:$0 sm:$0xff] }
 0x9f7   :  { %1651 = vadd.xlane.f32.xlu0 %v1650_v23  ;;  %v4648_v24 = vpop.f32.mrf.mxu1 }
 0x9f8   :  { %v1647_v25 = vadd.f32 %v1643_v22, %v6633_v7  ;;  %v5036_v7 = vld [vmem:[%s7104_s1] sm:$0xff]  }
 0x9f9   :  { %4652 = vmatpush3.bf16.msra.mxu0 %v5036_v7 }
 0x9fa   :  { %v1653_v26 = vsel %vm812_vm1, %v1647_v25, 0.0  ;;  %4663 = vmatprep.subr.bf16.mxu0 %v6171_v0 }
 0x9fb   :  { %1654 = vadd.xlane.f32.xlu1 %v1653_v26 }
 0xa80   :  { %v1652_v27 = vpop.xlane.xlu0 %1651 }
 0xa81   :  { %v1657_v28 = vmul.f32 0.03125, %v1652_v27 }
 0xa83   :  { %v1659_v29 = vsub.f32 %v1646_v20, %v1657_v28 }
 0xa84   :  { %v1655_v30 = vpop.xlane.xlu1 %1654 }
 0xa85   :  { %v1658_v31 = vmul.f32 0.03125, %v1655_v30  ;;  %v1661_v32 = vmul.f32 %v1659_v29, %v1659_v29 }
 0xa87   :  { %v1660_v6 = vsub.f32 %v1647_v25, %v1658_v31  ;;  %v1663_v33 = vsel %vm812_vm1, %v1661_v32, 0.0 }
 0xa88   :  { %1664 = vadd.xlane.f32.xlu0 %v1663_v33 }
 0xa89   :  { %v1662_v34 = vmul.f32 %v1660_v6, %v1660_v6 }
 0xa8b   :  { %v1666_v35 = vsel %vm812_vm1, %v1662_v34, 0.0 }
 0xa8c   :  { %1667 = vadd.xlane.f32.xlu1 %v1666_v35 }
 0xb11   :  { %v1665_v37 = vpop.xlane.xlu0 %1664 }
 0xb12   :  { %v1669_v38 = vmul.f32 0.03125, %v1665_v37 }
 0xb14   :  { %v1671_v39 = vadd.f32 1e-05, %v1669_v38 }
 0xb15   :  { %v1668_v40 = vpop.xlane.xlu1 %1667 }
 0xb16   :  { %5105 = vrsqrt.f32 %v1671_v39  ;;  %v1670_v41 = vmul.f32 0.03125, %v1668_v40  ;;  %v5037_v40 = vld [vmem:[%s7105_s9 + $0x8] sm:$0xff]  }
 0xb18   :  { %v1672_v42 = vadd.f32 1e-05, %v1670_v41  ;;  %v5038_v41 = vld [vmem:[%s7105_s9] sm:$0xff]  }
 0xb1a   :  { %5107 = vrsqrt.f32 %v1672_v42 }
 0xb23   :  { %v5106_v43 = vpop.eup %5105 }
 0xb24   :  { %v1675_v44 = vmul.f32 %v5106_v43, %v1659_v29 }
 0xb26   :  { %v1683_v48 = vmul.f32 %v4313_v45, %v1675_v44 }
 0xb27   :  { %v5108_v46 = vpop.eup %5107 }
 0xb28   :  { %v1676_v47 = vmul.f32 %v5108_v46, %v1660_v6  ;;  %v1691_v51 = vadd.f32 %v4314_v49, %v1683_v48 }
 0xb2a   :  { %v1684_v50 = vmul.f32 %v4313_v45, %v1676_v47 }
 0xb2c   :  { %v1692_v52 = vadd.f32 %v4314_v49, %v1684_v50  ;;  %v4321_v50 = vld [vmem:[#allocation23] ss:$0 sm:$0xff] }
 0xb2e   :  { %v1693_v53 = vpack.c.bf16 %v1692_v52, %v1691_v51 }
 0xb30   :  { %4654 = vmatmul.mubr.msk.bf16.vlgmr.msra.gmra.mxu0 %vm812_vm1, %v1693_v53 }
 0xb31   :  { %4667 = vmatprep.mubr.msk.bf16.mxu0 %vm6172_vm0, %v6171_v0  ;;  %4664 = vmatpush3.bf16.msra.mxu0 %v5037_v40 }
 0xb32   :  { %4665 = vmatprep.subr.bf16.mxu0 %v6171_v0 }
 0xb35   :  { %4666 = vmatpush3.bf16.msra.mxu0 %v5038_v41 }
 0xb36   :  { %4683 = vmatprep.subr.bf16.mxu0 %v6171_v0 }
 0xbf0   :  { %v1754_v57 = vpop.f32.mrf.mxu0 }
 0xbf1   :  { %v1755_v58 = vadd.f32 %v4315_v56, %v1754_v57 }
 0xbf2   :  { %v4655_v59 = vpop.f32.mrf.mxu0 }
 0xbf3   :  { %v1761_v60 = vmul.f32 %v1755_v58, %v1755_v58  ;;  %v5039_v59 = vld [vmem:[%s7106_s27 + $0x18] sm:$0xff]  }
 0xbf4   :  { %v1757_v61 = vpop.f32.mrf.mxu0 }
 0xbf5   :  { %v1763_v62 = vmul.f32 %v1761_v60, %v1755_v58  ;;  %v1758_v63 = vadd.f32 %v4315_v56, %v1757_v61  ;;  %v5040_v60 = vld [vmem:[%s7106_s27 + $0x10] sm:$0xff]   ;;  %v5041_v61 = vld [vmem:[%s7106_s27 + $0x8] sm:$0xff]  }
 0xbf6   :  { %v4656_v1 = vpop.f32.mrf.mxu0 }
 0xbf7   :  { %v1765_v2 = vmul.f32 0.044715, %v1763_v62  ;;  %v1762_v3 = vmul.f32 %v1758_v63, %v1758_v63  ;;  %v5042_v62 = vld [vmem:[%s7106_s27] sm:$0xff]  }
 0xbf9   :  { %v1767_v4 = vadd.f32 %v1765_v2, %v1755_v58  ;;  %v1764_v5 = vmul.f32 %v1762_v3, %v1758_v63 }
 0xbfb   :  { %v1769_v8 = vmul.f32 0.7978846, %v1767_v4  ;;  %v1766_v9 = vmul.f32 0.044715, %v1764_v5 }
 0xbfd   :  { %5109 = vtanh.f32 %v1769_v8  ;;  %v1768_v10 = vadd.f32 %v1766_v9, %v1758_v63 }
 0xbff   :  { %v1770_v11 = vmul.f32 0.7978846, %v1768_v10 }
 0xc01   :  { %5111 = vtanh.f32 %v1770_v11 }
 0xc0a   :  { %v5110_v12 = vpop.eup %5109 }
 0xc0b   :  { %v1773_v13 = vadd.f32 1.0, %v5110_v12 }
 0xc0d   :  { %v1775_v15 = vmul.f32 0.5, %v1773_v13 }
 0xc0e   :  { %v5112_v14 = vpop.eup %5111 }
 0xc0f   :  { %v1774_v16 = vadd.f32 1.0, %v5112_v14  ;;  %v1777_v18 = vmul.f32 %v1775_v15, %v1755_v58 }
 0xc11   :  { %v1776_v17 = vmul.f32 0.5, %v1774_v16 }
 0xc13   :  { %v1778_v19 = vmul.f32 %v1776_v17, %v1758_v63  ;;  %v4323_v63 = vld [vmem:[#allocation26] ss:$0 sm:$0xff] }
 0xc15   :  { %v1779_v20 = vpack.c.bf16 %v1778_v19, %v1777_v18 }
 0xc17   :  { %4660 = vmatmul.mubr.msk.bf16.vlgmr.msra.gmra.mxu1 %vm1410_vm4, %v1779_v20 }
 0xc18   :  { %4679 = vmatprep.mubr.msk.bf16.mxu1 %vm6172_vm0, %v6171_v0  ;;  %4672 = vmatpush3.bf16.msra.mxu1 %v5039_v59  ;;  %v5048_v59 = vld [vmem:[%s7108_s5] sm:$0xff]  }
 0xc19   :  { %4673 = vmatprep.subr.bf16.mxu1 %v6171_v0 }
 0xc1c   :  { %4674 = vmatpush3.bf16.msra.mxu1 %v5040_v60  ;;  %v4333_v60 = vld [vmem:[#allocation29] ss:$0 sm:$0xff] }
 0xc1d   :  { %4675 = vmatprep.subr.bf16.mxu1 %v6171_v0 }
 0xc20   :  { %4676 = vmatpush3.bf16.msra.mxu1 %v5041_v61 }
 0xc21   :  { %4677 = vmatprep.subr.bf16.mxu1 %v6171_v0 }
 0xc24   :  { %4678 = vmatpush3.bf16.msra.mxu1 %v5042_v62 }
 0xc25   :  { %4695 = vmatprep.subr.bf16.mxu1 %v6171_v0 }
 0xcd7   :  { %v1828_v22 = vpop.f32.mrf.mxu1 }
 0xcd8   :  { %v1829_v23 = vadd.f32 %v4319_v21, %v1828_v22 }
 0xcd9   :  { %v4661_v24 = vpop.f32.mrf.mxu1 }
 0xcda   :  { %v1835_v25 = vadd.f32 %v1829_v23, %v1691_v51 }
 0xcdb   :  { %v1831_v26 = vpop.f32.mrf.mxu1 }
 0xcdc   :  { %v1832_v27 = vadd.f32 %v4319_v21, %v1831_v26  ;;  %v1839_v28 = vsel %vm812_vm1, %v1835_v25, 0.0 }
 0xcdd   :  { %1840 = vadd.xlane.f32.xlu0 %v1839_v28  ;;  %v4662_v29 = vpop.f32.mrf.mxu1  ;;  %v5043_v28 = vld [vmem:[%s7107_s2 + $0x18] sm:$0xff]  }
 0xcde   :  { %v1836_v30 = vadd.f32 %v1832_v27, %v1692_v52  ;;  %v5044_v29 = vld [vmem:[%s7107_s2 + $0x10] sm:$0xff]  }
 0xce0   :  { %v1842_v31 = vsel %vm812_vm1, %v1836_v30, 0.0 }
 0xce1   :  { %1843 = vadd.xlane.f32.xlu1 %v1842_v31  ;;  %v5046_v31 = vld [vmem:[%s7107_s2] sm:$0xff]  }
 0xd66   :  { %v1841_v32 = vpop.xlane.xlu0 %1840 }
 0xd67   :  { %v1845_v6 = vmul.f32 0.03125, %v1841_v32  ;;  %v4327_v32 = vld [vmem:[#allocation28] ss:$0 sm:$0xff] }
 0xd69   :  { %v1847_v33 = vsub.f32 %v1835_v25, %v1845_v6 }
 0xd6a   :  { %v1844_v34 = vpop.xlane.xlu1 %1843 }
 0xd6b   :  { %v1846_v35 = vmul.f32 0.03125, %v1844_v34  ;;  %v1849_v36 = vmul.f32 %v1847_v33, %v1847_v33 }
 0xd6d   :  { %v1848_v7 = vsub.f32 %v1836_v30, %v1846_v35  ;;  %v1851_v37 = vsel %vm812_vm1, %v1849_v36, 0.0  ;;  %v5045_v30 = vld [vmem:[%s7107_s2 + $0x8] sm:$0xff]  }
 0xd6e   :  { %1852 = vadd.xlane.f32.xlu0 %v1851_v37 }
 0xd6f   :  { %v1850_v38 = vmul.f32 %v1848_v7, %v1848_v7 }
 0xd71   :  { %v1854_v39 = vsel %vm812_vm1, %v1850_v38, 0.0 }
 0xd72   :  { %1855 = vadd.xlane.f32.xlu1 %v1854_v39 }
 0xdf7   :  { %v1853_v42 = vpop.xlane.xlu0 %1852 }
 0xdf8   :  { %v1857_v43 = vmul.f32 0.03125, %v1853_v42 }
 0xdfa   :  { %v1859_v44 = vadd.f32 1e-05, %v1857_v43 }
 0xdfb   :  { %v1856_v45 = vpop.xlane.xlu1 %1855 }
 0xdfc   :  { %5113 = vrsqrt.f32 %v1859_v44  ;;  %v1858_v46 = vmul.f32 0.03125, %v1856_v45 }
 0xdfe   :  { %v1860_v47 = vadd.f32 1e-05, %v1858_v46 }
 0xe00   :  { %5115 = vrsqrt.f32 %v1860_v47 }
 0xe09   :  { %v5114_v48 = vpop.eup %5113 }
 0xe0a   :  { %v1863_v49 = vmul.f32 %v5114_v48, %v1847_v33 }
 0xe0c   :  { %v1871_v53 = vmul.f32 %v4321_v50, %v1863_v49 }
 0xe0d   :  { %v5116_v51 = vpop.eup %5115 }
 0xe0e   :  { %v1864_v52 = vmul.f32 %v5116_v51, %v1848_v7  ;;  %v6748_v56 = vadd.f32 %v4322_v54, %v1871_v53 }
 0xe10   :  { %v1872_v55 = vmul.f32 %v4321_v50, %v1864_v52 }
 0xe12   :  { %v6750_v57 = vadd.f32 %v4322_v54, %v1872_v55 }
 0xe14   :  { %v1881_v58 = vpack.c.bf16 %v6750_v57, %v6748_v56 }
 0xe16   :  { %4668 = vmatmul.mubr.msk.bf16.vlgmr.msra.gmra.mxu0 %vm812_vm1, %v1881_v58  ;;  %v5047_v58 = vld [vmem:[%s7108_s5 + $0x8] sm:$0xff]  }
 0xe17   :  { %4691 = vmatprep.mubr.msk.bf16.mxu0 %vm6172_vm0, %v6171_v0  ;;  %4684 = vmatpush3.bf16.msra.mxu0 %v5043_v28  ;;  %v5052_v28 = vld [vmem:[%s7110_s10] sm:$0xff]  }
 0xe18   :  { %4685 = vmatprep.subr.bf16.mxu0 %v6171_v0 }
 0xe1b   :  { %4686 = vmatpush3.bf16.msra.mxu0 %v5044_v29  ;;  %v4339_v29 = vld [vmem:[#allocation31] ss:$0 sm:$0xff] }
 0xe1c   :  { %4687 = vmatprep.subr.bf16.mxu0 %v6171_v0 }
 0xe1f   :  { %4688 = vmatpush3.bf16.msra.mxu0 %v5045_v30 }
 0xe20   :  { %4689 = vmatprep.subr.bf16.mxu0 %v6171_v0 }
 0xe23   :  { %4690 = vmatpush3.bf16.msra.mxu0 %v5046_v31 }
 0xe24   :  { %4703 = vmatprep.subr.bf16.mxu0 %v6171_v0 }
 0xed6   :  { %v1942_v1 = vpop.f32.mrf.mxu0 }
 0xed7   :  { %v1943_v2 = vadd.f32 %v4323_v63, %v1942_v1 }
 0xed8   :  { %v4669_v3 = vpop.f32.mrf.mxu0 }
 0xed9   :  { %v1949_v4 = vmul.f32 %v1943_v2, %v1943_v2 }
 0xeda   :  { %v1945_v5 = vpop.f32.mrf.mxu0 }
 0xedb   :  { %v1951_v8 = vmul.f32 %v1949_v4, %v1943_v2  ;;  %v1946_v9 = vadd.f32 %v4323_v63, %v1945_v5 }
 0xedc   :  { %v4670_v10 = vpop.f32.mrf.mxu0 }
 0xedd   :  { %v1953_v11 = vmul.f32 0.044715, %v1951_v8  ;;  %v1950_v12 = vmul.f32 %v1946_v9, %v1946_v9 }
 0xedf   :  { %v1955_v13 = vadd.f32 %v1953_v11, %v1943_v2  ;;  %v1952_v14 = vmul.f32 %v1950_v12, %v1946_v9 }
 0xee1   :  { %v1957_v15 = vmul.f32 0.7978846, %v1955_v13  ;;  %v1954_v16 = vmul.f32 0.044715, %v1952_v14 }
 0xee3   :  { %5117 = vtanh.f32 %v1957_v15  ;;  %v1956_v17 = vadd.f32 %v1954_v16, %v1946_v9 }
 0xee5   :  { %v1958_v18 = vmul.f32 0.7978846, %v1956_v17 }
 0xee7   :  { %5119 = vtanh.f32 %v1958_v18 }
 0xef0   :  { %v5118_v19 = vpop.eup %5117 }
 0xef1   :  { %v1961_v20 = vadd.f32 1.0, %v5118_v19 }
 0xef3   :  { %v1963_v22 = vmul.f32 0.5, %v1961_v20 }
 0xef4   :  { %v5120_v21 = vpop.eup %5119 }
 0xef5   :  { %v1962_v23 = vadd.f32 1.0, %v5120_v21  ;;  %v1965_v25 = vmul.f32 %v1963_v22, %v1943_v2 }
 0xef7   :  { %v1964_v24 = vmul.f32 0.5, %v1962_v23 }
 0xef9   :  { %v1966_v26 = vmul.f32 %v1964_v24, %v1946_v9 }
 0xefb   :  { %v1967_v27 = vpack.c.bf16 %v1966_v26, %v1965_v25  ;;  %v5049_v25 = vld [vmem:[%s7109_s7 + $0x8] sm:$0xff]  }
 0xefc   :  { %v5050_v26 = vld [vmem:[%s7110_s10 + $0x8] sm:$0xff]  }
 0xefd   :  { %4680 = vmatmul.mubr.msk.bf16.vlgmr.msra.gmra.mxu1 %vm915_vm2, %v1967_v27  ;;  %v5051_v27 = vld [vmem:[%s7109_s7] sm:$0xff]  }
 0xefe   :  { %4699 = vmatprep.mubr.msk.bf16.mxu1 %vm6172_vm0, %v6171_v0  ;;  %4696 = vmatpush3.bf16.msra.mxu1 %v5047_v58 }
 0xeff   :  { %4697 = vmatprep.subr.bf16.mxu1 %v6171_v0 }
 0xf02   :  { %4698 = vmatpush3.bf16.msra.mxu1 %v5048_v59 }
 0xf03   :  { %4711 = vmatprep.subr.bf16.mxu1 %v6171_v0 }
 0xfbd   :  { %v2044_v6 = vpop.f32.mrf.mxu1 }
 0xfbe   :  { %v2045_v33 = vadd.f32 %v4327_v32, %v2044_v6 }
 0xfbf   :  { %v4681_v34 = vpop.f32.mrf.mxu1 }
 0xfc0   :  { %v2051_v35 = vmul.f32 %v2045_v33, %v2045_v33 }
 0xfc1   :  { %v2047_v36 = vpop.f32.mrf.mxu1 }
 0xfc2   :  { %v2053_v7 = vmul.f32 %v2051_v35, %v2045_v33  ;;  %v2048_v37 = vadd.f32 %v4327_v32, %v2047_v36 }
 0xfc3   :  { %v4682_v38 = vpop.f32.mrf.mxu1 }
 0xfc4   :  { %v2055_v39 = vmul.f32 0.044715, %v2053_v7  ;;  %v2052_v40 = vmul.f32 %v2048_v37, %v2048_v37 }
 0xfc6   :  { %v2057_v41 = vadd.f32 %v2055_v39, %v2045_v33  ;;  %v2054_v42 = vmul.f32 %v2052_v40, %v2048_v37 }
 0xfc8   :  { %v2059_v43 = vmul.f32 0.7978846, %v2057_v41  ;;  %v2056_v44 = vmul.f32 0.044715, %v2054_v42 }
 0xfca   :  { %5121 = vtanh.f32 %v2059_v43  ;;  %v2058_v45 = vadd.f32 %v2056_v44, %v2048_v37 }
 0xfcc   :  { %v2060_v46 = vmul.f32 0.7978846, %v2058_v45 }
 0xfce   :  { %5123 = vtanh.f32 %v2060_v46 }
 0xfd7   :  { %v5122_v47 = vpop.eup %5121 }
 0xfd8   :  { %v2063_v48 = vadd.f32 1.0, %v5122_v47 }
 0xfda   :  { %v2065_v50 = vmul.f32 0.5, %v2063_v48 }
 0xfdb   :  { %v5124_v49 = vpop.eup %5123 }
 0xfdc   :  { %v2064_v51 = vadd.f32 1.0, %v5124_v49  ;;  %v2067_v53 = vmul.f32 %v2065_v50, %v2045_v33 }
 0xfde   :  { %v2066_v52 = vmul.f32 0.5, %v2064_v51 }
 0xfe0   :  { %v2068_v54 = vmul.f32 %v2066_v52, %v2048_v37  ;;  %v5053_v52 = vld [vmem:[%s7111_s11 + $0x8] sm:$0xff]  }
 0xfe2   :  { %v2069_v55 = vpack.c.bf16 %v2068_v54, %v2067_v53  ;;  %v5054_v54 = vld [vmem:[%s7111_s11] sm:$0xff]  }
 0xfe4   :  { %4692 = vmatmul.mubr.msk.bf16.vlgmr.msra.gmra.mxu0 %vm915_vm2, %v2069_v55  ;;  %v4347_v55 = vld [vmem:[#allocation34] ss:$0 sm:$0xff] }
 0xfe5   :  { %4707 = vmatprep.mubr.msk.bf16.mxu0 %vm6172_vm0, %v6171_v0  ;;  %4704 = vmatpush3.bf16.msra.mxu0 %v5049_v25 }
 0xfe6   :  { %4705 = vmatprep.subr.bf16.mxu0 %v6171_v0 }
 0xfe9   :  { %4706 = vmatpush3.bf16.msra.mxu0 %v5051_v27 }
 0xfea   :  { %4719 = vmatprep.subr.bf16.mxu0 %v6171_v0 }
0x10a4   :  { %v2146_v61 = vpop.f32.mrf.mxu0 }
0x10a5   :  { %v2147_v62 = vadd.f32 %v4333_v60, %v2146_v61 }
0x10a6   :  { %v4693_v63 = vpop.f32.mrf.mxu0 }
0x10a7   :  { %v2153_v1 = vmul.f32 %v2147_v62, %v2147_v62 }
0x10a8   :  { %v2149_v2 = vpop.f32.mrf.mxu0 }
0x10a9   :  { %v2155_v3 = vmul.f32 %v2153_v1, %v2147_v62  ;;  %v2150_v4 = vadd.f32 %v4333_v60, %v2149_v2  ;;  %v4343_v1 = vld [vmem:[#allocation32] ss:$0 sm:$0xff] }
0x10aa   :  { %v4694_v5 = vpop.f32.mrf.mxu0 }
0x10ab   :  { %v2157_v8 = vmul.f32 0.044715, %v2155_v3  ;;  %v2154_v9 = vmul.f32 %v2150_v4, %v2150_v4 }
0x10ad   :  { %v2159_v10 = vadd.f32 %v2157_v8, %v2147_v62  ;;  %v2156_v11 = vmul.f32 %v2154_v9, %v2150_v4 }
0x10af   :  { %v2161_v12 = vmul.f32 0.7978846, %v2159_v10  ;;  %v2158_v13 = vmul.f32 0.044715, %v2156_v11  ;;  %v4351_v10 = vld [vmem:[#allocation35] ss:$0 sm:$0xff] }
0x10b1   :  { %5125 = vtanh.f32 %v2161_v12  ;;  %v2160_v14 = vadd.f32 %v2158_v13, %v2150_v4 }
0x10b3   :  { %v2162_v15 = vmul.f32 0.7978846, %v2160_v14 }
0x10b5   :  { %5127 = vtanh.f32 %v2162_v15 }
0x10be   :  { %v5126_v16 = vpop.eup %5125 }
0x10bf   :  { %v2165_v17 = vadd.f32 1.0, %v5126_v16 }
0x10c1   :  { %v2167_v19 = vmul.f32 0.5, %v2165_v17 }
0x10c2   :  { %v5128_v18 = vpop.eup %5127 }
0x10c3   :  { %v2166_v20 = vadd.f32 1.0, %v5128_v18  ;;  %v2169_v22 = vmul.f32 %v2167_v19, %v2147_v62 }
0x10c5   :  { %v2168_v21 = vmul.f32 0.5, %v2166_v20 }
0x10c7   :  { %v2170_v23 = vmul.f32 %v2168_v21, %v2150_v4 }
0x10c9   :  { %v2171_v24 = vpack.c.bf16 %v2170_v23, %v2169_v22 }
0x10cb   :  { %4700 = vmatmul.mubr.msk.bf16.vlgmr.msra.gmra.mxu1 %vm812_vm1, %v2171_v24 }
0x10cc   :  { %4715 = vmatprep.mubr.msk.bf16.mxu1 %vm6172_vm0, %v6171_v0  ;;  %4712 = vmatpush3.bf16.msra.mxu1 %v5050_v26 }
0x10cd   :  { %4713 = vmatprep.subr.bf16.mxu1 %v6171_v0 }
0x10d0   :  { %4714 = vmatpush3.bf16.msra.mxu1 %v5052_v28 }
0x10d1   :  { %4727 = vmatprep.subr.bf16.mxu1 %v6171_v0 }
0x118b   :  { %v2232_v30 = vpop.f32.mrf.mxu1 }
0x118c   :  { %v2233_v31 = vadd.f32 %v4339_v29, %v2232_v30 }
0x118d   :  { %v4701_v32 = vpop.f32.mrf.mxu1 }
0x118e   :  { %v2239_v6 = vmul.f32 %v2233_v31, %v2233_v31 }
0x118f   :  { %v2235_v33 = vpop.f32.mrf.mxu1 }
0x1190   :  { %v2241_v34 = vmul.f32 %v2239_v6, %v2233_v31  ;;  %v2236_v35 = vadd.f32 %v4339_v29, %v2235_v33 }
0x1191   :  { %v4702_v36 = vpop.f32.mrf.mxu1 }
0x1192   :  { %v2243_v7 = vmul.f32 0.044715, %v2241_v34  ;;  %v2240_v37 = vmul.f32 %v2236_v35, %v2236_v35 }
0x1194   :  { %v2245_v38 = vadd.f32 %v2243_v7, %v2233_v31  ;;  %v2242_v39 = vmul.f32 %v2240_v37, %v2236_v35 }
0x1196   :  { %v2247_v40 = vmul.f32 0.7978846, %v2245_v38  ;;  %v2244_v41 = vmul.f32 0.044715, %v2242_v39 }
0x1198   :  { %5129 = vtanh.f32 %v2247_v40  ;;  %v2246_v42 = vadd.f32 %v2244_v41, %v2236_v35 }
0x119a   :  { %v2248_v43 = vmul.f32 0.7978846, %v2246_v42 }
0x119c   :  { %5131 = vtanh.f32 %v2248_v43 }
0x11a5   :  { %v5130_v44 = vpop.eup %5129 }
0x11a6   :  { %v2251_v45 = vadd.f32 1.0, %v5130_v44 }
0x11a8   :  { %v2253_v47 = vmul.f32 0.5, %v2251_v45 }
0x11a9   :  { %v5132_v46 = vpop.eup %5131 }
0x11aa   :  { %v2252_v48 = vadd.f32 1.0, %v5132_v46  ;;  %v2255_v50 = vmul.f32 %v2253_v47, %v2233_v31  ;;  %v5055_v47 = vld [vmem:[#allocation37 + $0x8] sm:$0xff]  }
0x11ac   :  { %v2254_v49 = vmul.f32 0.5, %v2252_v48  ;;  %v5056_v48 = vld [vmem:[#allocation37] sm:$0xff]  }
0x11ae   :  { %v2256_v51 = vmul.f32 %v2254_v49, %v2236_v35 }
0x11b0   :  { %v2257_v53 = vpack.c.bf16 %v2256_v51, %v2255_v50 }
0x11b2   :  { %4708 = vmatmul.mubr.msk.bf16.vlgmr.msra.gmra.mxu0 %vm812_vm1, %v2257_v53  ;;  %4716 = vmatmul.mubr.msk.bf16.vlgmr.msra.gmra.mxu1 %vm812_vm1, %v2257_v53 }
0x11b3   :  { %4720 = vmatpush3.bf16.msra.mxu0 %v5053_v52  ;;  %4723 = vmatprep.mubr.msk.bf16.mxu0 %vm6172_vm0, %v6171_v0 }
0x11b4   :  { %4721 = vmatprep.subr.bf16.mxu0 %v6171_v0  ;;  %4729 = vmatprep.mubr.msk.bf16.mxu1 %vm6172_vm0, %v6171_v0 }
0x11b7   :  { %4722 = vmatpush3.bf16.msra.mxu0 %v5054_v54 }
0x11b8   :  { %4733 = vmatprep.subr.bf16.mxu0 %v6171_v0 }
0x11ba   :  { %4724 = vmatmul.mubr.msk.bf16.vlgmr.msra.gmra.mxu0 %vm812_vm1, %v2257_v53 }
0x11bb   :  { %4735 = vmatprep.mubr.msk.bf16.mxu0 %vm6172_vm0, %v6171_v0 }
0x1272   :  { %v2318_v58 = vpop.f32.mrf.mxu0  ;;  %v2382_v59 = vpop.f32.mrf.mxu1 }
0x1273   :  { %v2383_v60 = vadd.f32 %v4347_v55, %v2382_v59  ;;  %v2319_v11 = vadd.f32 %v4343_v1, %v2318_v58 }
0x1274   :  { %v4709_v61 = vpop.f32.mrf.mxu0  ;;  %v4717_v62 = vpop.f32.mrf.mxu1 }
0x1275   :  { %v2454_v63 = vpack.c.bf16 %v2383_v60, %v2383_v60  ;;  %v2453_v16 = vpack.c.bf16 %v2319_v11, %v2319_v11 }
0x1276   :  { %v2321_v2 = vpop.f32.mrf.mxu0  ;;  %v2385_v3 = vpop.f32.mrf.mxu1 }
0x1277   :  { %v2459_v4 = vsel %vm812_vm1, %v2454_v63, 0  ;;  %v2386_v5 = vadd.f32 %v4347_v55, %v2385_v3  ;;  %v2322_v23 = vadd.f32 %v4343_v1, %v2321_v2  ;;  %v4359_v3 = vld [vmem:[#allocation38] ss:$0 sm:$0xff] }
0x1278   :  { %v4710_v8 = vpop.f32.mrf.mxu0  ;;  %v4718_v9 = vpop.f32.mrf.mxu1  ;;  %4728 = vmatpush3.bf16.xpose.msra.mxu1 %v2459_v4 }
0x1279   :  { %4739 = vmatprep.subr.bf16.mxu1 %v6171_v0  ;;  %v2561_v13 = vpack.c.bf16 %v2386_v5, %v2386_v5  ;;  %v2560_v24 = vpack.c.bf16 %v2322_v23, %v2322_v23 }
0x127a   :  { %v2446_v12 = vpop.f32.mrf.mxu0 }
0x127b   :  { %v2447_v14 = vadd.f32 %v4351_v10, %v2446_v12  ;;  %v2566_v19 = vsel %vm812_vm1, %v2561_v13, 0 }
0x127c   :  { %v4725_v15 = vpop.f32.mrf.mxu0 }
0x127d   :  { %v2511_v17 = vpack.c.bf16 %v2447_v14, %v2447_v14 }
0x127e   :  { %v2449_v18 = vpop.f32.mrf.mxu0 }
0x127f   :  { %v2516_v20 = vsel %vm1425_vm3, %v2511_v17, 0  ;;  %v2450_v21 = vadd.f32 %v4351_v10, %v2449_v18  ;;  %4730 = vmatmul.mubr.msk.bf16.vlgmr.msra.gmra.mxu1 %vm812_vm1, %v2453_v16 }
0x1280   :  { %v4726_v22 = vpop.f32.mrf.mxu0  ;;  %4734 = vmatpush3.bf16.msra.mxu0 %v2516_v20  ;;  %4740 = vmatpush3.bf16.xpose.msra.mxu1 %v2566_v19 }
0x1281   :  { %4741 = vmatprep.mubr.msk.bf16.mxu1 %vm6172_vm0, %v6171_v0  ;;  %4745 = vmatprep.subr.bf16.mxu0 %v6171_v0  ;;  %v2618_v39 = vpack.c.bf16 %v2450_v21, %v2450_v21 }
0x1282   :  { %4751 = vmatprep.subr.bf16.mxu1 %v6171_v0 }
0x1283   :  { %v2623_v43 = vsel %vm1425_vm3, %v2618_v39, 0 }
0x1287   :  { %4742 = vmatmul.mubr.msk.bf16.vlgmr.msra.gmra.mxu1 %vm812_vm1, %v2560_v24 }
0x1288   :  { %4755 = vmatprep.mubr.msk.bf16.mxu1 %vm6172_vm0, %v6171_v0  ;;  %4752 = vmatpush3.bf16.msra.mxu1 %v5055_v47 }
0x1289   :  { %4753 = vmatprep.subr.bf16.mxu1 %v6171_v0 }
0x128c   :  { %4754 = vmatpush3.bf16.msra.mxu1 %v5056_v48 }
0x128d   :  { %4767 = vmatprep.subr.bf16.mxu1 %v6171_v0 }
0x133f   :  { %v2495_v25 = vpop.f32.mrf.mxu1 }
0x1340   :  { %v2501_v26 = vsel %vm1410_vm4, %v2495_v25, -inf }
0x1341   :  { %2502 = vmax.xlane.f32.xlu0 %v2501_v26  ;;  %v4731_v27 = vpop.f32.mrf.mxu1 }
0x1343   :  { %v2498_v28 = vpop.f32.mrf.mxu1 }
0x1345   :  { %v4732_v29 = vpop.f32.mrf.mxu1 }
0x1347   :  { %v2602_v30 = vpop.f32.mrf.mxu1 }
0x1348   :  { %v2608_v31 = vsel %vm1410_vm4, %v2602_v30, -inf }
0x1349   :  { %2609 = vmax.xlane.f32.xlu1 %v2608_v31  ;;  %v4743_v32 = vpop.f32.mrf.mxu1 }
0x134b   :  { %v2605_v6 = vpop.f32.mrf.mxu1 }
0x134d   :  { %v4744_v33 = vpop.f32.mrf.mxu1 }
0x134e   :  { %v4363_v33 = vld [vmem:[#allocation40] ss:$0 sm:$0xff] }
0x13ca   :  { %v2503_v34 = vpop.xlane.xlu0 %2502 }
0x13cb   :  { %v2504_v35 = vsub.f32 %v2495_v25, %v2503_v34  ;;  %v5057_v25 = vld [vmem:[%s7112_s6 + $0x8] sm:$0xff]  }
0x13cd   :  { %v2505_v36 = vmul.f32 1.442695, %v2504_v35 }
0x13cf   :  { %5133 = vpow2.f32 %v2505_v36 }
0x13d2   :  { %v2610_v7 = vpop.xlane.xlu1 %2609 }
0x13d3   :  { %v2611_v37 = vsub.f32 %v2602_v30, %v2610_v7  ;;  %v4364_v7 = vld [vmem:[#allocation41] ss:$0 sm:$0xff] }
0x13d5   :  { %v2612_v38 = vmul.f32 1.442695, %v2611_v37 }
0x13d7   :  { %5135 = vpow2.f32 %v2612_v38 }
0x13dc   :  { %v5134_v40 = vpop.eup %5133 }
0x13dd   :  { %v2507_v41 = vsel %vm1410_vm4, %v5134_v40, 0.0  ;;  %v2510_v42 = vpack.c.bf16 %v5134_v40, %v5134_v40 }
0x13de   :  { %2508 = vadd.xlane.f32.xlu0 %v2507_v41  ;;  %v2868_v41 = vld [vmem:[#allocation44] sm:$0xf] }
0x13df   :  { %4736 = vmatmul.mubr.msk.bf16.vlgmr.msra.gmra.mxu0 %vm1410_vm4, %v2510_v42  ;;  %v2880_v42 = vsel %vm1425_vm3, %v2868_v41, 0  ;;  %v4372_v41 = vld [vmem:[#allocation49] ss:$0 sm:$0xff] }
0x13e0   :  { %4746 = vmatpush3.bf16.msra.mxu0 %v2623_v43  ;;  %4747 = vmatprep.mubr.msk.bf16.mxu0 %vm6172_vm0, %v6171_v0  ;;  %v4365_v43 = vld [vmem:[#allocation43] ss:$0 sm:$0xff] }
0x13e1   :  { %4759 = vmatprep.subr.bf16.mxu0 %v6171_v0 }
0x13e4   :  { %v5136_v44 = vpop.eup %5135 }
0x13e5   :  { %v2614_v45 = vsel %vm1410_vm4, %v5136_v44, 0.0  ;;  %v2617_v46 = vpack.c.bf16 %v5136_v44, %v5136_v44 }
0x13e6   :  { %2615 = vadd.xlane.f32.xlu1 %v2614_v45 }
0x13e7   :  { %4748 = vmatmul.mubr.msk.bf16.vlgmr.msra.gmra.mxu0 %vm1410_vm4, %v2617_v46 }
0x13e8   :  { %4763 = vmatprep.mubr.msk.bf16.mxu0 %vm6172_vm0, %v6171_v0  ;;  %4760 = vmatpush3.bf16.msra.mxu0 %v5057_v25 }
0x13e9   :  { %4761 = vmatprep.subr.bf16.mxu0 %v6171_v0 }
0x1467   :  { %v2509_v49 = vpop.xlane.xlu0 %2508 }
0x1468   :  { %5137 = vrcp.f32 %v2509_v49 }
0x146f   :  { %v2616_v50 = vpop.xlane.xlu1 %2615 }
0x1470   :  { %5139 = vrcp.f32 %v2616_v50 }
0x1475   :  { %v5138_v55 = vpop.eup %5137 }
0x147d   :  { %v5140_v58 = vpop.eup %5139 }
0x149f   :  { %v2552_v51 = vpop.f32.mrf.mxu0 }
0x14a0   :  { %v2559_v60 = vmul.f32 %v5138_v55, %v2552_v51 }
0x14a1   :  { %v4737_v52 = vpop.f32.mrf.mxu0 }
0x14a3   :  { %v2555_v53 = vpop.f32.mrf.mxu0 }
0x14a5   :  { %v4738_v54 = vpop.f32.mrf.mxu0 }
0x14a7   :  { %v2659_v59 = vpop.f32.mrf.mxu0 }
0x14a8   :  { %v2666_v61 = vmul.f32 %v5140_v58, %v2659_v59 }
0x14a9   :  { %v4749_v62 = vpop.f32.mrf.mxu0 }
0x14aa   :  { %v2667_v63 = vpack.c.bf16 %v2666_v61, %v2559_v60 }
0x14ab   :  { %v2662_v1 = vpop.f32.mrf.mxu0 }
0x14ac   :  { %4756 = vmatmul.mubr.msk.bf16.vlgmr.msra.gmra.mxu1 %vm812_vm1, %v2667_v63 }
0x14ad   :  { %v4750_v2 = vpop.f32.mrf.mxu0  ;;  %4769 = vmatprep.mubr.msk.bf16.mxu1 %vm6172_vm0, %v6171_v0  ;;  %4768 = vmatpush3.bf16.msra.mxu1 %v2880_v42 }
0x14ae   :  { %4781 = vmatprep.subr.bf16.mxu1 %v6171_v0 }
0x156c   :  { %v2728_v4 = vpop.f32.mrf.mxu1 }
0x156d   :  { %v2729_v5 = vadd.f32 %v4359_v3, %v2728_v4 }
0x156e   :  { %v4757_v8 = vpop.f32.mrf.mxu1 }
0x156f   :  { %v2735_v9 = vadd.f32 %v2729_v5, %v6748_v56 }
0x1570   :  { %v2731_v10 = vpop.f32.mrf.mxu1 }
0x1571   :  { %v2732_v11 = vadd.f32 %v4359_v3, %v2731_v10  ;;  %v2739_v12 = vsel %vm812_vm1, %v2735_v9, 0.0  ;;  %v4369_v10 = vld [vmem:[#allocation46] ss:$0 sm:$0xff] }
0x1572   :  { %2740 = vadd.xlane.f32.xlu0 %v2739_v12  ;;  %v4758_v13 = vpop.f32.mrf.mxu1 }
0x1573   :  { %v2736_v14 = vadd.f32 %v2732_v11, %v6750_v57  ;;  %v5058_v57 = vld [vmem:[%s7112_s6] sm:$0xff]  }
0x1574   :  { %4762 = vmatpush3.bf16.msra.mxu0 %v5058_v57 }
0x1575   :  { %v2742_v15 = vsel %vm812_vm1, %v2736_v14, 0.0  ;;  %4773 = vmatprep.subr.bf16.mxu0 %v6171_v0 }
0x1576   :  { %2743 = vadd.xlane.f32.xlu1 %v2742_v15 }
0x15fb   :  { %v2741_v16 = vpop.xlane.xlu0 %2740 }
0x15fc   :  { %v2745_v17 = vmul.f32 0.03125, %v2741_v16 }
0x15fe   :  { %v2747_v18 = vsub.f32 %v2735_v9, %v2745_v17 }
0x15ff   :  { %v2744_v19 = vpop.xlane.xlu1 %2743 }
0x1600   :  { %v2746_v20 = vmul.f32 0.03125, %v2744_v19  ;;  %v2749_v21 = vmul.f32 %v2747_v18, %v2747_v18 }
0x1602   :  { %v2748_v56 = vsub.f32 %v2736_v14, %v2746_v20  ;;  %v2751_v22 = vsel %vm812_vm1, %v2749_v21, 0.0 }
0x1603   :  { %2752 = vadd.xlane.f32.xlu0 %v2751_v22 }
0x1604   :  { %v2750_v23 = vmul.f32 %v2748_v56, %v2748_v56 }
0x1606   :  { %v2754_v24 = vsel %vm812_vm1, %v2750_v23, 0.0 }
0x1607   :  { %2755 = vadd.xlane.f32.xlu1 %v2754_v24 }
0x168c   :  { %v2753_v26 = vpop.xlane.xlu0 %2752 }
0x168d   :  { %v2757_v27 = vmul.f32 0.03125, %v2753_v26 }
0x168f   :  { %v2759_v28 = vadd.f32 1e-05, %v2757_v27 }
0x1690   :  { %v2756_v29 = vpop.xlane.xlu1 %2755 }
0x1691   :  { %5141 = vrsqrt.f32 %v2759_v28  ;;  %v2758_v30 = vmul.f32 0.03125, %v2756_v29  ;;  %v5059_v29 = vld [vmem:[%s7113_s4 + $0x8] sm:$0xff]  }
0x1693   :  { %v2760_v31 = vadd.f32 1e-05, %v2758_v30  ;;  %v5060_v30 = vld [vmem:[%s7113_s4] sm:$0xff]  }
0x1695   :  { %5143 = vrsqrt.f32 %v2760_v31 }
0x169e   :  { %v5142_v32 = vpop.eup %5141 }
0x169f   :  { %v2763_v6 = vmul.f32 %v5142_v32, %v2747_v18 }
0x16a1   :  { %v2771_v36 = vmul.f32 %v4363_v33, %v2763_v6 }
0x16a2   :  { %v5144_v34 = vpop.eup %5143 }
0x16a3   :  { %v2764_v35 = vmul.f32 %v5144_v34, %v2748_v56  ;;  %v2779_v38 = vadd.f32 %v4364_v7, %v2771_v36 }
0x16a5   :  { %v2772_v37 = vmul.f32 %v4363_v33, %v2764_v35 }
0x16a7   :  { %v2780_v39 = vadd.f32 %v4364_v7, %v2772_v37  ;;  %v4371_v37 = vld [vmem:[#allocation47] ss:$0 sm:$0xff] }
0x16a9   :  { %v2781_v40 = vpack.c.bf16 %v2780_v39, %v2779_v38 }
0x16ab   :  { %4764 = vmatmul.mubr.msk.bf16.vlgmr.msra.gmra.mxu0 %vm812_vm1, %v2781_v40 }
0x16ac   :  { %4777 = vmatprep.mubr.msk.bf16.mxu0 %vm6172_vm0, %v6171_v0  ;;  %4774 = vmatpush3.bf16.msra.mxu0 %v5059_v29 }
0x16ad   :  { %4775 = vmatprep.subr.bf16.mxu0 %v6171_v0 }
0x16b0   :  { %4776 = vmatpush3.bf16.msra.mxu0 %v5060_v30 }
0x16b1   :  { %4793 = vmatprep.subr.bf16.mxu0 %v6171_v0 }
0x176b   :  { %v2842_v44 = vpop.f32.mrf.mxu0 }
0x176c   :  { %v2843_v45 = vadd.f32 %v4365_v43, %v2842_v44 }
0x176d   :  { %v4765_v46 = vpop.f32.mrf.mxu0 }
0x176e   :  { %v2849_v47 = vmul.f32 %v2843_v45, %v2843_v45  ;;  %v5061_v46 = vld [vmem:[%s7114_s29 + $0x18] sm:$0xff]  }
0x176f   :  { %v2845_v48 = vpop.f32.mrf.mxu0 }
0x1770   :  { %v2851_v49 = vmul.f32 %v2849_v47, %v2843_v45  ;;  %v2846_v50 = vadd.f32 %v4365_v43, %v2845_v48  ;;  %v5062_v47 = vld [vmem:[%s7114_s29 + $0x10] sm:$0xff]   ;;  %v5063_v48 = vld [vmem:[%s7114_s29 + $0x8] sm:$0xff]  }
0x1771   :  { %v4766_v51 = vpop.f32.mrf.mxu0 }
0x1772   :  { %v2853_v52 = vmul.f32 0.044715, %v2851_v49  ;;  %v2850_v53 = vmul.f32 %v2846_v50, %v2846_v50  ;;  %v5064_v49 = vld [vmem:[%s7114_s29] sm:$0xff]  }
0x1774   :  { %v2855_v54 = vadd.f32 %v2853_v52, %v2843_v45  ;;  %v2852_v55 = vmul.f32 %v2850_v53, %v2846_v50 }
0x1776   :  { %v2857_v58 = vmul.f32 0.7978846, %v2855_v54  ;;  %v2854_v59 = vmul.f32 0.044715, %v2852_v55 }
0x1778   :  { %5145 = vtanh.f32 %v2857_v58  ;;  %v2856_v60 = vadd.f32 %v2854_v59, %v2846_v50 }
0x177a   :  { %v2858_v61 = vmul.f32 0.7978846, %v2856_v60 }
0x177c   :  { %5147 = vtanh.f32 %v2858_v61 }
0x1785   :  { %v5146_v62 = vpop.eup %5145 }
0x1786   :  { %v2861_v63 = vadd.f32 1.0, %v5146_v62 }
0x1788   :  { %v2863_v2 = vmul.f32 0.5, %v2861_v63 }
0x1789   :  { %v5148_v1 = vpop.eup %5147 }
0x178a   :  { %v2862_v3 = vadd.f32 1.0, %v5148_v1  ;;  %v2865_v5 = vmul.f32 %v2863_v2, %v2843_v45 }
0x178c   :  { %v2864_v4 = vmul.f32 0.5, %v2862_v3 }
0x178e   :  { %v2866_v8 = vmul.f32 %v2864_v4, %v2846_v50  ;;  %v4373_v50 = vld [vmem:[#allocation50] ss:$0 sm:$0xff] }
0x1790   :  { %v2867_v9 = vpack.c.bf16 %v2866_v8, %v2865_v5 }
0x1792   :  { %4770 = vmatmul.mubr.msk.bf16.vlgmr.msra.gmra.mxu1 %vm1410_vm4, %v2867_v9 }
0x1793   :  { %4789 = vmatprep.mubr.msk.bf16.mxu1 %vm6172_vm0, %v6171_v0  ;;  %4782 = vmatpush3.bf16.msra.mxu1 %v5061_v46  ;;  %v5070_v46 = vld [vmem:[#allocation55] sm:$0xff]  }
0x1794   :  { %4783 = vmatprep.subr.bf16.mxu1 %v6171_v0 }
0x1797   :  { %4784 = vmatpush3.bf16.msra.mxu1 %v5062_v47  ;;  %v4383_v47 = vld [vmem:[#allocation53] ss:$0 sm:$0xff] }
0x1798   :  { %4785 = vmatprep.subr.bf16.mxu1 %v6171_v0 }
0x179b   :  { %4786 = vmatpush3.bf16.msra.mxu1 %v5063_v48 }
0x179c   :  { %4787 = vmatprep.subr.bf16.mxu1 %v6171_v0 }
0x179f   :  { %4788 = vmatpush3.bf16.msra.mxu1 %v5064_v49 }
0x17a0   :  { %4805 = vmatprep.subr.bf16.mxu1 %v6171_v0 }
0x1852   :  { %v2916_v11 = vpop.f32.mrf.mxu1 }
0x1853   :  { %v2917_v12 = vadd.f32 %v4369_v10, %v2916_v11 }
0x1854   :  { %v4771_v13 = vpop.f32.mrf.mxu1 }
0x1855   :  { %v2923_v14 = vadd.f32 %v2917_v12, %v2779_v38 }
0x1856   :  { %v2919_v15 = vpop.f32.mrf.mxu1 }
0x1857   :  { %v2920_v16 = vadd.f32 %v4369_v10, %v2919_v15  ;;  %v2927_v17 = vsel %vm812_vm1, %v2923_v14, 0.0 }
0x1858   :  { %2928 = vadd.xlane.f32.xlu0 %v2927_v17  ;;  %v4772_v18 = vpop.f32.mrf.mxu1  ;;  %v5065_v17 = vld [vmem:[%s7115_s15 + $0x18] sm:$0xff]  }
0x1859   :  { %v2924_v19 = vadd.f32 %v2920_v16, %v2780_v39  ;;  %v5066_v18 = vld [vmem:[%s7115_s15 + $0x10] sm:$0xff]  }
0x185b   :  { %v2930_v20 = vsel %vm812_vm1, %v2924_v19, 0.0 }
0x185c   :  { %2931 = vadd.xlane.f32.xlu1 %v2930_v20  ;;  %v5068_v20 = vld [vmem:[%s7115_s15] sm:$0xff]  }
0x18e1   :  { %v2929_v21 = vpop.xlane.xlu0 %2928 }
0x18e2   :  { %v2933_v56 = vmul.f32 0.03125, %v2929_v21  ;;  %v4377_v21 = vld [vmem:[#allocation52] ss:$0 sm:$0xff] }
0x18e4   :  { %v2935_v22 = vsub.f32 %v2923_v14, %v2933_v56 }
0x18e5   :  { %v2932_v23 = vpop.xlane.xlu1 %2931 }
0x18e6   :  { %v2934_v24 = vmul.f32 0.03125, %v2932_v23  ;;  %v2937_v25 = vmul.f32 %v2935_v22, %v2935_v22 }
0x18e8   :  { %v2936_v57 = vsub.f32 %v2924_v19, %v2934_v24  ;;  %v2939_v26 = vsel %vm812_vm1, %v2937_v25, 0.0  ;;  %v5067_v19 = vld [vmem:[%s7115_s15 + $0x8] sm:$0xff]  }
0x18e9   :  { %2940 = vadd.xlane.f32.xlu0 %v2939_v26 }
0x18ea   :  { %v2938_v27 = vmul.f32 %v2936_v57, %v2936_v57 }
0x18ec   :  { %v2942_v28 = vsel %vm812_vm1, %v2938_v27, 0.0 }
0x18ed   :  { %2943 = vadd.xlane.f32.xlu1 %v2942_v28 }
0x1972   :  { %v2941_v31 = vpop.xlane.xlu0 %2940 }
0x1973   :  { %v2945_v32 = vmul.f32 0.03125, %v2941_v31 }
0x1975   :  { %v2947_v6 = vadd.f32 1e-05, %v2945_v32 }
0x1976   :  { %v2944_v33 = vpop.xlane.xlu1 %2943 }
0x1977   :  { %5149 = vrsqrt.f32 %v2947_v6  ;;  %v2946_v34 = vmul.f32 0.03125, %v2944_v33 }
0x1979   :  { %v2948_v35 = vadd.f32 1e-05, %v2946_v34 }
0x197b   :  { %5151 = vrsqrt.f32 %v2948_v35 }
0x1984   :  { %v5150_v36 = vpop.eup %5149 }
0x1985   :  { %v2951_v7 = vmul.f32 %v5150_v36, %v2935_v22 }
0x1987   :  { %v2959_v40 = vmul.f32 %v4371_v37, %v2951_v7 }
0x1988   :  { %v5152_v38 = vpop.eup %5151 }
0x1989   :  { %v2952_v39 = vmul.f32 %v5152_v38, %v2936_v57  ;;  %v6862_v43 = vadd.f32 %v4372_v41, %v2959_v40 }
0x198b   :  { %v2960_v42 = vmul.f32 %v4371_v37, %v2952_v39 }
0x198d   :  { %v6864_v44 = vadd.f32 %v4372_v41, %v2960_v42 }
0x198f   :  { %v2969_v45 = vpack.c.bf16 %v6864_v44, %v6862_v43 }
0x1991   :  { %4778 = vmatmul.mubr.msk.bf16.vlgmr.msra.gmra.mxu0 %vm812_vm1, %v2969_v45  ;;  %v5069_v45 = vld [vmem:[#allocation55 + $0x8] sm:$0xff]  }
0x1992   :  { %4801 = vmatprep.mubr.msk.bf16.mxu0 %vm6172_vm0, %v6171_v0  ;;  %4794 = vmatpush3.bf16.msra.mxu0 %v5065_v17  ;;  %v5074_v17 = vld [vmem:[#allocation59] sm:$0xff]  }
0x1993   :  { %4795 = vmatprep.subr.bf16.mxu0 %v6171_v0 }
0x1996   :  { %4796 = vmatpush3.bf16.msra.mxu0 %v5066_v18  ;;  %v4389_v18 = vld [vmem:[#allocation56] ss:$0 sm:$0xff] }
0x1997   :  { %4797 = vmatprep.subr.bf16.mxu0 %v6171_v0 }
0x199a   :  { %4798 = vmatpush3.bf16.msra.mxu0 %v5067_v19 }
0x199b   :  { %4799 = vmatprep.subr.bf16.mxu0 %v6171_v0 }
0x199e   :  { %4800 = vmatpush3.bf16.msra.mxu0 %v5068_v20 }
0x199f   :  { %4813 = vmatprep.subr.bf16.mxu0 %v6171_v0 }
0x1a51   :  { %v3030_v51 = vpop.f32.mrf.mxu0 }
0x1a52   :  { %v3031_v52 = vadd.f32 %v4373_v50, %v3030_v51 }
0x1a53   :  { %v4779_v53 = vpop.f32.mrf.mxu0 }
0x1a54   :  { %v3037_v54 = vmul.f32 %v3031_v52, %v3031_v52 }
0x1a55   :  { %v3033_v55 = vpop.f32.mrf.mxu0 }
0x1a56   :  { %v3039_v58 = vmul.f32 %v3037_v54, %v3031_v52  ;;  %v3034_v59 = vadd.f32 %v4373_v50, %v3033_v55 }
0x1a57   :  { %v4780_v60 = vpop.f32.mrf.mxu0 }
0x1a58   :  { %v3041_v61 = vmul.f32 0.044715, %v3039_v58  ;;  %v3038_v62 = vmul.f32 %v3034_v59, %v3034_v59 }
0x1a5a   :  { %v3043_v63 = vadd.f32 %v3041_v61, %v3031_v52  ;;  %v3040_v1 = vmul.f32 %v3038_v62, %v3034_v59 }
0x1a5c   :  { %v3045_v2 = vmul.f32 0.7978846, %v3043_v63  ;;  %v3042_v3 = vmul.f32 0.044715, %v3040_v1 }
0x1a5e   :  { %5153 = vtanh.f32 %v3045_v2  ;;  %v3044_v4 = vadd.f32 %v3042_v3, %v3034_v59 }
0x1a60   :  { %v3046_v5 = vmul.f32 0.7978846, %v3044_v4 }
0x1a62   :  { %5155 = vtanh.f32 %v3046_v5 }
0x1a6b   :  { %v5154_v8 = vpop.eup %5153 }
0x1a6c   :  { %v3049_v9 = vadd.f32 1.0, %v5154_v8 }
0x1a6e   :  { %v3051_v11 = vmul.f32 0.5, %v3049_v9 }
0x1a6f   :  { %v5156_v10 = vpop.eup %5155 }
0x1a70   :  { %v3050_v12 = vadd.f32 1.0, %v5156_v10  ;;  %v3053_v14 = vmul.f32 %v3051_v11, %v3031_v52 }
0x1a72   :  { %v3052_v13 = vmul.f32 0.5, %v3050_v12 }
0x1a74   :  { %v3054_v15 = vmul.f32 %v3052_v13, %v3034_v59 }
0x1a76   :  { %v3055_v16 = vpack.c.bf16 %v3054_v15, %v3053_v14  ;;  %v5071_v14 = vld [vmem:[%s7116_s19 + $0x8] sm:$0xff]   ;;  %v5072_v15 = vld [vmem:[#allocation59 + $0x8] sm:$0xff]  }
0x1a78   :  { %4790 = vmatmul.mubr.msk.bf16.vlgmr.msra.gmra.mxu1 %vm915_vm2, %v3055_v16  ;;  %v5073_v16 = vld [vmem:[%s7116_s19] sm:$0xff]  }
0x1a79   :  { %4809 = vmatprep.mubr.msk.bf16.mxu1 %vm6172_vm0, %v6171_v0  ;;  %4806 = vmatpush3.bf16.msra.mxu1 %v5069_v45 }
0x1a7a   :  { %4807 = vmatprep.subr.bf16.mxu1 %v6171_v0 }
0x1a7d   :  { %4808 = vmatpush3.bf16.msra.mxu1 %v5070_v46 }
0x1a7e   :  { %4821 = vmatprep.subr.bf16.mxu1 %v6171_v0 }
0x1b38   :  { %v3132_v56 = vpop.f32.mrf.mxu1 }
0x1b39   :  { %v3133_v22 = vadd.f32 %v4377_v21, %v3132_v56 }
0x1b3a   :  { %v4791_v23 = vpop.f32.mrf.mxu1 }
0x1b3b   :  { %v3139_v24 = vmul.f32 %v3133_v22, %v3133_v22 }
0x1b3c   :  { %v3135_v25 = vpop.f32.mrf.mxu1 }
0x1b3d   :  { %v3141_v57 = vmul.f32 %v3139_v24, %v3133_v22  ;;  %v3136_v26 = vadd.f32 %v4377_v21, %v3135_v25 }
0x1b3e   :  { %v4792_v27 = vpop.f32.mrf.mxu1 }
0x1b3f   :  { %v3143_v28 = vmul.f32 0.044715, %v3141_v57  ;;  %v3140_v29 = vmul.f32 %v3136_v26, %v3136_v26 }
0x1b41   :  { %v3145_v30 = vadd.f32 %v3143_v28, %v3133_v22  ;;  %v3142_v31 = vmul.f32 %v3140_v29, %v3136_v26 }
0x1b43   :  { %v3147_v32 = vmul.f32 0.7978846, %v3145_v30  ;;  %v3144_v6 = vmul.f32 0.044715, %v3142_v31 }
0x1b45   :  { %5157 = vtanh.f32 %v3147_v32  ;;  %v3146_v33 = vadd.f32 %v3144_v6, %v3136_v26 }
0x1b47   :  { %v3148_v34 = vmul.f32 0.7978846, %v3146_v33 }
0x1b49   :  { %5159 = vtanh.f32 %v3148_v34 }
0x1b52   :  { %v5158_v35 = vpop.eup %5157 }
0x1b53   :  { %v3151_v36 = vadd.f32 1.0, %v5158_v35 }
0x1b55   :  { %v3153_v37 = vmul.f32 0.5, %v3151_v36 }
0x1b56   :  { %v5160_v7 = vpop.eup %5159 }
0x1b57   :  { %v3152_v38 = vadd.f32 1.0, %v5160_v7  ;;  %v3155_v40 = vmul.f32 %v3153_v37, %v3133_v22 }
0x1b59   :  { %v3154_v39 = vmul.f32 0.5, %v3152_v38 }
0x1b5b   :  { %v3156_v41 = vmul.f32 %v3154_v39, %v3136_v26  ;;  %v5075_v39 = vld [vmem:[#allocation61 + $0x8] sm:$0xff]  }
0x1b5d   :  { %v3157_v42 = vpack.c.bf16 %v3156_v41, %v3155_v40  ;;  %v5076_v41 = vld [vmem:[#allocation61] sm:$0xff]  }
0x1b5f   :  { %4802 = vmatmul.mubr.msk.bf16.vlgmr.msra.gmra.mxu0 %vm915_vm2, %v3157_v42  ;;  %v4397_v42 = vld [vmem:[%s7117_s16] ss:$0 sm:$0xff] }
0x1b60   :  { %4817 = vmatprep.mubr.msk.bf16.mxu0 %vm6172_vm0, %v6171_v0  ;;  %4814 = vmatpush3.bf16.msra.mxu0 %v5071_v14 }
0x1b61   :  { %4815 = vmatprep.subr.bf16.mxu0 %v6171_v0 }
0x1b64   :  { %4816 = vmatpush3.bf16.msra.mxu0 %v5073_v16 }
0x1b65   :  { %4829 = vmatprep.subr.bf16.mxu0 %v6171_v0 }
0x1c1f   :  { %v3234_v48 = vpop.f32.mrf.mxu0 }
0x1c20   :  { %v3235_v49 = vadd.f32 %v4383_v47, %v3234_v48 }
0x1c21   :  { %v4803_v50 = vpop.f32.mrf.mxu0 }
0x1c22   :  { %v3241_v51 = vmul.f32 %v3235_v49, %v3235_v49 }
0x1c23   :  { %v3237_v52 = vpop.f32.mrf.mxu0 }
0x1c24   :  { %v3243_v53 = vmul.f32 %v3241_v51, %v3235_v49  ;;  %v3238_v54 = vadd.f32 %v4383_v47, %v3237_v52  ;;  %v4393_v51 = vld [vmem:[#allocation58] ss:$0 sm:$0xff] }
0x1c25   :  { %v4804_v55 = vpop.f32.mrf.mxu0 }
0x1c26   :  { %v3245_v58 = vmul.f32 0.044715, %v3243_v53  ;;  %v3242_v59 = vmul.f32 %v3238_v54, %v3238_v54 }
0x1c28   :  { %v3247_v60 = vadd.f32 %v3245_v58, %v3235_v49  ;;  %v3244_v61 = vmul.f32 %v3242_v59, %v3238_v54 }
0x1c2a   :  { %v3249_v62 = vmul.f32 0.7978846, %v3247_v60  ;;  %v3246_v63 = vmul.f32 0.044715, %v3244_v61  ;;  %v4401_v60 = vld [vmem:[%s7118_s18] ss:$0 sm:$0xff] }
0x1c2c   :  { %5161 = vtanh.f32 %v3249_v62  ;;  %v3248_v1 = vadd.f32 %v3246_v63, %v3238_v54 }
0x1c2e   :  { %v3250_v2 = vmul.f32 0.7978846, %v3248_v1 }
0x1c30   :  { %5163 = vtanh.f32 %v3250_v2 }
0x1c39   :  { %v5162_v3 = vpop.eup %5161 }
0x1c3a   :  { %v3253_v4 = vadd.f32 1.0, %v5162_v3 }
0x1c3c   :  { %v3255_v8 = vmul.f32 0.5, %v3253_v4 }
0x1c3d   :  { %v5164_v5 = vpop.eup %5163 }
0x1c3e   :  { %v3254_v9 = vadd.f32 1.0, %v5164_v5  ;;  %v3257_v11 = vmul.f32 %v3255_v8, %v3235_v49 }
0x1c40   :  { %v3256_v10 = vmul.f32 0.5, %v3254_v9 }
0x1c42   :  { %v3258_v12 = vmul.f32 %v3256_v10, %v3238_v54 }
0x1c44   :  { %v3259_v13 = vpack.c.bf16 %v3258_v12, %v3257_v11 }
0x1c46   :  { %4810 = vmatmul.mubr.msk.bf16.vlgmr.msra.gmra.mxu1 %vm812_vm1, %v3259_v13 }
0x1c47   :  { %4825 = vmatprep.mubr.msk.bf16.mxu1 %vm6172_vm0, %v6171_v0  ;;  %4822 = vmatpush3.bf16.msra.mxu1 %v5072_v15 }
0x1c48   :  { %4823 = vmatprep.subr.bf16.mxu1 %v6171_v0 }
0x1c4b   :  { %4824 = vmatpush3.bf16.msra.mxu1 %v5074_v17 }
0x1c4c   :  { %4837 = vmatprep.subr.bf16.mxu1 %v6171_v0 }
0x1d06   :  { %v3320_v19 = vpop.f32.mrf.mxu1 }
0x1d07   :  { %v3321_v20 = vadd.f32 %v4389_v18, %v3320_v19 }
0x1d08   :  { %v4811_v21 = vpop.f32.mrf.mxu1 }
0x1d09   :  { %v3327_v56 = vmul.f32 %v3321_v20, %v3321_v20 }
0x1d0a   :  { %v3323_v22 = vpop.f32.mrf.mxu1 }
0x1d0b   :  { %v3329_v23 = vmul.f32 %v3327_v56, %v3321_v20  ;;  %v3324_v24 = vadd.f32 %v4389_v18, %v3323_v22 }
0x1d0c   :  { %v4812_v25 = vpop.f32.mrf.mxu1 }
0x1d0d   :  { %v3331_v57 = vmul.f32 0.044715, %v3329_v23  ;;  %v3328_v26 = vmul.f32 %v3324_v24, %v3324_v24 }
0x1d0f   :  { %v3333_v27 = vadd.f32 %v3331_v57, %v3321_v20  ;;  %v3330_v28 = vmul.f32 %v3328_v26, %v3324_v24 }
0x1d11   :  { %v3335_v29 = vmul.f32 0.7978846, %v3333_v27  ;;  %v3332_v30 = vmul.f32 0.044715, %v3330_v28 }
0x1d13   :  { %5165 = vtanh.f32 %v3335_v29  ;;  %v3334_v31 = vadd.f32 %v3332_v30, %v3324_v24 }
0x1d15   :  { %v3336_v32 = vmul.f32 0.7978846, %v3334_v31 }
0x1d17   :  { %5167 = vtanh.f32 %v3336_v32 }
0x1d20   :  { %v5166_v6 = vpop.eup %5165 }
0x1d21   :  { %v3339_v33 = vadd.f32 1.0, %v5166_v6 }
0x1d23   :  { %v3341_v35 = vmul.f32 0.5, %v3339_v33 }
0x1d24   :  { %v5168_v34 = vpop.eup %5167 }
0x1d25   :  { %v3340_v36 = vadd.f32 1.0, %v5168_v34  ;;  %v3343_v37 = vmul.f32 %v3341_v35, %v3321_v20  ;;  %v5077_v35 = vld [vmem:[#allocation62 + $0x8] sm:$0xff]  }
0x1d27   :  { %v3342_v7 = vmul.f32 0.5, %v3340_v36  ;;  %v5078_v36 = vld [vmem:[#allocation62] sm:$0xff]  }
0x1d29   :  { %v3344_v38 = vmul.f32 %v3342_v7, %v3324_v24 }
0x1d2b   :  { %v3345_v40 = vpack.c.bf16 %v3344_v38, %v3343_v37 }
0x1d2d   :  { %4818 = vmatmul.mubr.msk.bf16.vlgmr.msra.gmra.mxu0 %vm812_vm1, %v3345_v40  ;;  %4826 = vmatmul.mubr.msk.bf16.vlgmr.msra.gmra.mxu1 %vm812_vm1, %v3345_v40 }
0x1d2e   :  { %4830 = vmatpush3.bf16.msra.mxu0 %v5075_v39  ;;  %4833 = vmatprep.mubr.msk.bf16.mxu0 %vm6172_vm0, %v6171_v0 }
0x1d2f   :  { %4831 = vmatprep.subr.bf16.mxu0 %v6171_v0  ;;  %4839 = vmatprep.mubr.msk.bf16.mxu1 %vm6172_vm0, %v6171_v0 }
0x1d32   :  { %4832 = vmatpush3.bf16.msra.mxu0 %v5076_v41 }
0x1d33   :  { %4843 = vmatprep.subr.bf16.mxu0 %v6171_v0 }
0x1d35   :  { %4834 = vmatmul.mubr.msk.bf16.vlgmr.msra.gmra.mxu0 %vm812_vm1, %v3345_v40 }
0x1d36   :  { %4845 = vmatprep.mubr.msk.bf16.mxu0 %vm6172_vm0, %v6171_v0 }
0x1ded   :  { %v3406_v45 = vpop.f32.mrf.mxu0  ;;  %v3470_v46 = vpop.f32.mrf.mxu1 }
0x1dee   :  { %v3471_v47 = vadd.f32 %v4397_v42, %v3470_v46  ;;  %v3407_v61 = vadd.f32 %v4393_v51, %v3406_v45 }
0x1def   :  { %v4819_v48 = vpop.f32.mrf.mxu0  ;;  %v4827_v49 = vpop.f32.mrf.mxu1 }
0x1df0   :  { %v3542_v50 = vpack.c.bf16 %v3471_v47, %v3471_v47  ;;  %v3541_v3 = vpack.c.bf16 %v3407_v61, %v3407_v61 }
0x1df1   :  { %v3409_v52 = vpop.f32.mrf.mxu0  ;;  %v3473_v53 = vpop.f32.mrf.mxu1 }
0x1df2   :  { %v3547_v54 = vsel %vm812_vm1, %v3542_v50, 0  ;;  %v3474_v55 = vadd.f32 %v4397_v42, %v3473_v53  ;;  %v3410_v12 = vadd.f32 %v4393_v51, %v3409_v52  ;;  %v4409_v53 = vld [vmem:[%s7119_s22] ss:$0 sm:$0xff] }
0x1df3   :  { %v4820_v58 = vpop.f32.mrf.mxu0  ;;  %v4828_v59 = vpop.f32.mrf.mxu1  ;;  %4838 = vmatpush3.bf16.xpose.msra.mxu1 %v3547_v54 }
0x1df4   :  { %4849 = vmatprep.subr.bf16.mxu1 %v6171_v0  ;;  %v3649_v63 = vpack.c.bf16 %v3474_v55, %v3474_v55  ;;  %v3648_v13 = vpack.c.bf16 %v3410_v12, %v3410_v12 }
0x1df5   :  { %v3534_v62 = vpop.f32.mrf.mxu0 }
0x1df6   :  { %v3535_v1 = vadd.f32 %v4401_v60, %v3534_v62  ;;  %v3654_v8 = vsel %vm812_vm1, %v3649_v63, 0 }
0x1df7   :  { %v4835_v2 = vpop.f32.mrf.mxu0 }
0x1df8   :  { %v3599_v4 = vpack.c.bf16 %v3535_v1, %v3535_v1 }
0x1df9   :  { %v3537_v5 = vpop.f32.mrf.mxu0 }
0x1dfa   :  { %v3604_v9 = vsel %vm1425_vm3, %v3599_v4, 0  ;;  %v3538_v10 = vadd.f32 %v4401_v60, %v3537_v5  ;;  %4840 = vmatmul.mubr.msk.bf16.vlgmr.msra.gmra.mxu1 %vm812_vm1, %v3541_v3 }
0x1dfb   :  { %v4836_v11 = vpop.f32.mrf.mxu0  ;;  %4844 = vmatpush3.bf16.msra.mxu0 %v3604_v9  ;;  %4850 = vmatpush3.bf16.xpose.msra.mxu1 %v3654_v8 }
0x1dfc   :  { %4851 = vmatprep.mubr.msk.bf16.mxu1 %vm6172_vm0, %v6171_v0  ;;  %4855 = vmatprep.subr.bf16.mxu0 %v6171_v0  ;;  %v3706_v28 = vpack.c.bf16 %v3538_v10, %v3538_v10 }
0x1dfd   :  { %4861 = vmatprep.subr.bf16.mxu1 %v6171_v0 }
0x1dfe   :  { %v3711_v32 = vsel %vm1425_vm3, %v3706_v28, 0 }
0x1e02   :  { %4852 = vmatmul.mubr.msk.bf16.vlgmr.msra.gmra.mxu1 %vm812_vm1, %v3648_v13 }
0x1e03   :  { %4865 = vmatprep.mubr.msk.bf16.mxu1 %vm6172_vm0, %v6171_v0  ;;  %4862 = vmatpush3.bf16.msra.mxu1 %v5077_v35 }
0x1e04   :  { %4863 = vmatprep.subr.bf16.mxu1 %v6171_v0 }
0x1e07   :  { %4864 = vmatpush3.bf16.msra.mxu1 %v5078_v36 }
0x1e08   :  { %4877 = vmatprep.subr.bf16.mxu1 %v6171_v0 }
0x1eba   :  { %v3583_v14 = vpop.f32.mrf.mxu1 }
0x1ebb   :  { %v3589_v15 = vsel %vm1410_vm4, %v3583_v14, -inf }
0x1ebc   :  { %3590 = vmax.xlane.f32.xlu0 %v3589_v15  ;;  %v4841_v16 = vpop.f32.mrf.mxu1 }
0x1ebe   :  { %v3586_v17 = vpop.f32.mrf.mxu1 }
0x1ec0   :  { %v4842_v18 = vpop.f32.mrf.mxu1 }
0x1ec2   :  { %v3690_v19 = vpop.f32.mrf.mxu1 }
0x1ec3   :  { %v3696_v20 = vsel %vm1410_vm4, %v3690_v19, -inf }
0x1ec4   :  { %3697 = vmax.xlane.f32.xlu1 %v3696_v20  ;;  %v4853_v21 = vpop.f32.mrf.mxu1 }
0x1ec6   :  { %v3693_v56 = vpop.f32.mrf.mxu1 }
0x1ec8   :  { %v4854_v22 = vpop.f32.mrf.mxu1 }
0x1ec9   :  { %v4413_v22 = vld [vmem:[%s7121_s30] ss:$0 sm:$0xff] }
0x1f45   :  { %v3591_v23 = vpop.xlane.xlu0 %3590 }
0x1f46   :  { %v3592_v24 = vsub.f32 %v3583_v14, %v3591_v23  ;;  %v5079_v14 = vld [vmem:[%s7120_s23 + $0x8] sm:$0xff]  }
0x1f48   :  { %v3593_v25 = vmul.f32 1.442695, %v3592_v24 }
0x1f4a   :  { %5169 = vpow2.f32 %v3593_v25 }
0x1f4d   :  { %v3698_v57 = vpop.xlane.xlu1 %3697 }
0x1f4e   :  { %v3699_v26 = vsub.f32 %v3690_v19, %v3698_v57  ;;  %v4414_v57 = vld [vmem:[%s7122_s21] ss:$0 sm:$0xff] }
0x1f50   :  { %v3700_v27 = vmul.f32 1.442695, %v3699_v26 }
0x1f52   :  { %5171 = vpow2.f32 %v3700_v27 }
0x1f57   :  { %v5170_v29 = vpop.eup %5169 }
0x1f58   :  { %v3595_v30 = vsel %vm1410_vm4, %v5170_v29, 0.0  ;;  %v3598_v31 = vpack.c.bf16 %v5170_v29, %v5170_v29 }
0x1f59   :  { %3596 = vadd.xlane.f32.xlu0 %v3595_v30  ;;  %v3956_v30 = vld [vmem:[%s7123_s12] sm:$0xf] }
0x1f5a   :  { %4846 = vmatmul.mubr.msk.bf16.vlgmr.msra.gmra.mxu0 %vm1410_vm4, %v3598_v31  ;;  %v3968_v31 = vsel %vm1425_vm3, %v3956_v30, 0 }
0x1f5b   :  { %4856 = vmatpush3.bf16.msra.mxu0 %v3711_v32  ;;  %4857 = vmatprep.mubr.msk.bf16.mxu0 %vm6172_vm0, %v6171_v0  ;;  %v4415_v32 = vld [vmem:[%s7124_s26] ss:$0 sm:$0xff] }
0x1f5c   :  { %4869 = vmatprep.subr.bf16.mxu0 %v6171_v0 }
0x1f5f   :  { %v5172_v6 = vpop.eup %5171 }
0x1f60   :  { %v3702_v33 = vsel %vm1410_vm4, %v5172_v6, 0.0  ;;  %v3705_v34 = vpack.c.bf16 %v5172_v6, %v5172_v6 }
0x1f61   :  { %3703 = vadd.xlane.f32.xlu1 %v3702_v33 }
0x1f62   :  { %4858 = vmatmul.mubr.msk.bf16.vlgmr.msra.gmra.mxu0 %vm1410_vm4, %v3705_v34 }
0x1f63   :  { %4873 = vmatprep.mubr.msk.bf16.mxu0 %vm6172_vm0, %v6171_v0  ;;  %4870 = vmatpush3.bf16.msra.mxu0 %v5079_v14 }
0x1f64   :  { %4871 = vmatprep.subr.bf16.mxu0 %v6171_v0 }
0x1fe2   :  { %v3597_v7 = vpop.xlane.xlu0 %3596 }
0x1fe3   :  { %5173 = vrcp.f32 %v3597_v7 }
0x1fea   :  { %v3704_v37 = vpop.xlane.xlu1 %3703 }
0x1feb   :  { %5175 = vrcp.f32 %v3704_v37 }
0x1ff0   :  { %v5174_v42 = vpop.eup %5173 }
0x1ff8   :  { %v5176_v45 = vpop.eup %5175 }
0x201a   :  { %v3640_v38 = vpop.f32.mrf.mxu0 }
0x201b   :  { %v3647_v47 = vmul.f32 %v5174_v42, %v3640_v38 }
0x201c   :  { %v4847_v39 = vpop.f32.mrf.mxu0 }
0x201e   :  { %v3643_v40 = vpop.f32.mrf.mxu0 }
0x2020   :  { %v4848_v41 = vpop.f32.mrf.mxu0 }
0x2022   :  { %v3747_v46 = vpop.f32.mrf.mxu0 }
0x2023   :  { %v3754_v48 = vmul.f32 %v5176_v45, %v3747_v46 }
0x2024   :  { %v4859_v49 = vpop.f32.mrf.mxu0 }
0x2025   :  { %v3755_v50 = vpack.c.bf16 %v3754_v48, %v3647_v47 }
0x2026   :  { %v3750_v51 = vpop.f32.mrf.mxu0 }
0x2027   :  { %4866 = vmatmul.mubr.msk.bf16.vlgmr.msra.gmra.mxu1 %vm812_vm1, %v3755_v50 }
0x2028   :  { %v4860_v52 = vpop.f32.mrf.mxu0  ;;  %4879 = vmatprep.mubr.msk.bf16.mxu1 %vm6172_vm0, %v6171_v0  ;;  %4878 = vmatpush3.bf16.msra.mxu1 %v3968_v31 }
0x20e7   :  { %v3816_v54 = vpop.f32.mrf.mxu1 }
0x20e8   :  { %v3817_v55 = vadd.f32 %v4409_v53, %v3816_v54 }
0x20e9   :  { %v4867_v58 = vpop.f32.mrf.mxu1 }
0x20ea   :  { %v3823_v59 = vadd.f32 %v3817_v55, %v6862_v43 }
0x20eb   :  { %v3819_v60 = vpop.f32.mrf.mxu1 }
0x20ec   :  { %v3820_v61 = vadd.f32 %v4409_v53, %v3819_v60  ;;  %v3827_v62 = vsel %vm812_vm1, %v3823_v59, 0.0  ;;  %v4419_v60 = vld [vmem:[%s7125_s8] ss:$0 sm:$0xff] }
0x20ed   :  { %3828 = vadd.xlane.f32.xlu0 %v3827_v62  ;;  %v4868_v63 = vpop.f32.mrf.mxu1 }
0x20ee   :  { %v3824_v1 = vadd.f32 %v3820_v61, %v6864_v44  ;;  %v5080_v44 = vld [vmem:[%s7120_s23] sm:$0xff]  }
0x20ef   :  { %4872 = vmatpush3.bf16.msra.mxu0 %v5080_v44 }
0x20f0   :  { %v3830_v2 = vsel %vm812_vm1, %v3824_v1, 0.0  ;;  %4883 = vmatprep.subr.mxu0 %v6171_v0 }
0x20f1   :  { %3831 = vadd.xlane.f32.xlu1 %v3830_v2 }
0x2176   :  { %v3829_v3 = vpop.xlane.xlu0 %3828 }
0x2177   :  { %v3833_v4 = vmul.f32 0.03125, %v3829_v3 }
0x2179   :  { %v3835_v5 = vsub.f32 %v3823_v59, %v3833_v4 }
0x217a   :  { %v3832_v8 = vpop.xlane.xlu1 %3831 }
0x217b   :  { %v3834_v9 = vmul.f32 0.03125, %v3832_v8  ;;  %v3837_v10 = vmul.f32 %v3835_v5, %v3835_v5 }
0x217d   :  { %v3836_v43 = vsub.f32 %v3824_v1, %v3834_v9  ;;  %v3839_v11 = vsel %vm812_vm1, %v3837_v10, 0.0 }
0x217e   :  { %3840 = vadd.xlane.f32.xlu0 %v3839_v11 }
0x217f   :  { %v3838_v12 = vmul.f32 %v3836_v43, %v3836_v43 }
0x2181   :  { %v3842_v13 = vsel %vm812_vm1, %v3838_v12, 0.0 }
0x2182   :  { %3843 = vadd.xlane.f32.xlu1 %v3842_v13 }
0x2207   :  { %v3841_v15 = vpop.xlane.xlu0 %3840 }
0x2208   :  { %v3845_v16 = vmul.f32 0.03125, %v3841_v15 }
0x220a   :  { %v3847_v17 = vadd.f32 1e-05, %v3845_v16 }
0x220b   :  { %v3844_v18 = vpop.xlane.xlu1 %3843 }
0x220c   :  { %5177 = vrsqrt.f32 %v3847_v17  ;;  %v3846_v19 = vmul.f32 0.03125, %v3844_v18  ;;  %v4079_v18 = vld [vmem:[%s6552_s17 + $0x18] sm:$0xff] }
0x220e   :  { %v3848_v20 = vadd.f32 1e-05, %v3846_v19  ;;  %v4078_v19 = vld [vmem:[%s6552_s17 + $0x10] sm:$0xff] }
0x2210   :  { %5179 = vrsqrt.f32 %v3848_v20  ;;  %v4077_v20 = vld [vmem:[%s6552_s17 + $0x8] sm:$0xff] }
0x2219   :  { %v5178_v21 = vpop.eup %5177 }
0x221a   :  { %v3851_v56 = vmul.f32 %v5178_v21, %v3835_v5  ;;  %v4076_v21 = vld [vmem:[%s6552_s17] sm:$0xff]  ;;  %s6173_s17 = smov [#allocation64]  }
0x221c   :  { %v3859_v25 = vmul.f32 %v4413_v22, %v3851_v56 }
0x221d   :  { %v5180_v23 = vpop.eup %5179 }
0x221e   :  { %v3852_v24 = vmul.f32 %v5180_v23, %v3836_v43  ;;  %v3867_v27 = vadd.f32 %v4414_v57, %v3859_v25 }
0x2220   :  { %v3860_v26 = vmul.f32 %v4413_v22, %v3852_v24 }
0x2222   :  { %v3868_v28 = vadd.f32 %v4414_v57, %v3860_v26 }
0x2224   :  { %v3869_v29 = vpack.c.bf16 %v3868_v28, %v3867_v27 }
0x2226   :  { %4874 = vmatmul.mubr.msk.bf16.vlgmr.msra.gmra.mxu0 %vm812_vm1, %v3869_v29  ;;  %v4422_v29 = vld [vmem:[%s6547_s24] ss:$0 sm:$0xff]  ;;  %s4168_s24 = sshll.u32 %s6173_s17, 4  ;;  %s4169_s24 = int_to_ptr.vmem [resolvable:$true] %s4168_s24 }
0x2227   :  { %4891 = vmatprep.mubr.msk.f32.mxu0 %vm6172_vm0, %v6171_v0  ;;  %4884 = vmatpush3.msra.mxu0 %v4079_v18  ;;  %s5989_s25 = scalar_lea.vmem %s4169_s24, 32  ;;  %p5994_p5 = scmp.lt.s32.totalorder %s4169_s24, %s4169_s24 }
0x2228   :  { %4885 = vmatprep.subr.mxu0 %v6171_v0  ;;  %p5990_p4 = scmp.ne.s32.totalorder %s4169_s24, %s5989_s25  ;;  %p5995_p6 = scmp.lt.s32.totalorder %s5989_s25, %s5989_s25 }
0x2229   :  { %4886 = vmatpush3.msra.mxu0 %v4078_v19 }
0x222a   :  { %4887 = vmatprep.subr.mxu0 %v6171_v0  ;;  %p5996_p7 = por %p5995_p6, %p5994_p5 }
0x222b   :  { %4888 = vmatpush3.msra.mxu0 %v4077_v20 }
0x222c   :  { %4889 = vmatprep.subr.mxu0 %v6171_v0  ;;  %p5997_p8 = pnand %p5996_p7, %p5990_p4 }
0x222d   :  { %4890 = vmatpush3.msra.mxu0 %v4076_v21 }
0x22e6   :  { %v3930_v6 = vpop.f32.mrf.mxu0 }
0x22e7   :  { %v3931_v33 = vadd.f32 %v4415_v32, %v3930_v6 }
0x22e8   :  { %v4875_v34 = vpop.f32.mrf.mxu0 }
0x22e9   :  { %v3937_v35 = vmul.f32 %v3931_v33, %v3931_v33 }
0x22ea   :  { %v3933_v36 = vpop.f32.mrf.mxu0 }
0x22eb   :  { %v3939_v7 = vmul.f32 %v3937_v35, %v3931_v33  ;;  %v3934_v37 = vadd.f32 %v4415_v32, %v3933_v36 }
0x22ec   :  { %v4876_v38 = vpop.f32.mrf.mxu0 }
0x22ed   :  { %v3941_v39 = vmul.f32 0.044715, %v3939_v7  ;;  %v3938_v40 = vmul.f32 %v3934_v37, %v3934_v37 }
0x22ef   :  { %v3943_v41 = vadd.f32 %v3941_v39, %v3931_v33  ;;  %v3940_v42 = vmul.f32 %v3938_v40, %v3934_v37 }
0x22f1   :  { %v3945_v45 = vmul.f32 0.7978846, %v3943_v41  ;;  %v3942_v46 = vmul.f32 0.044715, %v3940_v42 }
0x22f3   :  { %5181 = vtanh.f32 %v3945_v45  ;;  %v3944_v47 = vadd.f32 %v3942_v46, %v3934_v37 }
0x22f5   :  { %v3946_v48 = vmul.f32 0.7978846, %v3944_v47 }
0x22f7   :  { %5183 = vtanh.f32 %v3946_v48 }
0x2300   :  { %v5182_v49 = vpop.eup %5181 }
0x2301   :  { %v3949_v50 = vadd.f32 1.0, %v5182_v49 }
0x2303   :  { %v3951_v52 = vmul.f32 0.5, %v3949_v50 }
0x2304   :  { %v5184_v51 = vpop.eup %5183 }
0x2305   :  { %v3950_v53 = vadd.f32 1.0, %v5184_v51  ;;  %v3953_v55 = vmul.f32 %v3951_v52, %v3931_v33  ;;  %v4423_v52 = vld [vmem:[%s6557_s3] ss:$0 sm:$0xff] }
0x2307   :  { %v3952_v54 = vmul.f32 0.5, %v3950_v53 }
0x2309   :  { %v3954_v58 = vmul.f32 %v3952_v54, %v3934_v37 }
0x230b   :  { %v3955_v59 = vpack.c.bf16 %v3954_v58, %v3953_v55 }
0x230d   :  { %4880 = vmatmul.mubr.msk.bf16.vlgmr.msra.gmra.mxu1 %vm1410_vm4, %v3955_v59 }
0x23cd   :  { %v4004_v61 = vpop.f32.mrf.mxu1 }
0x23ce   :  { %v4005_v62 = vadd.f32 %v4419_v60, %v4004_v61 }
0x23cf   :  { %v4881_v63 = vpop.f32.mrf.mxu1 }
0x23d0   :  { %v4011_v1 = vadd.f32 %v4005_v62, %v3867_v27  ;;  %v4421_v27 = vld [vmem:[%s7126_s0] ss:$0 sm:$0xff] }
0x23d1   :  { %v4007_v2 = vpop.f32.mrf.mxu1 }
0x23d2   :  { %v4008_v3 = vadd.f32 %v4419_v60, %v4007_v2  ;;  %v4015_v4 = vsel %vm812_vm1, %v4011_v1, 0.0 }
0x23d3   :  { %4016 = vadd.xlane.f32.xlu0 %v4015_v4  ;;  %v4882_v5 = vpop.f32.mrf.mxu1 }
0x23d4   :  { %v4012_v8 = vadd.f32 %v4008_v3, %v3868_v28 }
0x23d6   :  { %v4018_v9 = vsel %vm812_vm1, %v4012_v8, 0.0 }
0x23d7   :  { %4019 = vadd.xlane.f32.xlu1 %v4018_v9 }
0x245c   :  { %v4017_v10 = vpop.xlane.xlu0 %4016 }
0x245d   :  { %v4021_v43 = vmul.f32 0.03125, %v4017_v10 }
0x245f   :  { %v4023_v11 = vsub.f32 %v4011_v1, %v4021_v43 }
0x2460   :  { %v4020_v12 = vpop.xlane.xlu1 %4019 }
0x2461   :  { %v4022_v13 = vmul.f32 0.03125, %v4020_v12  ;;  %v4025_v14 = vmul.f32 %v4023_v11, %v4023_v11 }
0x2463   :  { %v4024_v44 = vsub.f32 %v4012_v8, %v4022_v13  ;;  %v4027_v15 = vsel %vm812_vm1, %v4025_v14, 0.0 }
0x2464   :  { %4028 = vadd.xlane.f32.xlu0 %v4027_v15 }
0x2465   :  { %v4026_v16 = vmul.f32 %v4024_v44, %v4024_v44 }
0x2467   :  { %v4030_v17 = vsel %vm812_vm1, %v4026_v16, 0.0 }
0x2468   :  { %4031 = vadd.xlane.f32.xlu1 %v4030_v17 }
0x24ed   :  { %v4029_v56 = vpop.xlane.xlu0 %4028 }
0x24ee   :  { %v4033_v22 = vmul.f32 0.03125, %v4029_v56 }
0x24f0   :  { %v4035_v23 = vadd.f32 1e-05, %v4033_v22 }
0x24f1   :  { %v4032_v24 = vpop.xlane.xlu1 %4031 }
0x24f2   :  { %5185 = vrsqrt.f32 %v4035_v23  ;;  %v4034_v25 = vmul.f32 0.03125, %v4032_v24 }
0x24f4   :  { %v4036_v57 = vadd.f32 1e-05, %v4034_v25 }
0x24f6   :  { %5187 = vrsqrt.f32 %v4036_v57 }
0x24ff   :  { %v5186_v26 = vpop.eup %5185 }
0x2500   :  { %v4039_v28 = vmul.f32 %v5186_v26, %v4023_v11 }
0x2502   :  { %v4047_v30 = vmul.f32 %v4421_v27, %v4039_v28 }
0x2503   :  { %v5188_v31 = vpop.eup %5187 }
0x2504   :  { %v4040_v32 = vmul.f32 %v5188_v31, %v4024_v44  ;;  %v4055_v6 = vadd.f32 %v4422_v29, %v4047_v30 }
0x2506   :  { %v4048_v33 = vmul.f32 %v4421_v27, %v4040_v32  ;;  %v4057_v0 = vsel %vm812_vm1, %v4055_v6, 0.0 }
0x2507   :  { %v4058_v34 = vrot.slane %v4057_v0, 4 }
0x2508   :  { %v4056_v35 = vadd.f32 %v4422_v29, %v4048_v33 }
0x2509   :  { %v4059_v36 = vadd.f32 %v4058_v34, %v4057_v0 }
0x250a   :  { %v4066_v7 = vsel %vm812_vm1, %v4056_v35, 0.0 }
0x250b   :  { %v4060_v37 = vrot.slane %v4059_v36, 2  ;;  %v4067_v38 = vrot.slane %v4066_v7, 4 }
0x250d   :  { %v4061_v39 = vadd.f32 %v4060_v37, %v4059_v36  ;;  %v4068_v40 = vadd.f32 %v4067_v38, %v4066_v7 }
0x250f   :  { %v4062_v41 = vrot.slane %v4061_v39, 1  ;;  %v4069_v42 = vrot.slane %v4068_v40, 2 }
0x2511   :  { %v4070_v45 = vadd.f32 %v4069_v42, %v4068_v40  ;;  %v4063_v46 = vadd.f32 %v4062_v41, %v4061_v39 }
0x2513   :  { %v4071_v47 = vrot.slane %v4070_v45, 1  ;;  %v4065_v49 = vmul.f32 0.125, %v4063_v46 }
0x2515   :  { %v4072_v48 = vadd.f32 %v4071_v47, %v4070_v45 }
0x2517   :  { %v4073_v50 = vmul.f32 0.125, %v4072_v48 }
0x2519   :  { %v4075_v51 = vsel %vm4074_vm5, %v4065_v49, %v4073_v50 }
0x251a   :  { %4892 = vmatmul.mubr.msk.f32.vlgmr.msra.gmra.mxu0 %vm812_vm1, %v4075_v51 }
0x25da   :  { %v4156_v53 = vpop.f32.mrf.mxu0 }
0x25db   :  { %v4157_v54 = vadd.f32 %v4423_v52, %v4156_v53 }
0x25dc   :  { %v4893_v55 = vpop.f32.mrf.mxu0 }
0x25dd   :  { %4161 = vst.msk [vmem:[#allocation64] sm:$0x3] %vm4160_vm6, %v4157_v54 }
0x25de   :  { %6000 = shalt.err (!%p5997_p8)
}
0x25df   :  { %4171 = dma.vmem_to_hbm [thread:$0]  %s4169_s24, 32, %s6562_s13, [#allocation4]  }
0x25e0   :  { %6051 = dma.done.wait [#allocation4], 32  }
0x25e1   :  { %6052 = vsyncadd [#allocation4], 4294967264 }
0x25e2   :  { %4175 = vsyncpa [#allocation3], 1 }
0x25e3   :  { %4176 = vsyncpa [#allocation6], 1 }
0x25e4   :  { %4177 = vsyncpa [#allocation9], 1 }
0x25e5   :  { %4178 = vsyncpa [#allocation12], 1 }
0x25e6   :  { %4179 = vsyncpa [#allocation15], 1 }
0x25e7   :  { %4180 = vsyncpa [#allocation18], 1 }
0x25e8   :  { %4181 = vsyncpa [#allocation21], 1 }
0x25e9   :  { %4182 = vsyncpa [#allocation24], 1 }
0x25ea   :  { %4183 = vsyncpa [#allocation27], 1 }
0x25eb   :  { %4184 = vsyncpa [#allocation30], 1 }
0x25ec   :  { %4185 = vsyncpa [#allocation33], 1 }
0x25ed   :  { %4186 = vsyncpa [#allocation36], 1 }
0x25ee   :  { %4187 = vsyncpa [#allocation39], 1 }
0x25ef   :  { %4188 = vsyncpa [#allocation42], 1 }
0x25f0   :  { %4189 = vsyncpa [#allocation45], 1 }
0x25f1   :  { %4190 = vsyncpa [#allocation48], 1 }
0x25f2   :  { %4191 = vsyncpa [#allocation51], 1 }
0x25f3   :  { %4192 = vsyncpa [#allocation54], 1 }
0x25f4   :  { %4193 = vsyncpa [#allocation57], 1 }
0x25f5   :  { %4194 = vsyncpa [#allocation60], 1 }
0x25f6   :  { %4195 = vsyncpa [#allocation63], 1 }
0x25f7   :  { %4196 = vsyncpa [#allocation4], 1 }

</bundles_post_ra>
